<compile_context>
chip_gen: v5e
topology: v5e:2x2
jax: 0.10.0
libtpu: 0.0.40
codegen_flags: <defaults>
</compile_context>

<pallas_src>
import math

import jax
import jax.numpy as jnp
from jax.experimental import pallas as pl
from jax.experimental.pallas import tpu as pltpu


# ------------------------------ kernel bodies --------------------------------

def _gelu_tanh(h):
    # nn.GELU(approximate='tanh'):  0.5*h*(1 + tanh(sqrt(2/pi)*(h + 0.044715 h^3)))
    # folded as sqrt(2/pi)*h*(1 + 0.044715*h*h); tanh goes to the EUP slot.
    u = 0.7978845608028654 * h * (1.0 + 0.044715 * h * h)
    return 0.5 * h * (1.0 + jnp.tanh(u))


def _mlp_kernel_resident(x_ref, w1_ref, b1_ref, w2_ref, b2_ref, o_ref):
    """Full W1/W2 resident in VMEM; one grid step per token tile."""
    h = jnp.dot(x_ref[...], w1_ref[...],
                preferred_element_type=jnp.float32) + b1_ref[...]
    h = _gelu_tanh(h)
    o_ref[...] = (jnp.dot(h.astype(jnp.bfloat16), w2_ref[...],
                          preferred_element_type=jnp.float32)
                  + b2_ref[...]).astype(o_ref.dtype)


def _mlp_kernel_tiled(x_ref, w1_ref, b1_ref, w2_ref, b2_ref, o_ref):
    """grid = (token tiles, hidden tiles); axis 1 is the 4C reduction.

    The f32 output tile is the accumulator: its block index (i, 0) is constant
    across j, so it stays resident in VMEM for the whole reduction.
    """
    j = pl.program_id(1)

    @pl.when(j == 0)
    def _():
        # Initialize with the c_proj bias — removes the finalize bias-add pass.
        o_ref[...] = jnp.broadcast_to(b2_ref[...], o_ref.shape).astype(o_ref.dtype)

    # h_j = gelu(x @ W1[:, hidden tile j] + b1_j)   (bf16 operands, f32 acc)
    h = jnp.dot(x_ref[...], w1_ref[...],
                preferred_element_type=jnp.float32) + b1_ref[...]
    h = _gelu_tanh(h)

    # Accumulate h_j @ W2[hidden tile j, :] directly into the f32 output tile.
    o_ref[...] += jnp.dot(h.astype(jnp.bfloat16), w2_ref[...],
                          preferred_element_type=jnp.float32)


# ------------------------------ host wrapper ---------------------------------

def _round_up(x, m):
    return (x + m - 1) // m * m


def _largest_tile(dim, preferred, multiple=128):
    """Largest divisor of `dim` that is <= preferred and a multiple of
    `multiple`; falls back to the full dim (always legal for BlockSpec)."""
    best = dim
    for t in range(multiple, dim + 1, multiple):
        if dim % t == 0 and t <= preferred:
            best = t
    return best


def _vmem_capacity_bytes():
    try:
        info = pltpu.get_tpu_info()
        for attr in ("vmem_capacity_bytes", "vmem_size_bytes", "vmem_bytes"):
            v = getattr(info, attr, None)
            if v:
                return int(v)
    except Exception:
        pass
    return 64 << 20  # conservative fallback (v7x per-TensorCore VMEM)


def mlp_forward(x, w_fc, b_fc, w_proj, b_proj, *, force_tiled=False):
    """x: (..., C) float32.  w_fc: (C, 4C) bf16, b_fc: (1, 4C) f32,
    w_proj: (4C, C) bf16, b_proj: (1, C) f32.  Returns (..., C) float32."""
    orig_shape = x.shape
    C = orig_shape[-1]
    H = w_fc.shape[1]
    M = math.prod(orig_shape[:-1])

    # bf16 activations end-to-end into the kernel (single cast, halves HBM/VMEM
    # traffic and removes the per-grid-step VPU cast of an unchanged x block).
    x2 = x.reshape(M, C).astype(jnp.bfloat16)

    # Token tile: up to 512 rows, multiple of 16 (bf16 sublane packing), and at
    # least 2 tiles so both v7x TensorCores get work on the "parallel" axis.
    tm = min(512, _round_up(M, 16))
    Mp = _round_up(M, tm)
    if Mp // tm < 2:
        Mp = _round_up(M, 32)
        tm = Mp // 2
    if Mp != M:
        x2 = jnp.pad(x2, ((0, Mp - M), (0, 0)))

    vmem_budget = int(0.75 * _vmem_capacity_bytes())

    # Working-set estimate for the weight-resident path.
    weight_bytes = (C * H + H * C) * 2 + (H + C) * 4
    resident_ws = (weight_bytes
                   + 2 * tm * C * 2        # double-buffered x tiles (bf16)
                   + 2 * tm * C * 4        # double-buffered output tiles (f32)
                   + tm * H * 4            # gelu intermediate (f32)
                   + tm * H * 2)           # bf16 copy fed to the 2nd matmul
    use_resident = (not force_tiled) and (resident_ws + (4 << 20) <= vmem_budget)

    if use_resident:
        vmem_limit = min(max(resident_ws + (4 << 20), 16 << 20), vmem_budget)
        out = pl.pallas_call(
            _mlp_kernel_resident,
            out_shape=jax.ShapeDtypeStruct((Mp, C), jnp.float32),
            grid=(Mp // tm,),
            in_specs=[
                pl.BlockSpec((tm, C), lambda i: (i, 0)),   # x tile
                pl.BlockSpec((C, H), lambda i: (0, 0)),    # W1 (resident)
                pl.BlockSpec((1, H), lambda i: (0, 0)),    # b1 (resident)
                pl.BlockSpec((H, C), lambda i: (0, 0)),    # W2 (resident)
                pl.BlockSpec((1, C), lambda i: (0, 0)),    # b2 (resident)
            ],
            out_specs=pl.BlockSpec((tm, C), lambda i: (i, 0)),
            compiler_params=pltpu.CompilerParams(
                dimension_semantics=("parallel",),
                vmem_limit_bytes=int(vmem_limit),
            ),
        )(x2, w_fc, b_fc, w_proj, b_proj)
    else:
        # Hidden (reduction) tile: multiple of 128, prefer 512.
        th = _largest_tile(H, preferred=512, multiple=128)
        per_step = (2 * (tm * C * 2        # x tile (bf16), double-buffered
                         + C * th * 2      # W1 tile (bf16)
                         + th * 4          # b1 tile
                         + th * C * 2      # W2 tile (bf16)
                         + C * 4)          # b2
                    + 2 * tm * C * 4       # resident + writeback output (f32)
                    + tm * th * 4          # gelu intermediate (f32)
                    + tm * th * 2)         # bf16 copy for the 2nd matmul
        vmem_limit = min(max(per_step + (4 << 20), 16 << 20), vmem_budget)
        out = pl.pallas_call(
            _mlp_kernel_tiled,
            out_shape=jax.ShapeDtypeStruct((Mp, C), jnp.float32),
            grid=(Mp // tm, H // th),
            in_specs=[
                pl.BlockSpec((tm, C), lambda i, j: (i, 0)),   # x
                pl.BlockSpec((C, th), lambda i, j: (0, j)),   # W1 tile
                pl.BlockSpec((1, th), lambda i, j: (0, j)),   # b1 tile
                pl.BlockSpec((th, C), lambda i, j: (j, 0)),   # W2 tile
                pl.BlockSpec((1, C), lambda i, j: (0, 0)),    # b2
            ],
            out_specs=pl.BlockSpec((tm, C), lambda i, j: (i, 0)),
            compiler_params=pltpu.CompilerParams(
                dimension_semantics=("parallel", "arbitrary"),
                vmem_limit_bytes=int(vmem_limit),
            ),
        )(x2, w_fc, b_fc, w_proj, b_proj)

    return out[:M].reshape(orig_shape)


# --------------------------- parameter construction --------------------------

def init_mlp_params(key, n_embd):
    """PyTorch nn.Linear default init: U(-1/sqrt(fan_in), 1/sqrt(fan_in)).
    Weights stored as (in, out) and cast to bf16; biases kept f32 as (1, n)."""
    C, H = n_embd, 4 * n_embd
    k1, k2, k3, k4 = jax.random.split(key, 4)
    bnd_fc = 1.0 / math.sqrt(C)
    bnd_pr = 1.0 / math.sqrt(H)
    w_fc = jax.random.uniform(k1, (C, H), jnp.float32, -bnd_fc, bnd_fc).astype(jnp.bfloat16)
    b_fc = jax.random.uniform(k2, (1, H), jnp.float32, -bnd_fc, bnd_fc)
    w_proj = jax.random.uniform(k3, (H, C), jnp.float32, -bnd_pr, bnd_pr).astype(jnp.bfloat16)
    b_proj = jax.random.uniform(k4, (1, C), jnp.float32, -bnd_pr, bnd_pr)
    return w_fc, b_fc, w_proj, b_proj


# ---------------------------------- main -------------------------------------

if __name__ == "__main__":
    # Small but lane-aligned shapes: B=2, T=64, C=256 (4C = 1024).
    B, T, C = 2, 64, 256

    key = jax.random.PRNGKey(0)
    kx, kp = jax.random.split(key)
    x = jax.random.normal(kx, (B, T, C), jnp.float32)
    w_fc, b_fc, w_proj, b_proj = init_mlp_params(kp, C)

    # Plain-JAX reference with the same bf16-operand / f32-accumulation math.
    # TODO(synk): dropout(p=0.3) is identity (eval/inference semantics);
    # training-mode stochastic dropout is not implemented.
    xb = x.reshape(-1, C).astype(jnp.bfloat16)
    h_ref = jnp.dot(xb, w_fc, preferred_element_type=jnp.float32) + b_fc
    h_ref = _gelu_tanh(h_ref)
    y_ref = (jnp.dot(h_ref.astype(jnp.bfloat16), w_proj,
                     preferred_element_type=jnp.float32) + b_proj).reshape(B, T, C)

    # Path 1: weight-resident kernel (selected automatically for these shapes).
    y = jax.block_until_ready(mlp_forward(x, w_fc, b_fc, w_proj, b_proj))
    assert y.shape == (B, T, C)
    assert bool(jnp.all(jnp.isfinite(y)))
    assert bool(jnp.allclose(y, y_ref, rtol=1e-2, atol=1e-2))

    # Path 2: tiled-reduction kernel (accumulate into the f32 output tile).
    y_t = jax.block_until_ready(
        mlp_forward(x, w_fc, b_fc, w_proj, b_proj, force_tiled=True))
    assert bool(jnp.all(jnp.isfinite(y_t)))
    assert bool(jnp.allclose(y_t, y_ref, rtol=1e-2, atol=1e-2))

    print("KERNEL_OK")
</pallas_src>

<mosaic_0001>
module attributes {stable_mosaic.version = 11 : i64} {
  func.func @_mlp_kernel_resident(%arg0: i32, %arg1: memref<64x256xbf16, #tpu.memory_space<vmem>>, %arg2: memref<256x1024xbf16, #tpu.memory_space<vmem>>, %arg3: memref<1x1024xf32, #tpu.memory_space<vmem>>, %arg4: memref<1024x256xbf16, #tpu.memory_space<vmem>>, %arg5: memref<1x256xf32, #tpu.memory_space<vmem>>, %arg6: memref<64x256xf32, #tpu.memory_space<vmem>>) attributes {dimension_semantics = [#tpu.dimension_semantics<parallel>], iteration_bounds = array<i64: 2>, scalar_prefetch = 0 : i64, scratch_operands = 0 : i64, tpu.core_type = #tpu.core_type<tc>, window_params = [{transform_indices = @transform_0, window_bounds = array<i64: 64, 256>}, {pipeline_mode = #tpu.pipeline_mode<synchronous>, transform_indices = @transform_1, window_bounds = array<i64: 256, 1024>}, {pipeline_mode = #tpu.pipeline_mode<synchronous>, transform_indices = @transform_2, window_bounds = array<i64: 1, 1024>}, {pipeline_mode = #tpu.pipeline_mode<synchronous>, transform_indices = @transform_3, window_bounds = array<i64: 1024, 256>}, {pipeline_mode = #tpu.pipeline_mode<synchronous>, transform_indices = @transform_4, window_bounds = array<i64: 1, 256>}, {transform_indices = @transform_5, window_bounds = array<i64: 64, 256>}]} {
    %c0 = arith.constant 0 : index
    %c0_0 = arith.constant 0 : index
    %0 = vector.load %arg1[%c0, %c0_0] : memref<64x256xbf16, #tpu.memory_space<vmem>>, vector<64x256xbf16>
    %c0_1 = arith.constant 0 : index
    %c0_2 = arith.constant 0 : index
    %1 = vector.load %arg2[%c0_1, %c0_2] : memref<256x1024xbf16, #tpu.memory_space<vmem>>, vector<256x1024xbf16>
    %cst = arith.constant dense<0.000000e+00> : vector<64x1024xf32>
    %2 = tpu.matmul %0, %1, %cst {dimension_numbers = #tpu.dot_dimension_numbers<[1], [0], [0], [1], [0, 0, 1, 1], [], []>} : vector<64x256xbf16>, vector<256x1024xbf16>, vector<64x1024xf32> -> vector<64x1024xf32>
    %c0_3 = arith.constant 0 : index
    %c0_4 = arith.constant 0 : index
    %3 = vector.load %arg3[%c0_3, %c0_4] : memref<1x1024xf32, #tpu.memory_space<vmem>>, vector<1x1024xf32>
    %4 = vector.broadcast %3 : vector<1x1024xf32> to vector<64x1024xf32>
    %5 = arith.addf %2, %4 : vector<64x1024xf32>
    %cst_5 = arith.constant 0.797884583 : f32
    %6 = vector.broadcast %cst_5 : f32 to vector<64x1024xf32>
    %7 = arith.mulf %6, %5 : vector<64x1024xf32>
    %cst_6 = arith.constant 4.471500e-02 : f32
    %8 = vector.broadcast %cst_6 : f32 to vector<64x1024xf32>
    %9 = arith.mulf %8, %5 : vector<64x1024xf32>
    %10 = arith.mulf %9, %5 : vector<64x1024xf32>
    %cst_7 = arith.constant 1.000000e+00 : f32
    %11 = vector.broadcast %cst_7 : f32 to vector<64x1024xf32>
    %12 = arith.addf %11, %10 : vector<64x1024xf32>
    %13 = arith.mulf %7, %12 : vector<64x1024xf32>
    %cst_8 = arith.constant 5.000000e-01 : f32
    %14 = vector.broadcast %cst_8 : f32 to vector<64x1024xf32>
    %15 = arith.mulf %14, %5 : vector<64x1024xf32>
    %16 = math.tanh %13 : vector<64x1024xf32>
    %cst_9 = arith.constant 1.000000e+00 : f32
    %17 = vector.broadcast %cst_9 : f32 to vector<64x1024xf32>
    %18 = arith.addf %17, %16 : vector<64x1024xf32>
    %19 = arith.mulf %15, %18 : vector<64x1024xf32>
    %20 = arith.truncf %19 : vector<64x1024xf32> to vector<64x1024xbf16>
    %c0_10 = arith.constant 0 : index
    %c0_11 = arith.constant 0 : index
    %21 = vector.load %arg4[%c0_10, %c0_11] : memref<1024x256xbf16, #tpu.memory_space<vmem>>, vector<1024x256xbf16>
    %cst_12 = arith.constant dense<0.000000e+00> : vector<64x256xf32>
    %22 = tpu.matmul %20, %21, %cst_12 {dimension_numbers = #tpu.dot_dimension_numbers<[1], [0], [0], [1], [0, 0, 1, 1], [], []>} : vector<64x1024xbf16>, vector<1024x256xbf16>, vector<64x256xf32> -> vector<64x256xf32>
    %c0_13 = arith.constant 0 : index
    %c0_14 = arith.constant 0 : index
    %23 = vector.load %arg5[%c0_13, %c0_14] : memref<1x256xf32, #tpu.memory_space<vmem>>, vector<1x256xf32>
    %24 = vector.broadcast %23 : vector<1x256xf32> to vector<64x256xf32>
    %25 = arith.addf %22, %24 : vector<64x256xf32>
    %c0_15 = arith.constant 0 : index
    %c0_16 = arith.constant 0 : index
    %26 = vector.load %arg6[%c0_15, %c0_16] : memref<64x256xf32, #tpu.memory_space<vmem>>, vector<64x256xf32>
    tpu.vector_store %arg6[%c0_15, %c0_16], %25 {strides = array<i32>} : memref<64x256xf32, #tpu.memory_space<vmem>>, vector<64x256xf32>,
    return
  }
  func.func @transform_0(%arg0: i32) -> (i32, i32) {
    %c0_i32 = arith.constant 0 : i32
    %c0_i32_0 = arith.constant 0 : i32
    return %arg0, %c0_i32 : i32, i32
  }
  func.func @transform_1(%arg0: i32) -> (i32, i32) {
    %c0_i32 = arith.constant 0 : i32
    %c0_i32_0 = arith.constant 0 : i32
    %c0_i32_1 = arith.constant 0 : i32
    return %c0_i32, %c0_i32_0 : i32, i32
  }
  func.func @transform_2(%arg0: i32) -> (i32, i32) {
    %c0_i32 = arith.constant 0 : i32
    %c0_i32_0 = arith.constant 0 : i32
    %c0_i32_1 = arith.constant 0 : i32
    return %c0_i32, %c0_i32_0 : i32, i32
  }
  func.func @transform_3(%arg0: i32) -> (i32, i32) {
    %c0_i32 = arith.constant 0 : i32
    %c0_i32_0 = arith.constant 0 : i32
    %c0_i32_1 = arith.constant 0 : i32
    return %c0_i32, %c0_i32_0 : i32, i32
  }
  func.func @transform_4(%arg0: i32) -> (i32, i32) {
    %c0_i32 = arith.constant 0 : i32
    %c0_i32_0 = arith.constant 0 : i32
    %c0_i32_1 = arith.constant 0 : i32
    return %c0_i32, %c0_i32_0 : i32, i32
  }
  func.func @transform_5(%arg0: i32) -> (i32, i32) {
    %c0_i32 = arith.constant 0 : i32
    %c0_i32_0 = arith.constant 0 : i32
    return %arg0, %c0_i32 : i32, i32
  }
}

</mosaic_0001>

<bundles_post_ra>
// kernel: tpu_custom_call.1
= control target key start
LH: loop header
LB: loop body
LE: loop exit
PB: predicated region body
PF: predicated region fallthrough
CT: control target
= control target key end

     0   :  { %10 = vsyncpa [#allocation3], 0  ;;  %s6596_s0 = inlined_call_operand.hbm [shape: bf16[128,256], index: 0, kind: input, shape index: {}]   ;;  %s6597_s1 = inlined_call_operand.hbm [shape: bf16[256,1024], index: 1, kind: input, shape index: {}]   ;;  %s6598_s2 = inlined_call_operand.hbm [shape: f32[1,1024], index: 2, kind: input, shape index: {}]   ;;  %s6599_s3 = inlined_call_operand.hbm [shape: bf16[1024,256], index: 3, kind: input, shape index: {}]   ;;  %s6600_s4 = inlined_call_operand.vmem [shape: f32[1,256], index: 4, kind: input, shape index: {}]   ;;  %s6601_s5 = inlined_call_operand.hbm [shape: f32[128,256], index: 5, kind: output, shape index: {}]  }
   0x1   :  { %12 = vsyncpa [#allocation3 + $0x1], 0 }
   0x2   :  { %13 = vsyncpa [#allocation6], 0 }
   0x3   :  { %14 = vsyncpa [#allocation9], 0 }
   0x4   :  { %15 = vsyncpa [#allocation4], 0 }
   0x5   :  { %17 = vsyncpa [#allocation4 + $0x1], 0  ;;  %s5368_s18 = smov 0   ;;  %s5370_s19 = smov 0  }
   0x6   :  { %s5372_s20 = smov 0   ;;  %s5374_s21 = smov 0  }
   0x7 LB: > { %s5389_s22 = sadd.s32 4294967295, %s5327_s21   ;;  %s3575_s23 = sadd.s32 4294967294, %s5327_s21   ;;  %s5327_s21 = sphi %s5374_s21, %s6620_s21   ;;  %s5323_s20 = sphi %s5372_s20, %s6619_s20   ;;  %s5319_s19 = sphi %s5370_s19, %s6618_s19   ;;  %s5315_s18 = sphi %s5368_s18, %s6617_s18  }
   0x8   : > { %p43_p0 = scmp.ne.s32.totalorder %s5319_s19, %s5315_s18  ;;  %p44_p1 = scmp.eq.s32.totalorder %s5389_s22, 0 }
   0x9   : > { %p151_p2 = scmp.eq.s32.totalorder %s5389_s22, 1  ;;  %p157_p3 = scmp.eq.s32.totalorder %s3575_s23, 1 }
   0xa   : > { %p5398_p4 = por %p44_p1, %p43_p0  ;;  %p3576_p5 = scmp.ge.s32.totalorder %s5327_s21, 1 }
   0xb   : > { %p5403_p6 = por %p157_p3, %p43_p0  ;;  %p164_p7 = scmp.lt.s32.totalorder %s5327_s21, 3 }
   0xc   : > { %s175_s28 = sshll.u32 %s6597_s1, 4  ;;  %s5329_s30 = smov [#allocation5]   ;;  %s176_s28 = int_to_ptr.hbm [resolvable:$true] %s175_s28 }
   0xd   : > { %p5411_p8 = pnand %p3576_p5, %p164_p7  ;;  %s177_s6 = sshll.u32 %s5329_s30, 4  ;;  %s178_s6 = int_to_ptr.vmem [resolvable:$true] %s177_s6 }
   0xe   : > { %s190_s10 = sshll.u32 %s6598_s2, 4  ;;  %s5330_s11 = smov 512   ;;  %s191_s10 = int_to_ptr.hbm [resolvable:$true] %s190_s10 }
   0xf   : > { %p4937_p9 = pneg %p5411_p8  ;;  %s5331_s12 = smov 32  }
  0x10   : > { %s5332_s13 = smov [#allocation7]   ;;  %s201_s17 = sshll.u32 %s6599_s3, 4  ;;  %s202_s17 = int_to_ptr.hbm [resolvable:$true] %s201_s17 }
  0x11   : > { %p5419_p10 = pnand %p4937_p9, %p44_p1  ;;  %s192_s14 = sshll.u32 %s5332_s13, 4  ;;  %s193_s14 = int_to_ptr.vmem [resolvable:$true] %s192_s14 }
  0x12   : > { %s5333_s23 = smov [#allocation8]   ;;  %s6602_s27 = smov 128  }
  0x13   : > { %4940 = dma.hbm_to_vmem [thread:$0]  (!%p5419_p10), %s176_s28, 16384, %s178_s6, [#allocation6], %s5330_s11, %s5330_s11, %s5331_s12  }
  0x14   : > { %4943 = dma.hbm_to_vmem [thread:$0]  (!%p5419_p10), %s191_s10, 128, %s193_s14, [#allocation6]  }
  0x15   : > { %s203_s26 = sshll.u32 %s5333_s23, 4  ;;  %s5335_s28 = smov 8   ;;  %s204_s26 = int_to_ptr.vmem [resolvable:$true] %s203_s26 }
  0x16   : > { %4946 = dma.hbm_to_vmem [thread:$0]  (!%p5419_p10), %s202_s17, 16384, %s204_s26, [#allocation9], %s6602_s27, %s6602_s27, %s5335_s28  }
  0x17   : > { %s5440_s30 = sadd.s32 1, %s5327_s21   ;;  %s30_s8 = sadd.s32 1, %s5323_s20 }
  0x18   : > { %s27_s6 = ssub.s32 %s5327_s21, %s5440_s30  ;;  %p37_p13 = scmp.ne.s32.totalorder %s5323_s20, %s5319_s19 }
  0x19   : > { %p28_p12 = scmp.eq.s32.totalorder %s27_s6, 0  ;;  %p38_p0 = scmp.eq.s32.totalorder %s5327_s21, 0 }
  0x1a   : > { %p5453_p3 = por %p151_p2, %p37_p13  ;;  %p4958_p5 = scmp.lt.s32.totalorder %s5327_s21, 2 }
  0x1b   : > { %s5449_s9 = scalar_select %p28_p12, %s5323_s20, %s30_s8  }
  0x1c   : > { %s220_s7 = sand.u32 1, %s5323_s20   ;;  %s4654_s11 = sshll.u32 %s5327_s21, 6 }
  0x1d   : > { %p39_p7 = por %p38_p0, %p37_p13  ;;  %s3581_s12 = sshll.u32 %s220_s7, 6 }
  0x1e   : > { %s230_s15 = scalar_lea.hbm %s6596_s0, %s4654_s11  ;;  %s224_s17 = scalar_lea.vmem [#allocation2], %s3581_s12 }
  0x1f   : > { %s231_s16 = sshll.u32 %s230_s15, 4  ;;  %s233_s23 = sshll.u32 %s224_s17, 4  ;;  %s232_s16 = int_to_ptr.hbm [resolvable:$true] %s231_s16  ;;  %s234_s23 = int_to_ptr.vmem [resolvable:$true] %s233_s23 }
  0x20   : > { %p5463_p9 = pnand %p4958_p5, %p39_p7  ;;  %s221_s6 = scalar_lea.sflag [#allocation3], %s220_s7 }
  0x21   : > { %s5223_s8 = sshra.s32 %s232_s16, 4  ;;  %s5230_s12 = scalar_lea.hbm %s6596_s0, 128  ;;  %s5224_s8 = int_to_ptr.hbm [resolvable:$true] %s5223_s8 }
  0x22   : > { %s5225_s27 = scalar_lea.hbm %s5224_s8, 64  ;;  %p5227_p10 = pneg %p5463_p9 }
  0x23   : > { %p5226_p2 = scmp.ne.s32.totalorder %s5224_s8, %s5225_s27  ;;  %p5231_p0 = scmp.lt.s32.totalorder %s5224_s8, %s6596_s0 }
  0x24   : > { %p5232_p5 = scmp.lt.s32.totalorder %s5230_s12, %s5225_s27 }
  0x25   : > { %p5228_p12 = pnand %p5227_p10, %p5226_p2 }
  0x26   : > { %p5233_p7 = por %p5232_p5, %p5231_p0 }
  0x27   : > { %p5229_p13 = pneg %p5228_p12 }
  0x29   : > { %p5234_p11 = pnand %p5233_p7, %p5229_p13 }
  0x2b   : > { %5237 = shalt.err (!%p5234_p11)
}
  0x2c   : > { %s6611_s7 = smov 128   ;;  %245 = sbr.rel (%p5411_p8) target bundleno = 772 (0x304), region = 40 }
  0x2d   : > { %4950 = dma.hbm_to_vmem [thread:$0]  (!%p5463_p9), %s232_s16, 1024, %s234_s23, %s221_s6, %s6611_s7, %s6611_s7, %s5335_s28  }
  0x31   : > { %s5483_s17 = sand.u32 1, %s5319_s19  }
  0x32   : > { %s3586_s8 = sshll.u32 %s5483_s17, 6  ;;  %s248_s27 = scalar_lea.sflag [#allocation3], %s5483_s17 }
  0x33   : > { %s5487_s11 = scalar_lea.vmem [#allocation2], %s3586_s8 }
  0x34   : > { %5298 = dma.done.wait (%p5398_p4), %s248_s27, 1024  }
  0x35   : > { %5300 = vsyncadd (%p5398_p4), %s248_s27, 4294966272 }
  0x36   : > { %5302 = dma.done.wait (%p44_p1), [#allocation6], 16512  }
  0x37   : > { %5304 = vsyncadd (%p44_p1), [#allocation6], 4294950784 }
  0x38   : > { %5306 = dma.done.wait (%p44_p1), [#allocation9], 16384  }
  0x39   : > { %5308 = vsyncadd (%p44_p1), [#allocation9], 4294950912  ;;  %v3849_v0 = vld [vmem:[#allocation5 + $0x1c0] sm:$0xf]  ;;  %v4719_v5 = vld [vmem:[#allocation5 + $0x1c4] sm:$0xf] }
  0x3a   : > { %v4723_v1 = vld [vmem:[#allocation5 + $0x1dc] sm:$0xf0]  ;;  %v3851_v6 = vld [vmem:[#allocation5 + $0x1e0] sm:$0xf0]  ;;  %s3590_s28 = sshll.u32 %s5483_s17, 7  ;;  %s4920_s23 = sshll.u32 %s5389_s22, 7 }
  0x3b   : > { %v4105_v2 = vld [vmem:[#allocation5 + $0x3c0] sm:$0xf]  ;;  %v3850_v3 = vor.u32 %v4723_v1, %v3849_v0  ;;  %v3854_v8 = vor.u32 %v4719_v5, %v3851_v6  ;;  %v4783_v9 = vld [vmem:[#allocation5 + $0x3c4] sm:$0xf]  ;;  %s6437_s16 = scalar_lea.vmem [#allocation10], %s3590_s28  ;;  %s3469_s13 = scalar_lea.hbm %s6601_s5, %s4920_s23 }
  0x3c   : > { %v4787_v4 = vld [vmem:[#allocation5 + $0x3dc] sm:$0xf0]  ;;  %v4107_v10 = vld [vmem:[#allocation5 + $0x3e0] sm:$0xf0]  ;;  %s3470_s12 = sshll.u32 %s6437_s16, 4  ;;  %s3472_s14 = sshll.u32 %s3469_s13, 4  ;;  %s3471_s12 = int_to_ptr.vmem [resolvable:$true] %s3470_s12  ;;  %s3473_s14 = int_to_ptr.hbm [resolvable:$true] %s3472_s14 }
  0x3d   : > { %v4106_v7 = vor.u32 %v4787_v4, %v4105_v2  ;;  %v3817_v11 = vld [vmem:[#allocation5 + $0x180] sm:$0xf]  ;;  %1130 = vmatpush.bf16.msra.mxu0 %v3850_v3  ;;  %v4110_v12 = vor.u32 %v4783_v9, %v4107_v10  ;;  %1188 = vmatpush.bf16.msra.mxu2 %v3854_v8  ;;  %v4711_v18 = vld [vmem:[#allocation5 + $0x184] sm:$0xf]  ;;  %s3457_s22 = scalar_lea.sflag [#allocation4], %s5483_s17  ;;  %s5267_s15 = sshra.s32 %s3473_s14, 4  ;;  %s5268_s15 = int_to_ptr.hbm [resolvable:$true] %s5267_s15 }
  0x3e   : > { %v4715_v13 = vld [vmem:[#allocation5 + $0x19c] sm:$0xf0]  ;;  %v3819_v19 = vld [vmem:[#allocation5 + $0x1a0] sm:$0xf0]  ;;  %s5269_s7 = scalar_lea.hbm %s5268_s15, 128  ;;  %p5274_p11 = scmp.lt.s32.totalorder %s5268_s15, %s6601_s5 }
  0x3f   : > { %v4073_v14 = vld [vmem:[#allocation5 + $0x380] sm:$0xf]  ;;  %1159 = vmatpush.bf16.msra.mxu1 %v4106_v7  ;;  %v3818_v16 = vor.u32 %v4715_v13, %v3817_v11  ;;  %v4775_v20 = vld [vmem:[#allocation5 + $0x384] sm:$0xf]  ;;  %1217 = vmatpush.bf16.msra.mxu3 %v4110_v12  ;;  %v3822_v21 = vor.u32 %v4711_v18, %v3819_v19  ;;  %p5270_p1 = scmp.ne.s32.totalorder %s5268_s15, %s5269_s7 }
  0x40   : > { %v4779_v15 = vld [vmem:[#allocation5 + $0x39c] sm:$0xf0]  ;;  %v4075_v22 = vld [vmem:[#allocation5 + $0x3a0] sm:$0xf0] }
  0x41   : > { %v4074_v17 = vor.u32 %v4779_v15, %v4073_v14  ;;  %v3785_v23 = vld [vmem:[#allocation5 + $0x140] sm:$0xf]  ;;  %v4078_v25 = vor.u32 %v4775_v20, %v4075_v22  ;;  %v4703_v28 = vld [vmem:[#allocation5 + $0x144] sm:$0xf]  ;;  %1131 = vmatpush.bf16.msra.mxu0 %v3818_v16  ;;  %1189 = vmatpush.bf16.msra.mxu2 %v3822_v21  ;;  %p5271_p4 = pnand %p5270_p1, %p5453_p3 }
  0x42   : > { %v4707_v24 = vld [vmem:[#allocation5 + $0x15c] sm:$0xf0]  ;;  %v3787_v30 = vld [vmem:[#allocation5 + $0x160] sm:$0xf0] }
  0x43   : > { %v4041_v26 = vld [vmem:[#allocation5 + $0x340] sm:$0xf]  ;;  %v3786_v29 = vor.u32 %v4707_v24, %v3785_v23  ;;  %v4767_v31 = vld [vmem:[#allocation5 + $0x344] sm:$0xf]  ;;  %1160 = vmatpush.bf16.msra.mxu1 %v4074_v17  ;;  %v3790_v34 = vor.u32 %v4703_v28, %v3787_v30  ;;  %1218 = vmatpush.bf16.msra.mxu3 %v4078_v25  ;;  %v3859_v30 = vld [vmem:[#allocation5 + $0x1e8] sm:$0xf0]  ;;  %p5272_p8 = pneg %p5271_p4 }
  0x44   : > { %v4771_v27 = vld [vmem:[#allocation5 + $0x35c] sm:$0xf0]  ;;  %v4043_v32 = vld [vmem:[#allocation5 + $0x360] sm:$0xf0] }
  0x45   : > { %v4042_v33 = vor.u32 %v4771_v27, %v4041_v26  ;;  %v3753_v35 = vld [vmem:[#allocation5 + $0x100] sm:$0xf]  ;;  %v4046_v38 = vor.u32 %v4767_v31, %v4043_v32  ;;  %v4695_v40 = vld [vmem:[#allocation5 + $0x104] sm:$0xf]  ;;  %1132 = vmatpush.bf16.msra.mxu0 %v3786_v29  ;;  %1190 = vmatpush.bf16.msra.mxu2 %v3790_v34  ;;  %v4720_v29 = vld [vmem:[#allocation5 + $0x1cc] sm:$0xf] }
  0x46   : > { %v4699_v36 = vld [vmem:[#allocation5 + $0x11c] sm:$0xf0]  ;;  %v3755_v41 = vld [vmem:[#allocation5 + $0x120] sm:$0xf0]  ;;  %v4656_v32 = vld [vmem:[%s5487_s11 + $0x4] sm:$0xf0] }
  0x47   : > { %v4009_v37 = vld [vmem:[#allocation5 + $0x300] sm:$0xf]  ;;  %v4759_v42 = vld [vmem:[#allocation5 + $0x304] sm:$0xf]  ;;  %v3754_v44 = vor.u32 %v4699_v36, %v3753_v35  ;;  %1161 = vmatpush.bf16.msra.mxu1 %v4042_v33  ;;  %v3758_v46 = vor.u32 %v4695_v40, %v3755_v41  ;;  %1219 = vmatpush.bf16.msra.mxu3 %v4046_v38  ;;  %v4784_v33 = vld [vmem:[#allocation5 + $0x3cc] sm:$0xf]  ;;  %v3862_v40 = vor.u32 %v4720_v29, %v3859_v30 }
  0x48   : > { %v4763_v39 = vld [vmem:[#allocation5 + $0x31c] sm:$0xf0]  ;;  %v4011_v43 = vld [vmem:[#allocation5 + $0x320] sm:$0xf0]  ;;  %v4115_v34 = vld [vmem:[#allocation5 + $0x3e8] sm:$0xf0] }
  0x49   : > { %v4010_v45 = vor.u32 %v4763_v39, %v4009_v37  ;;  %v3721_v47 = vld [vmem:[#allocation5 + $0xc0] sm:$0xf]  ;;  %v4014_v50 = vor.u32 %v4759_v42, %v4011_v43  ;;  %v4687_v52 = vld [vmem:[#allocation5 + $0xc4] sm:$0xf]  ;;  %1133 = vmatpush.bf16.msra.mxu0 %v3754_v44  ;;  %1191 = vmatpush.bf16.msra.mxu2 %v3758_v46  ;;  %v3595_v38 = vld [vmem:[%s5487_s11 + $0x8] sm:$0xf0] }
  0x4a   : > { %v4691_v48 = vld [vmem:[#allocation5 + $0xdc] sm:$0xf0]  ;;  %v3723_v53 = vld [vmem:[#allocation5 + $0xe0] sm:$0xf0]  ;;  %v3857_v41 = vld [vmem:[#allocation5 + $0x1c8] sm:$0xf] }
  0x4b   : > { %v3977_v49 = vld [vmem:[#allocation5 + $0x2c0] sm:$0xf]  ;;  %v4751_v54 = vld [vmem:[#allocation5 + $0x2c4] sm:$0xf]  ;;  %v3722_v56 = vor.u32 %v4691_v48, %v3721_v47  ;;  %1162 = vmatpush.bf16.msra.mxu1 %v4010_v45  ;;  %v3726_v58 = vor.u32 %v4687_v52, %v3723_v53  ;;  %1220 = vmatpush.bf16.msra.mxu3 %v4014_v50  ;;  %v4724_v42 = vld [vmem:[#allocation5 + $0x1e4] sm:$0xf0]  ;;  %v4118_v45 = vor.u32 %v4784_v33, %v4115_v34 }
  0x4c   : > { %v4755_v51 = vld [vmem:[#allocation5 + $0x2dc] sm:$0xf0]  ;;  %v3979_v55 = vld [vmem:[#allocation5 + $0x2e0] sm:$0xf0]  ;;  %v4113_v43 = vld [vmem:[#allocation5 + $0x3c8] sm:$0xf]  ;;  %v3858_v52 = vor.u32 %v4724_v42, %v3857_v41 }
  0x4d   : > { %v3978_v57 = vor.u32 %v4755_v51, %v3977_v49  ;;  %v3689_v59 = vld [vmem:[#allocation5 + $0x80] sm:$0xf]  ;;  %v3982_v62 = vor.u32 %v4751_v54, %v3979_v55  ;;  %v4679_v0 = vld [vmem:[#allocation5 + $0x84] sm:$0xf]  ;;  %1134 = vmatpush.bf16.msra.mxu0 %v3722_v56  ;;  %1192 = vmatpush.bf16.msra.mxu2 %v3726_v58  ;;  %v4788_v46 = vld [vmem:[#allocation5 + $0x3e4] sm:$0xf0] }
  0x4e   : > { %v4683_v60 = vld [vmem:[#allocation5 + $0x9c] sm:$0xf0]  ;;  %v3691_v1 = vld [vmem:[#allocation5 + $0xa0] sm:$0xf0]  ;;  %v4712_v47 = vld [vmem:[#allocation5 + $0x18c] sm:$0xf]  ;;  %v4114_v53 = vor.u32 %v4788_v46, %v4113_v43 }
  0x4f   : > { %v3945_v61 = vld [vmem:[#allocation5 + $0x280] sm:$0xf]  ;;  %v4743_v2 = vld [vmem:[#allocation5 + $0x284] sm:$0xf]  ;;  %v3690_v4 = vor.u32 %v4683_v60, %v3689_v59  ;;  %1163 = vmatpush.bf16.msra.mxu1 %v3978_v57  ;;  %v3694_v6 = vor.u32 %v4679_v0, %v3691_v1  ;;  %1221 = vmatpush.bf16.msra.mxu3 %v3982_v62  ;;  %v3827_v48 = vld [vmem:[#allocation5 + $0x1a8] sm:$0xf0] }
  0x50   : > { %v4747_v63 = vld [vmem:[#allocation5 + $0x29c] sm:$0xf0]  ;;  %v3947_v3 = vld [vmem:[#allocation5 + $0x2a0] sm:$0xf0]  ;;  %v4776_v50 = vld [vmem:[#allocation5 + $0x38c] sm:$0xf]  ;;  %v3830_v54 = vor.u32 %v4712_v47, %v3827_v48 }
  0x51   : > { %v3946_v5 = vor.u32 %v4747_v63, %v3945_v61  ;;  %v3657_v7 = vld [vmem:[#allocation5 + $0x40] sm:$0xf]  ;;  %v3950_v10 = vor.u32 %v4743_v2, %v3947_v3  ;;  %v4671_v12 = vld [vmem:[#allocation5 + $0x44] sm:$0xf]  ;;  %1135 = vmatpush.bf16.msra.mxu0 %v3690_v4  ;;  %1193 = vmatpush.bf16.msra.mxu2 %v3694_v6  ;;  %v4083_v51 = vld [vmem:[#allocation5 + $0x3a8] sm:$0xf0] }
  0x52   : > { %v4675_v8 = vld [vmem:[#allocation5 + $0x5c] sm:$0xf0]  ;;  %v3659_v13 = vld [vmem:[#allocation5 + $0x60] sm:$0xf0]  ;;  %v3825_v55 = vld [vmem:[#allocation5 + $0x188] sm:$0xf]  ;;  %v4086_v58 = vor.u32 %v4776_v50, %v4083_v51 }
  0x53   : > { %v3913_v9 = vld [vmem:[#allocation5 + $0x240] sm:$0xf]  ;;  %v4735_v14 = vld [vmem:[#allocation5 + $0x244] sm:$0xf]  ;;  %v3658_v16 = vor.u32 %v4675_v8, %v3657_v7  ;;  %1164 = vmatpush.bf16.msra.mxu1 %v3946_v5  ;;  %v3662_v20 = vor.u32 %v4671_v12, %v3659_v13  ;;  %1222 = vmatpush.bf16.msra.mxu3 %v3950_v10  ;;  %v4716_v56 = vld [vmem:[#allocation5 + $0x1a4] sm:$0xf0] }
  0x54   : > { %v4739_v11 = vld [vmem:[#allocation5 + $0x25c] sm:$0xf0]  ;;  %v3915_v15 = vld [vmem:[#allocation5 + $0x260] sm:$0xf0]  ;;  %v4081_v57 = vld [vmem:[#allocation5 + $0x388] sm:$0xf]  ;;  %v3826_v0 = vor.u32 %v4716_v56, %v3825_v55 }
  0x55   : > { %v3625_v17 = vld [vmem:[#allocation5] sm:$0xf]  ;;  %v3914_v19 = vor.u32 %v4739_v11, %v3913_v9  ;;  %v4663_v23 = vld [vmem:[#allocation5 + $0x4] sm:$0xf]  ;;  %v3918_v24 = vor.u32 %v4735_v14, %v3915_v15  ;;  %1136 = vmatpush.bf16.msra.mxu0 %v3658_v16  ;;  %1194 = vmatpush.bf16.msra.mxu2 %v3662_v20  ;;  %v4780_v59 = vld [vmem:[#allocation5 + $0x3a4] sm:$0xf0] }
  0x56   : > { %v4667_v18 = vld [vmem:[#allocation5 + $0x1c] sm:$0xf0]  ;;  %v3627_v25 = vld [vmem:[#allocation5 + $0x20] sm:$0xf0]  ;;  %v4704_v60 = vld [vmem:[#allocation5 + $0x14c] sm:$0xf]  ;;  %v4082_v1 = vor.u32 %v4780_v59, %v4081_v57 }
  0x57   : > { %v3881_v21 = vld [vmem:[#allocation5 + $0x200] sm:$0xf]  ;;  %v4727_v26 = vld [vmem:[#allocation5 + $0x204] sm:$0xf]  ;;  %v3626_v31 = vor.u32 %v4667_v18, %v3625_v17  ;;  %1165 = vmatpush.bf16.msra.mxu1 %v3914_v19  ;;  %v3630_v36 = vor.u32 %v4663_v23, %v3627_v25  ;;  %1223 = vmatpush.bf16.msra.mxu3 %v3918_v24  ;;  %v3795_v61 = vld [vmem:[#allocation5 + $0x168] sm:$0xf0] }
  0x58   : > { %v4731_v22 = vld [vmem:[#allocation5 + $0x21c] sm:$0xf0]  ;;  %v3883_v27 = vld [vmem:[#allocation5 + $0x220] sm:$0xf0]  ;;  %v4768_v62 = vld [vmem:[#allocation5 + $0x34c] sm:$0xf]  ;;  %v3798_v2 = vor.u32 %v4704_v60, %v3795_v61 }
  0x59   : > { %v3593_v28 = vld [vmem:[%s5487_s11] sm:$0xf]  ;;  %v3882_v35 = vor.u32 %v4731_v22, %v3881_v21  ;;  %v4655_v37 = vld [vmem:[%s5487_s11 + $0x4] sm:$0xf]  ;;  %v3886_v39 = vor.u32 %v4727_v26, %v3883_v27  ;;  %1137 = vmatpush.bf16.msra.mxu0 %v3626_v31  ;;  %1195 = vmatpush.bf16.msra.mxu2 %v3630_v36  ;;  %v4051_v63 = vld [vmem:[#allocation5 + $0x368] sm:$0xf0] }
  0x5a   : > { %v5505_v44 = vor.u32 %v4656_v32, %v3593_v28  ;;  %v5507_v49 = vor.u32 %v4655_v37, %v3595_v38  ;;  %v3793_v3 = vld [vmem:[#allocation5 + $0x148] sm:$0xf]  ;;  %v4054_v6 = vor.u32 %v4768_v62, %v4051_v63  ;;  %v4696_v8 = vld [vmem:[#allocation5 + $0x10c] sm:$0xf]  ;;  %v3601_v13 = vld [vmem:[%s5487_s11 + $0x10] sm:$0xf] }
  0x5b   : > { %1166 = vmatpush.bf16.msra.mxu1 %v3882_v35  ;;  %1224 = vmatpush.bf16.msra.mxu3 %v3886_v39  ;;  %v4708_v4 = vld [vmem:[#allocation5 + $0x164] sm:$0xf0]  ;;  %v3763_v9 = vld [vmem:[#allocation5 + $0x128] sm:$0xf0]  ;;  %v4658_v23 = vld [vmem:[%s5487_s11 + $0x14] sm:$0xf0] }
  0x5c   : > { %1138 = vmatmul.bf16.vlgmr.msra.gmra.mxu0 %v5505_v44  ;;  %1196 = vmatmul.bf16.vlgmr.msra.gmra.mxu2 %v5505_v44  ;;  %v4049_v5 = vld [vmem:[#allocation5 + $0x348] sm:$0xf]  ;;  %v4760_v10 = vld [vmem:[#allocation5 + $0x30c] sm:$0xf]  ;;  %v3794_v12 = vor.u32 %v4708_v4, %v3793_v3  ;;  %v3766_v15 = vor.u32 %v4696_v8, %v3763_v9  ;;  %v4657_v26 = vld [vmem:[%s5487_s11 + $0x14] sm:$0xf]  ;;  %v5517_v34 = vor.u32 %v4658_v23, %v3601_v13 }
  0x5d   : > { %1304 = vmatpush.bf16.msrb.mxu2 %v3862_v40  ;;  %1246 = vmatpush.bf16.msrb.mxu0 %v3858_v52  ;;  %v4772_v7 = vld [vmem:[#allocation5 + $0x364] sm:$0xf0]  ;;  %v4019_v11 = vld [vmem:[#allocation5 + $0x328] sm:$0xf0]  ;;  %v3603_v27 = vld [vmem:[%s5487_s11 + $0x18] sm:$0xf0] }
  0x5e   : > { %1167 = vmatmul.bf16.vlgmr.msra.gmra.mxu1 %v5507_v49  ;;  %1225 = vmatmul.bf16.vlgmr.msra.gmra.mxu3 %v5507_v49  ;;  %v4050_v14 = vor.u32 %v4772_v7, %v4049_v5  ;;  %v3761_v16 = vld [vmem:[#allocation5 + $0x108] sm:$0xf]  ;;  %v4022_v19 = vor.u32 %v4760_v10, %v4019_v11  ;;  %v4688_v21 = vld [vmem:[#allocation5 + $0xcc] sm:$0xf]  ;;  %v5519_v39 = vor.u32 %v4657_v26, %v3603_v27  ;;  %v4725_v26 = vld [vmem:[#allocation5 + $0x1ec] sm:$0xf0] }
  0x5f   : > { %1333 = vmatpush.bf16.msrb.mxu3 %v4118_v45  ;;  %1275 = vmatpush.bf16.msrb.mxu1 %v4114_v53  ;;  %v4700_v17 = vld [vmem:[#allocation5 + $0x124] sm:$0xf0]  ;;  %v3731_v22 = vld [vmem:[#allocation5 + $0xe8] sm:$0xf0] }
  0x60   : > { %v4017_v18 = vld [vmem:[#allocation5 + $0x308] sm:$0xf]  ;;  %v4752_v24 = vld [vmem:[#allocation5 + $0x2cc] sm:$0xf]  ;;  %v3762_v28 = vor.u32 %v4700_v17, %v3761_v16  ;;  %v3734_v30 = vor.u32 %v4688_v21, %v3731_v22  ;;  %v3867_v21 = vld [vmem:[#allocation5 + $0x1f0] sm:$0xf0] }
  0x61   : > { %1305 = vmatpush.bf16.msrb.mxu2 %v3830_v54  ;;  %1247 = vmatpush.bf16.msrb.mxu0 %v3826_v0  ;;  %v4764_v20 = vld [vmem:[#allocation5 + $0x324] sm:$0xf0]  ;;  %v3987_v25 = vld [vmem:[#allocation5 + $0x2e8] sm:$0xf0]  ;;  %v4785_v22 = vld [vmem:[#allocation5 + $0x3d4] sm:$0xf] }
  0x62   : > { %v4018_v29 = vor.u32 %v4764_v20, %v4017_v18  ;;  %v3729_v31 = vld [vmem:[#allocation5 + $0xc8] sm:$0xf]  ;;  %v3990_v35 = vor.u32 %v4752_v24, %v3987_v25  ;;  %v4680_v37 = vld [vmem:[#allocation5 + $0x8c] sm:$0xf]  ;;  %v4721_v20 = vld [vmem:[#allocation5 + $0x1d4] sm:$0xf] }
  0x63   : > { %1334 = vmatpush.bf16.msrb.mxu3 %v4086_v58  ;;  %1276 = vmatpush.bf16.msrb.mxu1 %v4082_v1  ;;  %v4692_v32 = vld [vmem:[#allocation5 + $0xe4] sm:$0xf0]  ;;  %v3699_v38 = vld [vmem:[#allocation5 + $0xa8] sm:$0xf0]  ;;  %v3870_v23 = vor.u32 %v4721_v20, %v3867_v21  ;;  %v4123_v24 = vld [vmem:[#allocation5 + $0x3f0] sm:$0xf0] }
  0x64   : > { %v3985_v33 = vld [vmem:[#allocation5 + $0x2c8] sm:$0xf]  ;;  %v4744_v40 = vld [vmem:[#allocation5 + $0x28c] sm:$0xf]  ;;  %v3730_v42 = vor.u32 %v4692_v32, %v3729_v31  ;;  %v3702_v45 = vor.u32 %v4680_v37, %v3699_v38  ;;  %v3865_v25 = vld [vmem:[#allocation5 + $0x1d0] sm:$0xf]  ;;  %v4126_v27 = vor.u32 %v4785_v22, %v4123_v24 }
  0x65   : > { %1306 = vmatpush.bf16.msrb.mxu2 %v3798_v2  ;;  %1248 = vmatpush.bf16.msrb.mxu0 %v3794_v12  ;;  %v4756_v36 = vld [vmem:[#allocation5 + $0x2e4] sm:$0xf0]  ;;  %v3955_v41 = vld [vmem:[#allocation5 + $0x2a8] sm:$0xf0]  ;;  %v3609_v12 = vld [vmem:[%s5487_s11 + $0x20] sm:$0xf] }
  0x66   : > { %v3986_v43 = vor.u32 %v4756_v36, %v3985_v33  ;;  %v3697_v46 = vld [vmem:[#allocation5 + $0x88] sm:$0xf]  ;;  %v3958_v48 = vor.u32 %v4744_v40, %v3955_v41  ;;  %v4672_v53 = vld [vmem:[#allocation5 + $0x4c] sm:$0xf]  ;;  %v4713_v31 = vld [vmem:[#allocation5 + $0x194] sm:$0xf] }
  0x67   : > { %1335 = vmatpush.bf16.msrb.mxu3 %v4054_v6  ;;  %1277 = vmatpush.bf16.msrb.mxu1 %v4050_v14  ;;  %v4684_v47 = vld [vmem:[#allocation5 + $0xa4] sm:$0xf0]  ;;  %v3667_v54 = vld [vmem:[#allocation5 + $0x68] sm:$0xf0]  ;;  %v4659_v14 = vld [vmem:[%s5487_s11 + $0x24] sm:$0xf] }
  0x68   : > { %v3953_v50 = vld [vmem:[#allocation5 + $0x288] sm:$0xf]  ;;  %v3698_v52 = vor.u32 %v4684_v47, %v3697_v46  ;;  %v4736_v55 = vld [vmem:[#allocation5 + $0x24c] sm:$0xf]  ;;  %v3670_v57 = vor.u32 %v4672_v53, %v3667_v54  ;;  %v3835_v33 = vld [vmem:[#allocation5 + $0x1b0] sm:$0xf0] }
  0x69   : > { %1307 = vmatpush.bf16.msrb.mxu2 %v3766_v15  ;;  %1249 = vmatpush.bf16.msrb.mxu0 %v3762_v28  ;;  %v4748_v51 = vld [vmem:[#allocation5 + $0x2a4] sm:$0xf0]  ;;  %v3923_v58 = vld [vmem:[#allocation5 + $0x268] sm:$0xf0]  ;;  %v3866_v28 = vor.u32 %v4725_v26, %v3865_v25  ;;  %v4091_v36 = vld [vmem:[#allocation5 + $0x3b0] sm:$0xf0]  ;;  %v3838_v37 = vor.u32 %v4713_v31, %v3835_v33 }
  0x6a   : > { %v3954_v56 = vor.u32 %v4748_v51, %v3953_v50  ;;  %v3665_v59 = vld [vmem:[#allocation5 + $0x48] sm:$0xf]  ;;  %v3926_v61 = vor.u32 %v4736_v55, %v3923_v58  ;;  %v4664_v0 = vld [vmem:[#allocation5 + $0xc] sm:$0xf]  ;;  %v3833_v40 = vld [vmem:[#allocation5 + $0x190] sm:$0xf] }
  0x6b   : > { %1336 = vmatpush.bf16.msrb.mxu3 %v4022_v19  ;;  %1278 = vmatpush.bf16.msrb.mxu1 %v4018_v29  ;;  %v4676_v60 = vld [vmem:[#allocation5 + $0x64] sm:$0xf0]  ;;  %v3635_v1 = vld [vmem:[#allocation5 + $0x28] sm:$0xf0]  ;;  %v4121_v29 = vld [vmem:[#allocation5 + $0x3d0] sm:$0xf] }
  0x6c   : > { %1143 = vmatmul.bf16.gmra.mxu0 %v5517_v34  ;;  %1201 = vmatmul.bf16.gmra.mxu2 %v5517_v34  ;;  %v3921_v62 = vld [vmem:[#allocation5 + $0x248] sm:$0xf]  ;;  %v4728_v2 = vld [vmem:[#allocation5 + $0x20c] sm:$0xf]  ;;  %v3666_v4 = vor.u32 %v4676_v60, %v3665_v59  ;;  %v3638_v6 = vor.u32 %v4664_v0, %v3635_v1  ;;  %v4717_v41 = vld [vmem:[#allocation5 + $0x1ac] sm:$0xf0] }
  0x6d   : > { %1308 = vmatpush.bf16.msrb.mxu2 %v3734_v30  ;;  %1250 = vmatpush.bf16.msrb.mxu0 %v3730_v42  ;;  %v4740_v63 = vld [vmem:[#allocation5 + $0x264] sm:$0xf0]  ;;  %v3891_v3 = vld [vmem:[#allocation5 + $0x228] sm:$0xf0]  ;;  %v4789_v30 = vld [vmem:[#allocation5 + $0x3ec] sm:$0xf0] }
  0x6e   : > { %1172 = vmatmul.bf16.gmra.mxu1 %v5519_v39  ;;  %1230 = vmatmul.bf16.gmra.mxu3 %v5519_v39  ;;  %v3922_v5 = vor.u32 %v4740_v63, %v3921_v62  ;;  %v3633_v7 = vld [vmem:[#allocation5 + $0x8] sm:$0xf]  ;;  %v3894_v9 = vor.u32 %v4728_v2, %v3891_v3  ;;  %v3611_v15 = vld [vmem:[%s5487_s11 + $0x28] sm:$0xf0]  ;;  %v4122_v32 = vor.u32 %v4789_v30, %v4121_v29  ;;  %v4089_v42 = vld [vmem:[#allocation5 + $0x390] sm:$0xf] }
  0x6f   : > { %1337 = vmatpush.bf16.msrb.mxu3 %v3990_v35  ;;  %1279 = vmatpush.bf16.msrb.mxu1 %v3986_v43  ;;  %v4668_v8 = vld [vmem:[#allocation5 + $0x24] sm:$0xf0]  ;;  %v5531_v19 = vor.u32 %v4659_v14, %v3611_v15  ;;  %v4777_v35 = vld [vmem:[#allocation5 + $0x394] sm:$0xf]  ;;  %v3834_v43 = vor.u32 %v4717_v41, %v3833_v40  ;;  %v3617_v47 = vld [vmem:[%s5487_s11 + $0x30] sm:$0xf] }
  0x70   : > { %v3889_v10 = vld [vmem:[#allocation5 + $0x208] sm:$0xf]  ;;  %v3634_v16 = vor.u32 %v4668_v8, %v3633_v7  ;;  %v4094_v38 = vor.u32 %v4777_v35, %v4091_v36  ;;  %v4661_v50 = vld [vmem:[%s5487_s11 + $0x34] sm:$0xf]  ;;  %v3619_v51 = vld [vmem:[%s5487_s11 + $0x38] sm:$0xf0] }
  0x71   : > { %1309 = vmatpush.bf16.msrb.mxu2 %v3702_v45  ;;  %1251 = vmatpush.bf16.msrb.mxu0 %v3698_v52  ;;  %v4732_v11 = vld [vmem:[#allocation5 + $0x224] sm:$0xf0]  ;;  %v4781_v45 = vld [vmem:[#allocation5 + $0x3ac] sm:$0xf0]  ;;  %v5543_v53 = vor.u32 %v4661_v50, %v3619_v51  ;;  %v4705_v54 = vld [vmem:[#allocation5 + $0x154] sm:$0xf] }
  0x72   : > { %v4660_v13 = vld [vmem:[%s5487_s11 + $0x24] sm:$0xf0]  ;;  %v3890_v17 = vor.u32 %v4732_v11, %v3889_v10  ;;  %v4090_v46 = vor.u32 %v4781_v45, %v4089_v42  ;;  %v3803_v55 = vld [vmem:[#allocation5 + $0x170] sm:$0xf0]  ;;  %v3801_v59 = vld [vmem:[#allocation5 + $0x150] sm:$0xf] }
  0x73   : > { %1338 = vmatpush.bf16.msrb.mxu3 %v3958_v48  ;;  %1280 = vmatpush.bf16.msrb.mxu1 %v3954_v56  ;;  %v5529_v18 = vor.u32 %v4660_v13, %v3609_v12  ;;  %v4662_v48 = vld [vmem:[%s5487_s11 + $0x34] sm:$0xf0]  ;;  %v4769_v56 = vld [vmem:[#allocation5 + $0x354] sm:$0xf]  ;;  %v4709_v60 = vld [vmem:[#allocation5 + $0x16c] sm:$0xf0] }
  0x74   : > { %v5541_v52 = vor.u32 %v4662_v48, %v3617_v47  ;;  %v4059_v58 = vld [vmem:[#allocation5 + $0x370] sm:$0xf0]  ;;  %v3802_v62 = vor.u32 %v4709_v60, %v3801_v59  ;;  %v4057_v63 = vld [vmem:[#allocation5 + $0x350] sm:$0xf]  ;;  %s5273_s11 = scalar_lea.hbm %s6601_s5, 256 }
  0x75   : > { %1310 = vmatpush.bf16.msrb.mxu2 %v3670_v57  ;;  %1252 = vmatpush.bf16.msrb.mxu0 %v3666_v4  ;;  %v3806_v57 = vor.u32 %v4705_v54, %v3803_v55  ;;  %v4773_v0 = vld [vmem:[#allocation5 + $0x36c] sm:$0xf0]  ;;  %v4697_v1 = vld [vmem:[#allocation5 + $0x114] sm:$0xf]  ;;  %p5275_p9 = scmp.lt.s32.totalorder %s5273_s11, %s5269_s7 }
  0x76   : > { %v4058_v2 = vor.u32 %v4773_v0, %v4057_v63  ;;  %v3771_v3 = vld [vmem:[#allocation5 + $0x130] sm:$0xf0]  ;;  %v3769_v8 = vld [vmem:[#allocation5 + $0x110] sm:$0xf] }
  0x77   : > { %1339 = vmatpush.bf16.msrb.mxu3 %v3926_v61  ;;  %1281 = vmatpush.bf16.msrb.mxu1 %v3922_v5  ;;  %v4062_v61 = vor.u32 %v4769_v56, %v4059_v58  ;;  %v4761_v4 = vld [vmem:[#allocation5 + $0x314] sm:$0xf]  ;;  %v4025_v10 = vld [vmem:[#allocation5 + $0x310] sm:$0xf]  ;;  %p5276_p2 = por %p5275_p9, %p5274_p11 }
  0x78   : > { %v4027_v5 = vld [vmem:[#allocation5 + $0x330] sm:$0xf0]  ;;  %v4765_v12 = vld [vmem:[#allocation5 + $0x32c] sm:$0xf0] }
  0x79   : > { %1311 = vmatpush.bf16.msrb.mxu2 %v3638_v6  ;;  %1253 = vmatpush.bf16.msrb.mxu0 %v3634_v16  ;;  %v3774_v6 = vor.u32 %v4697_v1, %v3771_v3  ;;  %v4030_v7 = vor.u32 %v4761_v4, %v4027_v5  ;;  %v4026_v13 = vor.u32 %v4765_v12, %v4025_v10  ;;  %v4689_v14 = vld [vmem:[#allocation5 + $0xd4] sm:$0xf]  ;;  %v3737_v21 = vld [vmem:[#allocation5 + $0xd0] sm:$0xf]  ;;  %v4131_v10 = vld [vmem:[#allocation5 + $0x3f8] sm:$0xf0]  ;;  %p5277_p10 = pnand %p5276_p2, %p5272_p8 }
  0x7a   : > { %v3739_v15 = vld [vmem:[#allocation5 + $0xf0] sm:$0xf0]  ;;  %v4693_v22 = vld [vmem:[#allocation5 + $0xec] sm:$0xf0]  ;;  %v5565_v12 = vld [vmem:[#allocation7] sm:$0xff] }
  0x7b   : > { %1340 = vmatpush.bf16.msrb.mxu3 %v3894_v9  ;;  %1282 = vmatpush.bf16.msrb.mxu1 %v3890_v17  ;;  %v4701_v9 = vld [vmem:[#allocation5 + $0x12c] sm:$0xf0]  ;;  %v4753_v16 = vld [vmem:[#allocation5 + $0x2d4] sm:$0xf]  ;;  %v3742_v17 = vor.u32 %v4689_v14, %v3739_v15  ;;  %v3738_v24 = vor.u32 %v4693_v22, %v3737_v21  ;;  %v3873_v14 = vld [vmem:[#allocation5 + $0x1d8] sm:$0xf] }
  0x7c   : > { %1148 = vmatmul.bf16.gmra.mxu0 %v5529_v18  ;;  %1206 = vmatmul.bf16.gmra.mxu2 %v5529_v18  ;;  %v3770_v11 = vor.u32 %v4701_v9, %v3769_v8  ;;  %v3995_v20 = vld [vmem:[#allocation5 + $0x2f0] sm:$0xf0]  ;;  %v3993_v25 = vld [vmem:[#allocation5 + $0x2d0] sm:$0xf]  ;;  %v4786_v8 = vld [vmem:[#allocation5 + $0x3dc] sm:$0xf] }
  0x7d   : > { %1420 = vmatpush.bf16.msra.mxu2 %v3870_v23  ;;  %1362 = vmatpush.bf16.msra.mxu0 %v3866_v28  ;;  %v3998_v23 = vor.u32 %v4753_v16, %v3995_v20  ;;  %v4757_v26 = vld [vmem:[#allocation5 + $0x2ec] sm:$0xf0]  ;;  %v3707_v29 = vld [vmem:[#allocation5 + $0xb0] sm:$0xf0]  ;;  %v4726_v15 = vld [vmem:[#allocation5 + $0x1f4] sm:$0xf0] }
  0x7e   : > { %1177 = vmatmul.bf16.gmra.mxu1 %v5531_v19  ;;  %1235 = vmatmul.bf16.gmra.mxu3 %v5531_v19  ;;  %v3994_v28 = vor.u32 %v4757_v26, %v3993_v25  ;;  %v4745_v30 = vld [vmem:[#allocation5 + $0x294] sm:$0xf]  ;;  %v3705_v35 = vld [vmem:[#allocation5 + $0x90] sm:$0xf]  ;;  %v3874_v16 = vor.u32 %v4726_v15, %v3873_v14  ;;  %v4790_v20 = vld [vmem:[#allocation5 + $0x3f4] sm:$0xf0] }
  0x7f   : > { %1449 = vmatpush.bf16.msra.mxu3 %v4126_v27  ;;  %1391 = vmatpush.bf16.msra.mxu1 %v4122_v32  ;;  %v4681_v27 = vld [vmem:[#allocation5 + $0x94] sm:$0xf]  ;;  %v4685_v36 = vld [vmem:[#allocation5 + $0xac] sm:$0xf0]  ;;  %v4714_v21 = vld [vmem:[#allocation5 + $0x19c] sm:$0xf] }
  0x80   : > { %v3963_v31 = vld [vmem:[#allocation5 + $0x2b0] sm:$0xf0]  ;;  %v3710_v32 = vor.u32 %v4681_v27, %v3707_v29  ;;  %v4749_v40 = vld [vmem:[#allocation5 + $0x2ac] sm:$0xf0]  ;;  %v4099_v25 = vld [vmem:[#allocation5 + $0x3b8] sm:$0xf0] }
  0x81   : > { %1421 = vmatpush.bf16.msra.mxu2 %v3838_v37  ;;  %1363 = vmatpush.bf16.msra.mxu0 %v3834_v43  ;;  %v3966_v33 = vor.u32 %v4745_v30, %v3963_v31  ;;  %v3961_v37 = vld [vmem:[#allocation5 + $0x290] sm:$0xf]  ;;  %v4673_v42 = vld [vmem:[#allocation5 + $0x54] sm:$0xf]  ;;  %v3777_v15 = vld [vmem:[#allocation5 + $0x118] sm:$0xf] }
  0x82   : > { %v3962_v41 = vor.u32 %v4749_v40, %v3961_v37  ;;  %v3675_v43 = vld [vmem:[#allocation5 + $0x70] sm:$0xf0]  ;;  %v3673_v48 = vld [vmem:[#allocation5 + $0x50] sm:$0xf]  ;;  %v4718_v37 = vld [vmem:[#allocation5 + $0x1b4] sm:$0xf0] }
  0x83   : > { %1450 = vmatpush.bf16.msra.mxu3 %v4094_v38  ;;  %1392 = vmatpush.bf16.msra.mxu1 %v4090_v46  ;;  %v3706_v38 = vor.u32 %v4685_v36, %v3705_v35  ;;  %v4737_v45 = vld [vmem:[#allocation5 + $0x254] sm:$0xf]  ;;  %v3678_v46 = vor.u32 %v4673_v42, %v3675_v43  ;;  %v4677_v50 = vld [vmem:[#allocation5 + $0x6c] sm:$0xf0]  ;;  %v3841_v36 = vld [vmem:[#allocation5 + $0x198] sm:$0xf] }
  0x84   : > { %v3931_v47 = vld [vmem:[#allocation5 + $0x270] sm:$0xf0]  ;;  %v3674_v54 = vor.u32 %v4677_v50, %v3673_v48  ;;  %v3929_v55 = vld [vmem:[#allocation5 + $0x250] sm:$0xf]  ;;  %v3842_v42 = vor.u32 %v4718_v37, %v3841_v36  ;;  %v4782_v43 = vld [vmem:[#allocation5 + $0x3b4] sm:$0xf0] }
  0x85   : > { %1422 = vmatpush.bf16.msra.mxu2 %v3806_v57  ;;  %1364 = vmatpush.bf16.msra.mxu0 %v3802_v62  ;;  %v3934_v51 = vor.u32 %v4737_v45, %v3931_v47  ;;  %v4741_v56 = vld [vmem:[#allocation5 + $0x26c] sm:$0xf0]  ;;  %v4665_v57 = vld [vmem:[#allocation5 + $0x14] sm:$0xf]  ;;  %v4706_v45 = vld [vmem:[#allocation5 + $0x15c] sm:$0xf] }
  0x86   : > { %v3930_v58 = vor.u32 %v4741_v56, %v3929_v55  ;;  %v3643_v59 = vld [vmem:[#allocation5 + $0x30] sm:$0xf0]  ;;  %v3641_v0 = vld [vmem:[#allocation5 + $0x10] sm:$0xf]  ;;  %v4770_v55 = vld [vmem:[#allocation5 + $0x35c] sm:$0xf] }
  0x87   : > { %1451 = vmatpush.bf16.msra.mxu3 %v4062_v61  ;;  %1393 = vmatpush.bf16.msra.mxu1 %v4058_v2  ;;  %v4729_v60 = vld [vmem:[#allocation5 + $0x214] sm:$0xf]  ;;  %v3646_v62 = vor.u32 %v4665_v57, %v3643_v59  ;;  %v4669_v1 = vld [vmem:[#allocation5 + $0x2c] sm:$0xf0]  ;;  %v4067_v56 = vld [vmem:[#allocation5 + $0x378] sm:$0xf0] }
  0x88   : > { %v3899_v61 = vld [vmem:[#allocation5 + $0x230] sm:$0xf0]  ;;  %v3642_v2 = vor.u32 %v4669_v1, %v3641_v0  ;;  %v3897_v3 = vld [vmem:[#allocation5 + $0x210] sm:$0xf]  ;;  %v3809_v57 = vld [vmem:[#allocation5 + $0x158] sm:$0xf] }
  0x89   : > { %1423 = vmatpush.bf16.msra.mxu2 %v3774_v6  ;;  %1365 = vmatpush.bf16.msra.mxu0 %v3770_v11  ;;  %v3902_v63 = vor.u32 %v4729_v60, %v3899_v61  ;;  %v4733_v4 = vld [vmem:[#allocation5 + $0x22c] sm:$0xf0]  ;;  %v4722_v6 = vld [vmem:[#allocation5 + $0x1dc] sm:$0xf]  ;;  %v4134_v11 = vor.u32 %v4786_v8, %v4131_v10  ;;  %v4070_v61 = vor.u32 %v4770_v55, %v4067_v56  ;;  %v4758_v56 = vld [vmem:[#allocation5 + $0x2f4] sm:$0xf0] }
  0x8a   : > { %v3898_v5 = vor.u32 %v4733_v4, %v3897_v3  ;;  %v4698_v3 = vld [vmem:[#allocation5 + $0x11c] sm:$0xf] }
  0x8b   : > { %1452 = vmatpush.bf16.msra.mxu3 %v4030_v7  ;;  %1394 = vmatpush.bf16.msra.mxu1 %v4026_v13  ;;  %v3875_v7 = vld [vmem:[#allocation5 + $0x1f8] sm:$0xf0]  ;;  %v5568_v13 = vperm.slane %v5565_v12, 0 }
  0x8c   : > { %1153 = vmatmul.bf16.gmra.mxu0 %v5541_v52  ;;  %1211 = vmatmul.bf16.gmra.mxu2 %v5541_v52  ;;  %v3878_v9 = vor.u32 %v4722_v6, %v3875_v7  ;;  %v3779_v4 = vld [vmem:[#allocation5 + $0x138] sm:$0xf0] }
  0x8d   : > { %1424 = vmatpush.bf16.msra.mxu2 %v3742_v17  ;;  %1366 = vmatpush.bf16.msra.mxu0 %v3738_v24  ;;  %v4129_v17 = vld [vmem:[#allocation5 + $0x3d8] sm:$0xf]  ;;  %v4778_v24 = vld [vmem:[#allocation5 + $0x39c] sm:$0xf]  ;;  %v3782_v8 = vor.u32 %v4698_v3, %v3779_v4 }
  0x8e   : > { %1182 = vmatmul.bf16.gmra.mxu1 %v5543_v53  ;;  %1240 = vmatmul.bf16.gmra.mxu3 %v5543_v53  ;;  %v4130_v22 = vor.u32 %v4790_v20, %v4129_v17  ;;  %v4035_v10 = vld [vmem:[#allocation5 + $0x338] sm:$0xf0] }
  0x8f   : > { %1453 = vmatpush.bf16.msra.mxu3 %v3998_v23  ;;  %1395 = vmatpush.bf16.msra.mxu1 %v3994_v28  ;;  %v3843_v23 = vld [vmem:[#allocation5 + $0x1b8] sm:$0xf0]  ;;  %v4102_v28 = vor.u32 %v4778_v24, %v4099_v25  ;;  %v4766_v24 = vld [vmem:[#allocation5 + $0x334] sm:$0xf0] }
  0x90   : > { %v3846_v27 = vor.u32 %v4714_v21, %v3843_v23  ;;  %v4033_v23 = vld [vmem:[#allocation5 + $0x318] sm:$0xf] }
  0x91   : > { %1425 = vmatpush.bf16.msra.mxu2 %v3710_v32  ;;  %1367 = vmatpush.bf16.msra.mxu0 %v3706_v38  ;;  %v5577_v32 = vperm.slane %v5565_v12, 1  ;;  %v4097_v38 = vld [vmem:[#allocation5 + $0x398] sm:$0xf] }
  0x93   : > { %1454 = vmatpush.bf16.msra.mxu3 %v3966_v33  ;;  %1396 = vmatpush.bf16.msra.mxu1 %v3962_v41 }
  0x95   : > { %1426 = vmatpush.bf16.msra.mxu2 %v3678_v46  ;;  %1368 = vmatpush.bf16.msra.mxu0 %v3674_v54  ;;  %v3811_v46 = vld [vmem:[#allocation5 + $0x178] sm:$0xf0] }
  0x96   : > { %v3814_v54 = vor.u32 %v4706_v45, %v3811_v46 }
  0x97   : > { %1455 = vmatpush.bf16.msra.mxu3 %v3934_v51  ;;  %1397 = vmatpush.bf16.msra.mxu1 %v3930_v58  ;;  %v4098_v51 = vor.u32 %v4782_v43, %v4097_v38 }
  0x99   : > { %1427 = vmatpush.bf16.msra.mxu2 %v3646_v62  ;;  %1369 = vmatpush.bf16.msra.mxu0 %v3642_v2  ;;  %v4710_v62 = vld [vmem:[#allocation5 + $0x174] sm:$0xf0] }
  0x9a   : > { %v3810_v1 = vor.u32 %v4710_v62, %v3809_v57  ;;  %v4774_v2 = vld [vmem:[#allocation5 + $0x374] sm:$0xf0]  ;;  %v4682_v57 = vld [vmem:[#allocation5 + $0x9c] sm:$0xf] }
  0x9b   : > { %1456 = vmatpush.bf16.msra.mxu3 %v3902_v63  ;;  %1398 = vmatpush.bf16.msra.mxu1 %v3898_v5  ;;  %v4065_v63 = vld [vmem:[#allocation5 + $0x358] sm:$0xf]  ;;  %v3715_v62 = vld [vmem:[#allocation5 + $0xb8] sm:$0xf0] }
  0x9c   : > { %1254 = vmatmul.bf16.vlgmr.msrb.gmra.mxu0 %v5505_v44  ;;  %1312 = vmatmul.bf16.vlgmr.msrb.gmra.mxu2 %v5505_v44  ;;  %v4066_v7 = vor.u32 %v4774_v2, %v4065_v63  ;;  %v4746_v63 = vld [vmem:[#allocation5 + $0x29c] sm:$0xf] }
  0x9d   : > { %1536 = vmatpush.bf16.msrb.mxu2 %v3878_v9  ;;  %1478 = vmatpush.bf16.msrb.mxu0 %v3874_v16  ;;  %v4762_v9 = vld [vmem:[#allocation5 + $0x31c] sm:$0xf] }
  0x9e   : > { %1283 = vmatmul.bf16.vlgmr.msrb.gmra.mxu1 %v5507_v49  ;;  %1341 = vmatmul.bf16.vlgmr.msrb.gmra.mxu3 %v5507_v49  ;;  %v4038_v14 = vor.u32 %v4762_v9, %v4035_v10 }
  0x9f   : > { %1565 = vmatpush.bf16.msrb.mxu3 %v4134_v11  ;;  %1507 = vmatpush.bf16.msrb.mxu1 %v4130_v22  ;;  %v4702_v22 = vld [vmem:[#allocation5 + $0x134] sm:$0xf0] }
  0xa1   : > { %1537 = vmatpush.bf16.msrb.mxu2 %v3846_v27  ;;  %1479 = vmatpush.bf16.msrb.mxu0 %v3842_v42  ;;  %v3778_v27 = vor.u32 %v4702_v22, %v3777_v15  ;;  %v3745_v42 = vld [vmem:[#allocation5 + $0xd8] sm:$0xf] }
  0xa2   : > { %v4686_v15 = vld [vmem:[#allocation5 + $0xb4] sm:$0xf0] }
  0xa3   : > { %1566 = vmatpush.bf16.msrb.mxu3 %v4102_v28  ;;  %1508 = vmatpush.bf16.msrb.mxu1 %v4098_v51  ;;  %v4034_v28 = vor.u32 %v4766_v24, %v4033_v23 }
  0xa5   : > { %1538 = vmatpush.bf16.msrb.mxu2 %v3814_v54  ;;  %1480 = vmatpush.bf16.msrb.mxu0 %v3810_v1  ;;  %v3971_v1 = vld [vmem:[#allocation5 + $0x2b8] sm:$0xf0] }
  0xa6   : > { %v3974_v9 = vor.u32 %v4746_v63, %v3971_v1 }
  0xa7   : > { %1567 = vmatpush.bf16.msrb.mxu3 %v4070_v61  ;;  %1509 = vmatpush.bf16.msrb.mxu1 %v4066_v7 }
  0xa9   : > { %1539 = vmatpush.bf16.msrb.mxu2 %v3782_v8  ;;  %1481 = vmatpush.bf16.msrb.mxu0 %v3778_v27  ;;  %v3718_v8 = vor.u32 %v4682_v57, %v3715_v62 }
  0xab   : > { %1568 = vmatpush.bf16.msrb.mxu3 %v4038_v14  ;;  %1510 = vmatpush.bf16.msrb.mxu1 %v4034_v28  ;;  %v3713_v14 = vld [vmem:[#allocation5 + $0x98] sm:$0xf] }
  0xac   : > { %1259 = vmatmul.bf16.gmra.mxu0 %v5517_v34  ;;  %1317 = vmatmul.bf16.gmra.mxu2 %v5517_v34  ;;  %v3714_v24 = vor.u32 %v4686_v15, %v3713_v14 }
  0xae   : > { %1288 = vmatmul.bf16.gmra.mxu1 %v5519_v39  ;;  %1346 = vmatmul.bf16.gmra.mxu3 %v5519_v39 }
  0xbc   : > { %1264 = vmatmul.bf16.gmra.mxu0 %v5529_v18  ;;  %1322 = vmatmul.bf16.gmra.mxu2 %v5529_v18 }
  0xbe   : > { %1293 = vmatmul.bf16.gmra.mxu1 %v5531_v19  ;;  %1351 = vmatmul.bf16.gmra.mxu3 %v5531_v19 }
  0xcc   : > { %1269 = vmatmul.bf16.gmra.mxu0 %v5541_v52  ;;  %1327 = vmatmul.bf16.gmra.mxu2 %v5541_v52 }
  0xce   : > { %1298 = vmatmul.bf16.gmra.mxu1 %v5543_v53  ;;  %1356 = vmatmul.bf16.gmra.mxu3 %v5543_v53 }
  0xd9   : > { %v1139_v26 = vpop.f32.mrf.mxu0 }
  0xda   : > { %v1140_v29 = vadd.f32 %v1139_v26, %v5568_v13 }
  0xdb   : > { %v1168_v30 = vpop.f32.mrf.mxu1 }
  0xdc   : > { %v5571_v31 = vadd.f32 %v1168_v30, %v1140_v29  ;;  %1370 = vmatmul.bf16.vlgmr.msra.gmra.mxu0 %v5505_v44  ;;  %1428 = vmatmul.bf16.vlgmr.msra.gmra.mxu2 %v5505_v44  ;;  %v4690_v29 = vld [vmem:[#allocation5 + $0xdc] sm:$0xf] }
  0xdd   : > { %v3747_v30 = vld [vmem:[#allocation5 + $0xf8] sm:$0xf0] }
  0xde   : > { %1399 = vmatmul.bf16.vlgmr.msra.gmra.mxu1 %v5507_v49  ;;  %v1594_v33 = vmul.f32 0.7978846, %v5571_v31  ;;  %v1658_v35 = vmul.f32 0.044715, %v5571_v31  ;;  %1457 = vmatmul.bf16.vlgmr.msra.gmra.mxu3 %v5507_v49 }
  0xdf   : > { %v1197_v41 = vpop.f32.mrf.mxu2 }
  0xe0   : > { %v1722_v40 = vmul.f32 %v1658_v35, %v5571_v31  ;;  %v1198_v47 = vadd.f32 %v1197_v41, %v5577_v32  ;;  %v4003_v41 = vld [vmem:[#allocation5 + $0x2f8] sm:$0xf0] }
  0xe1   : > { %v1226_v48 = vpop.f32.mrf.mxu3  ;;  %v1141_v50 = vpop.f32.mrf.mxu0 }
  0xe2   : > { %v1786_v58 = vadd.f32 1.0, %v1722_v40  ;;  %v1142_v59 = vadd.f32 %v1141_v50, %v5568_v13  ;;  %v5585_v0 = vadd.f32 %v1226_v48, %v1198_v47  ;;  %v3750_v40 = vor.u32 %v4690_v29, %v3747_v30  ;;  %v4694_v48 = vld [vmem:[#allocation5 + $0xf4] sm:$0xf0]  ;;  %v4674_v30 = vld [vmem:[#allocation5 + $0x5c] sm:$0xf] }
  0xe3   : > { %v1170_v60 = vpop.f32.mrf.mxu1  ;;  %v4001_v50 = vld [vmem:[#allocation5 + $0x2d8] sm:$0xf]  ;;  %v3746_v55 = vor.u32 %v4694_v48, %v3745_v42  ;;  %v3939_v42 = vld [vmem:[#allocation5 + $0x278] sm:$0xf0] }
  0xe4   : > { %v1850_v5 = vmul.f32 %v1786_v58, %v1594_v33  ;;  %v5587_v6 = vadd.f32 %v1170_v60, %v1142_v59  ;;  %v1659_v11 = vmul.f32 0.044715, %v5585_v0  ;;  %v1595_v16 = vmul.f32 0.7978846, %v5585_v0  ;;  %v4754_v33 = vld [vmem:[#allocation5 + $0x2dc] sm:$0xf]  ;;  %1540 = vmatpush.bf16.msrb.mxu2 %v3750_v40 }
  0xe5   : > { %v4006_v47 = vor.u32 %v4754_v33, %v4003_v41  ;;  %v4002_v61 = vor.u32 %v4758_v56, %v4001_v50  ;;  %1482 = vmatpush.bf16.msrb.mxu0 %v3746_v55  ;;  %v3683_v33 = vld [vmem:[#allocation5 + $0x78] sm:$0xf0]  ;;  %v3681_v50 = vld [vmem:[#allocation5 + $0x58] sm:$0xf] }
  0xe6   : > { %5004 = vtanh.f32 %v1850_v5  ;;  %v1602_v17 = vmul.f32 0.7978846, %v5587_v6  ;;  %v1666_v20 = vmul.f32 0.044715, %v5587_v6  ;;  %v1723_v21 = vmul.f32 %v1659_v11, %v5585_v0  ;;  %v4738_v41 = vld [vmem:[#allocation5 + $0x25c] sm:$0xf] }
  0xe7   : > { %v1199_v26 = vpop.f32.mrf.mxu2  ;;  %1569 = vmatpush.bf16.msrb.mxu3 %v4006_v47  ;;  %1511 = vmatpush.bf16.msrb.mxu1 %v4002_v61  ;;  %v3686_v40 = vor.u32 %v4674_v30, %v3683_v33  ;;  %v3942_v48 = vor.u32 %v4738_v41, %v3939_v42 }
  0xe8   : > { %v1730_v25 = vmul.f32 %v1666_v20, %v5587_v6  ;;  %v1787_v35 = vadd.f32 1.0, %v1723_v21  ;;  %v1200_v36 = vadd.f32 %v1199_v26, %v5577_v32  ;;  %1541 = vmatpush.bf16.msrb.mxu2 %v3718_v8  ;;  %v3651_v8 = vld [vmem:[#allocation5 + $0x38] sm:$0xf0] }
  0xe9   : > { %v1228_v37 = vpop.f32.mrf.mxu3  ;;  %v1144_v38 = vpop.f32.mrf.mxu0  ;;  %1483 = vmatpush.bf16.msrb.mxu0 %v3714_v24 }
  0xea   : > { %v1794_v43 = vadd.f32 1.0, %v1730_v25  ;;  %v1145_v45 = vadd.f32 %v1144_v38, %v5568_v13  ;;  %v1851_v51 = vmul.f32 %v1787_v35, %v1595_v16  ;;  %v5597_v54 = vadd.f32 %v1228_v37, %v1200_v36  ;;  %v3969_v16 = vld [vmem:[#allocation5 + $0x298] sm:$0xf] }
  0xeb   : > { %v1173_v46 = vpop.f32.mrf.mxu1  ;;  %1570 = vmatpush.bf16.msrb.mxu3 %v3974_v9  ;;  %v4750_v25 = vld [vmem:[#allocation5 + $0x2b4] sm:$0xf0]  ;;  %v1914_v36 = vmul.f32 0.5, %v5571_v31  ;;  %v4730_v9 = vld [vmem:[#allocation5 + $0x21c] sm:$0xf] }
  0xec   : > { %v5005_v58 = vpop.eup %5004  ;;  %v1858_v59 = vmul.f32 %v1794_v43, %v1602_v17  ;;  %v5599_v60 = vadd.f32 %v1173_v46, %v1145_v45  ;;  %1375 = vmatmul.bf16.gmra.mxu0 %v5517_v34  ;;  %5006 = vtanh.f32 %v1851_v51  ;;  %v1667_v2 = vmul.f32 0.044715, %v5597_v54  ;;  %1433 = vmatmul.bf16.gmra.mxu2 %v5517_v34  ;;  %v4678_v51 = vld [vmem:[#allocation5 + $0x74] sm:$0xf0] }
  0xed   : > { %v2042_v3 = vadd.f32 1.0, %v5005_v58  ;;  %v1603_v5 = vmul.f32 0.7978846, %v5597_v54  ;;  %v3970_v29 = vor.u32 %v4750_v25, %v3969_v16  ;;  %v1915_v45 = vmul.f32 0.5, %v5585_v0  ;;  %1542 = vmatpush.bf16.msrb.mxu2 %v3686_v40  ;;  %v3937_v0 = vld [vmem:[#allocation5 + $0x258] sm:$0xf] }
  0xee   : > { %1404 = vmatmul.bf16.gmra.mxu1 %v5519_v39  ;;  %5008 = vtanh.f32 %v1858_v59  ;;  %v1674_v4 = vmul.f32 0.044715, %v5599_v60  ;;  %1462 = vmatmul.bf16.gmra.mxu3 %v5519_v39  ;;  %v1731_v7 = vmul.f32 %v1667_v2, %v5597_v54  ;;  %v1610_v20 = vmul.f32 0.7978846, %v5599_v60  ;;  %v4742_v2 = vld [vmem:[#allocation5 + $0x274] sm:$0xf0] }
  0xef   : > { %v1202_v11 = vpop.f32.mrf.mxu2  ;;  %v1922_v46 = vmul.f32 0.5, %v5587_v6  ;;  %1512 = vmatpush.bf16.msrb.mxu1 %v3970_v29  ;;  %v2106_v55 = vmul.f32 %v2042_v3, %v1914_v36  ;;  %1571 = vmatpush.bf16.msrb.mxu3 %v3942_v48  ;;  %v3682_v59 = vor.u32 %v4678_v51, %v3681_v50  ;;  %v1923_v29 = vmul.f32 0.5, %v5597_v54 }
  0xf0   : > { %v1738_v10 = vmul.f32 %v1674_v4, %v5599_v60  ;;  %v1795_v17 = vadd.f32 1.0, %v1731_v7  ;;  %v1203_v21 = vadd.f32 %v1202_v11, %v5577_v32  ;;  %v4666_v7 = vld [vmem:[#allocation5 + $0x1c] sm:$0xf] }
  0xf1   : > { %v1231_v22 = vpop.f32.mrf.mxu3  ;;  %v1146_v23 = vpop.f32.mrf.mxu0  ;;  %1484 = vmatpush.bf16.msrb.mxu0 %v3682_v59  ;;  %v3654_v16 = vor.u32 %v4666_v7, %v3651_v8  ;;  %v1930_v7 = vmul.f32 0.5, %v5599_v60 }
  0xf2   : > { %v1802_v26 = vadd.f32 1.0, %v1738_v10  ;;  %v1147_v27 = vadd.f32 %v1146_v23, %v5568_v13  ;;  %v5007_v35 = vpop.eup %5006  ;;  %v1859_v37 = vmul.f32 %v1795_v17, %v1603_v5  ;;  %v5614_v38 = vadd.f32 %v1231_v22, %v1203_v21  ;;  %v3907_v17 = vld [vmem:[#allocation5 + $0x238] sm:$0xf0] }
  0xf3   : > { %v1175_v28 = vpop.f32.mrf.mxu1  ;;  %v2043_v57 = vadd.f32 1.0, %v5007_v35  ;;  %v3938_v5 = vor.u32 %v4742_v2, %v3937_v0  ;;  %v3910_v25 = vor.u32 %v4730_v9, %v3907_v17  ;;  %1543 = vmatpush.bf16.msrb.mxu2 %v3654_v16  ;;  %v4734_v35 = vld [vmem:[#allocation5 + $0x234] sm:$0xf0] }
  0xf4   : > { %v5009_v43 = vpop.eup %5008  ;;  %v5618_v47 = vadd.f32 %v1175_v28, %v1147_v27  ;;  %5010 = vtanh.f32 %v1859_v37  ;;  %v1675_v56 = vmul.f32 0.044715, %v5614_v38  ;;  %v1866_v61 = vmul.f32 %v1802_v26, %v1610_v20  ;;  %v3649_v20 = vld [vmem:[#allocation5 + $0x18] sm:$0xf] }
  0xf5   : > { %v2050_v31 = vadd.f32 1.0, %v5009_v43  ;;  %v1611_v62 = vmul.f32 0.7978846, %v5614_v38  ;;  %1513 = vmatpush.bf16.msrb.mxu1 %v3938_v5  ;;  %v4670_v26 = vld [vmem:[#allocation5 + $0x34] sm:$0xf0]  ;;  %1572 = vmatpush.bf16.msrb.mxu3 %v3910_v25  ;;  %v2107_v54 = vmul.f32 %v2043_v57, %v1915_v45 }
  0xf6   : > { %v1682_v58 = vmul.f32 0.044715, %v5618_v47  ;;  %v1739_v63 = vmul.f32 %v1675_v56, %v5614_v38  ;;  %v1618_v1 = vmul.f32 0.7978846, %v5618_v47  ;;  %v3905_v27 = vld [vmem:[#allocation5 + $0x218] sm:$0xf]  ;;  %5012 = vtanh.f32 %v1866_v61 }
  0xf7   : > { %v2114_v6 = vmul.f32 %v2050_v31, %v1922_v46  ;;  %v1204_v4 = vpop.f32.mrf.mxu2  ;;  %v3650_v33 = vor.u32 %v4670_v26, %v3649_v20  ;;  %v3906_v41 = vor.u32 %v4734_v35, %v3905_v27  ;;  %v1938_v8 = vmul.f32 0.5, %v5618_v47 }
  0xf8   : > { %v1746_v3 = vmul.f32 %v1682_v58, %v5618_v47  ;;  %v1803_v10 = vadd.f32 1.0, %v1739_v63  ;;  %v1205_v11 = vadd.f32 %v1204_v4, %v5577_v32 }
  0xf9   : > { %v1233_v14 = vpop.f32.mrf.mxu3  ;;  %v1149_v15 = vpop.f32.mrf.mxu0  ;;  %v5627_v21 = vpack.c.bf16 %v2114_v6, %v2106_v55  ;;  %1485 = vmatpush.bf16.msrb.mxu0 %v3650_v33  ;;  %1514 = vmatpush.bf16.msrb.mxu1 %v3906_v41 }
  0xfa   : > { %v1810_v22 = vadd.f32 1.0, %v1746_v3  ;;  %v1150_v23 = vadd.f32 %v1149_v15, %v5568_v13  ;;  %v5011_v28 = vpop.eup %5010  ;;  %v5631_v30 = vadd.f32 %v1233_v14, %v1205_v11  ;;  %v1867_v36 = vmul.f32 %v1803_v10, %v1611_v62 }
  0xfb   : > { %v1178_v24 = vpop.f32.mrf.mxu1  ;;  %v2051_v37 = vadd.f32 1.0, %v5011_v28 }
  0xfc   : > { %v5633_v40 = vadd.f32 %v1178_v24, %v1150_v23  ;;  %1380 = vmatmul.bf16.gmra.mxu0 %v5529_v18  ;;  %v1874_v42 = vmul.f32 %v1810_v22, %v1618_v1  ;;  %v1683_v43 = vmul.f32 0.044715, %v5631_v30  ;;  %1438 = vmatmul.bf16.gmra.mxu2 %v5529_v18  ;;  %v5013_v51 = vpop.eup %5012  ;;  %v1619_v58 = vmul.f32 0.7978846, %v5631_v30 }
  0xfd   : > { %v2115_v46 = vmul.f32 %v2051_v37, %v1923_v29  ;;  %v2058_v2 = vadd.f32 1.0, %v5013_v51  ;;  %v1939_v37 = vmul.f32 0.5, %v5631_v30 }
  0xfe   : > { %1409 = vmatmul.bf16.gmra.mxu1 %v5531_v19  ;;  %v1690_v48 = vmul.f32 0.044715, %v5633_v40  ;;  %1467 = vmatmul.bf16.gmra.mxu3 %v5531_v19  ;;  %5014 = vtanh.f32 %v1874_v42  ;;  %v1747_v50 = vmul.f32 %v1683_v43, %v5631_v30  ;;  %v1626_v61 = vmul.f32 0.7978846, %v5633_v40 }
  0xff   : > { %v1207_v31 = vpop.f32.mrf.mxu2  ;;  %v5643_v56 = vpack.c.bf16 %v2115_v46, %v2107_v54  ;;  %5016 = vtanh.f32 %v1867_v36  ;;  %v2122_v15 = vmul.f32 %v2058_v2, %v1930_v7  ;;  %v1931_v36 = vmul.f32 0.5, %v5614_v38 }
 0x100   : > { %v1754_v55 = vmul.f32 %v1690_v48, %v5633_v40  ;;  %v1811_v45 = vadd.f32 1.0, %v1747_v50  ;;  %v1208_v57 = vadd.f32 %v1207_v31, %v5577_v32 }
 0x101   : > { %v1236_v59 = vpop.f32.mrf.mxu3  ;;  %v1151_v0 = vpop.f32.mrf.mxu0 }
 0x102   : > { %v1818_v6 = vadd.f32 1.0, %v1754_v55  ;;  %v1152_v62 = vadd.f32 %v1151_v0, %v5568_v13  ;;  %v5649_v1 = vadd.f32 %v1236_v59, %v1208_v57  ;;  %v1875_v3 = vmul.f32 %v1811_v45, %v1619_v58 }
 0x103   : > { %v1180_v63 = vpop.f32.mrf.mxu1 }
 0x104   : > { %v5015_v4 = vpop.eup %5014  ;;  %v1181_v5 = vadd.f32 %v1180_v63, %v1152_v62  ;;  %5018 = vtanh.f32 %v1875_v3  ;;  %v1882_v14 = vmul.f32 %v1818_v6, %v1626_v61  ;;  %v1691_v17 = vmul.f32 0.044715, %v5649_v1 }
 0x105   : > { %v2066_v9 = vadd.f32 1.0, %v5015_v4  ;;  %v5017_v10 = vpop.eup %5016  ;;  %v1627_v61 = vmul.f32 0.7978846, %v5649_v1 }
 0x106   : > { %v1698_v11 = vmul.f32 0.044715, %v1181_v5  ;;  %v2059_v60 = vadd.f32 1.0, %v5017_v10  ;;  %v1634_v27 = vmul.f32 0.7978846, %v1181_v5  ;;  %5020 = vtanh.f32 %v1882_v14 }
 0x107   : > { %v2130_v16 = vmul.f32 %v2066_v9, %v1938_v8  ;;  %v1209_v22 = vpop.f32.mrf.mxu2  ;;  %v1755_v41 = vmul.f32 %v1691_v17, %v5649_v1  ;;  %v1946_v8 = vmul.f32 0.5, %v5633_v40 }
 0x108   : > { %v1762_v20 = vmul.f32 %v1698_v11, %v1181_v5  ;;  %v1210_v23 = vadd.f32 %v1209_v22, %v5577_v32  ;;  %v2123_v48 = vmul.f32 %v2059_v60, %v1931_v36  ;;  %v1954_v11 = vmul.f32 0.5, %v1181_v5  ;;  %v4806_v36 = vld [vmem:[#allocation8 + $0x74] sm:$0xf0] }
 0x109   : > { %v1238_v24 = vpop.f32.mrf.mxu3  ;;  %v1154_v25 = vpop.f32.mrf.mxu0  ;;  %v5655_v26 = vpack.c.bf16 %v2130_v16, %v2122_v15  ;;  %v1819_v51 = vadd.f32 1.0, %v1755_v41 }
 0x10a   : > { %v1826_v47 = vadd.f32 1.0, %v1762_v20  ;;  %v1155_v28 = vadd.f32 %v1154_v25, %v5568_v13  ;;  %v5019_v33 = vpop.eup %5018  ;;  %v5658_v35 = vadd.f32 %v1238_v24, %v1210_v23 }
 0x10b   : > { %v1183_v29 = vpop.f32.mrf.mxu1  ;;  %v2067_v43 = vadd.f32 1.0, %v5019_v33  ;;  %v1883_v9 = vmul.f32 %v1819_v51, %v1627_v61  ;;  %v4193_v33 = vld [vmem:[#allocation8 + $0x70] sm:$0xf] }
 0x10c   : > { %v5663_v42 = vadd.f32 %v1183_v29, %v1155_v28  ;;  %1385 = vmatmul.bf16.gmra.mxu0 %v5541_v52  ;;  %v1890_v54 = vmul.f32 %v1826_v47, %v1634_v27  ;;  %v1699_v46 = vmul.f32 0.044715, %v5658_v35  ;;  %1443 = vmatmul.bf16.gmra.mxu2 %v5541_v52  ;;  %v5021_v50 = vpop.eup %5020  ;;  %v1635_v63 = vmul.f32 0.7978846, %v5658_v35  ;;  %v4385_v51 = vld [vmem:[#allocation8 + $0x1f0] sm:$0xf] }
 0x10d   : > { %v2131_v38 = vmul.f32 %v2067_v43, %v1939_v37  ;;  %v2074_v3 = vadd.f32 1.0, %v5021_v50  ;;  %v4257_v37 = vld [vmem:[#allocation8 + $0xf0] sm:$0xf]  ;;  %v4822_v43 = vld [vmem:[#allocation8 + $0xf4] sm:$0xf0] }
 0x10e   : > { %1414 = vmatmul.bf16.gmra.mxu1 %v5543_v53  ;;  %1472 = vmatmul.bf16.gmra.mxu3 %v5543_v53  ;;  %5022 = vtanh.f32 %v1890_v54  ;;  %v1763_v30 = vmul.f32 %v1699_v46, %v5658_v35  ;;  %v1706_v45 = vmul.f32 0.044715, %v5663_v42  ;;  %v1642_v20 = vmul.f32 0.7978846, %v5663_v42  ;;  %v4838_v50 = vld [vmem:[#allocation8 + $0x174] sm:$0xf0] }
 0x10f   : > { %v1212_v55 = vpop.f32.mrf.mxu2  ;;  %v5671_v31 = vpack.c.bf16 %v2131_v38, %v2123_v48  ;;  %5024 = vtanh.f32 %v1883_v9  ;;  %v4258_v48 = vor.u32 %v4822_v43, %v4257_v37  ;;  %v4836_v9 = vld [vmem:[#allocation8 + $0x164] sm:$0xf0]  ;;  %v4305_v37 = vld [vmem:[#allocation8 + $0x150] sm:$0xf] }
 0x110   : > { %v1827_v58 = vadd.f32 1.0, %v1763_v30  ;;  %v1213_v57 = vadd.f32 %v1212_v55, %v5577_v32  ;;  %v1770_v10 = vmul.f32 %v1706_v45, %v5663_v42  ;;  %v4321_v30 = vld [vmem:[#allocation8 + $0x170] sm:$0xf]  ;;  %v4854_v45 = vld [vmem:[#allocation8 + $0x1f4] sm:$0xf0] }
 0x111   : > { %v1241_v59 = vpop.f32.mrf.mxu3  ;;  %v1156_v0 = vpop.f32.mrf.mxu0  ;;  %3005 = vmatpush.bf16.msra.mxu1 %v4258_v48  ;;  %v4386_v61 = vor.u32 %v4854_v45, %v4385_v51  ;;  %v4369_v48 = vld [vmem:[#allocation8 + $0x1d0] sm:$0xf]  ;;  %v4800_v45 = vld [vmem:[#allocation8 + $0x44] sm:$0xf0] }
 0x112   : > { %v1157_v6 = vadd.f32 %v1156_v0, %v5568_v13  ;;  %v5678_v2 = vadd.f32 %v1241_v59, %v1213_v57  ;;  %v1891_v15 = vmul.f32 %v1827_v58, %v1635_v63  ;;  %v2138_v13 = vmul.f32 %v2074_v3, %v1946_v8  ;;  %v4185_v57 = vld [vmem:[#allocation8 + $0x60] sm:$0xf]  ;;  %v4804_v59 = vld [vmem:[#allocation8 + $0x64] sm:$0xf0] }
 0x113   : > { %v1185_v62 = vpop.f32.mrf.mxu1  ;;  %v1834_v24 = vadd.f32 1.0, %v1770_v10  ;;  %v4322_v58 = vor.u32 %v4838_v50, %v4321_v30  ;;  %v4313_v8 = vld [vmem:[#allocation8 + $0x160] sm:$0xf]  ;;  %v1955_v10 = vmul.f32 0.5, %v5658_v35  ;;  %3063 = vmatpush.bf16.msra.mxu3 %v4386_v61 }
 0x114   : > { %v5023_v4 = vpop.eup %5022  ;;  %v5680_v7 = vadd.f32 %v1185_v62, %v1157_v6  ;;  %5026 = vtanh.f32 %v1891_v15  ;;  %v4249_v6 = vld [vmem:[#allocation8 + $0xe0] sm:$0xf]  ;;  %v4820_v62 = vld [vmem:[#allocation8 + $0xe4] sm:$0xf0] }
 0x115   : > { %v2082_v14 = vadd.f32 1.0, %v5023_v4  ;;  %v1898_v54 = vmul.f32 %v1834_v24, %v1642_v20  ;;  %v5025_v46 = vpop.eup %5024  ;;  %3034 = vmatpush.bf16.msra.mxu2 %v4322_v58  ;;  %v4250_v4 = vor.u32 %v4820_v62, %v4249_v6  ;;  %v4377_v15 = vld [vmem:[#allocation8 + $0x1e0] sm:$0xf]  ;;  %v4177_v20 = vld [vmem:[#allocation8 + $0x50] sm:$0xf] }
 0x116   : > { %v1714_v16 = vmul.f32 0.044715, %v5680_v7  ;;  %v1650_v5 = vmul.f32 0.7978846, %v5680_v7  ;;  %v2075_v63 = vadd.f32 1.0, %v5025_v46 }
 0x117   : > { %v2146_v17 = vmul.f32 %v2082_v14, %v1954_v11  ;;  %v1214_v23 = vpop.f32.mrf.mxu2  ;;  %v4314_v14 = vor.u32 %v4836_v9, %v4313_v8  ;;  %3006 = vmatpush.bf16.msra.mxu1 %v4250_v4  ;;  %v4169_v30 = vld [vmem:[#allocation8 + $0x40] sm:$0xf]  ;;  %v4816_v4 = vld [vmem:[#allocation8 + $0xc4] sm:$0xf0] }
 0x118   : > { %v1778_v22 = vmul.f32 %v1714_v16, %v5680_v7  ;;  %v1215_v25 = vadd.f32 %v1214_v23, %v5577_v32  ;;  %v4194_v32 = vor.u32 %v4806_v36, %v4193_v33  ;;  %v4852_v16 = vld [vmem:[#allocation8 + $0x1e4] sm:$0xf0]  ;;  %v5714_v33 = vperm.slane %v5565_v12, 2  ;;  %v4297_v8 = vld [vmem:[#allocation8 + $0x140] sm:$0xf] }
 0x119   : > { %v1243_v40 = vpop.f32.mrf.mxu3  ;;  %v5688_v60 = vpop.f32.mrf.mxu0  ;;  %v5690_v27 = vpack.c.bf16 %v2146_v17, %v2138_v13  ;;  %v1947_v13 = vmul.f32 0.5, %v5649_v1  ;;  %v4378_v17 = vor.u32 %v4852_v16, %v4377_v15  ;;  %3035 = vmatpush.bf16.msra.mxu2 %v4314_v14  ;;  %v4818_v1 = vld [vmem:[#allocation8 + $0xd4] sm:$0xf0]  ;;  %v4361_v14 = vld [vmem:[#allocation8 + $0x1c0] sm:$0xf] }
 0x11a   : > { %v1842_v47 = vadd.f32 1.0, %v1778_v22  ;;  %v5695_v29 = vadd.f32 %v1243_v40, %v1215_v25  ;;  %v5027_v38 = vpop.eup %5026  ;;  %2976 = vmatpush.bf16.msra.mxu0 %v4194_v32  ;;  %v4802_v22 = vld [vmem:[#allocation8 + $0x54] sm:$0xf0]  ;;  %v4241_v25 = vld [vmem:[#allocation8 + $0xd0] sm:$0xf] }
 0x11b   : > { %v5693_v28 = vpop.f32.mrf.mxu1  ;;  %v2083_v11 = vadd.f32 1.0, %v5027_v38  ;;  %v4178_v24 = vor.u32 %v4802_v22, %v4177_v20  ;;  %v2139_v40 = vmul.f32 %v2075_v63, %v1947_v13  ;;  %3064 = vmatpush.bf16.msra.mxu3 %v4378_v17  ;;  %v4850_v38 = vld [vmem:[#allocation8 + $0x1d4] sm:$0xf0]  ;;  %v4170_v63 = vor.u32 %v4800_v45, %v4169_v30  ;;  %v4848_v15 = vld [vmem:[#allocation8 + $0x1c4] sm:$0xf0] }
 0x11c   : > { %1486 = vmatmul.bf16.vlgmr.msrb.gmra.mxu0 %v5505_v44  ;;  %v1906_v41 = vmul.f32 %v1842_v47, %v1650_v5  ;;  %1544 = vmatmul.bf16.vlgmr.msrb.gmra.mxu2 %v5505_v44  ;;  %v1707_v47 = vmul.f32 0.044715, %v5678_v2  ;;  %v1715_v35 = vmul.f32 0.044715, %v5695_v29  ;;  %v4370_v58 = vor.u32 %v4850_v38, %v4369_v48  ;;  %v4161_v13 = vld [vmem:[#allocation8 + $0x30] sm:$0xf] }
 0x11d   : > { %v2147_v23 = vmul.f32 %v2083_v11, %v1955_v10  ;;  %v4832_v11 = vld [vmem:[#allocation8 + $0x144] sm:$0xf0]  ;;  %v4362_v16 = vor.u32 %v4848_v15, %v4361_v14  ;;  %v4798_v17 = vld [vmem:[#allocation8 + $0x34] sm:$0xf0]  ;;  %v1962_v20 = vmul.f32 0.5, %v5663_v42 }
 0x11e   : > { %1515 = vmatmul.bf16.vlgmr.msrb.gmra.mxu1 %v5507_v49  ;;  %1573 = vmatmul.bf16.vlgmr.msrb.gmra.mxu3 %v5507_v49  ;;  %5028 = vtanh.f32 %v1906_v41  ;;  %v4186_v49 = vor.u32 %v4804_v59, %v4185_v57  ;;  %v4834_v41 = vld [vmem:[#allocation8 + $0x154] sm:$0xf0]  ;;  %v4233_v57 = vld [vmem:[#allocation8 + $0xc0] sm:$0xf]  ;;  %v1970_v59 = vmul.f32 0.5, %v5680_v7  ;;  %v1779_v6 = vmul.f32 %v1715_v35, %v5695_v29 }
 0x11f   : > { %v5701_v55 = vpop.f32.mrf.mxu2  ;;  %5030 = vtanh.f32 %v1898_v54  ;;  %v5716_v32 = vpack.c.bf16 %v2147_v23, %v2139_v40  ;;  %v4242_v54 = vor.u32 %v4818_v1, %v4241_v25  ;;  %v4306_v46 = vor.u32 %v4834_v41, %v4305_v37  ;;  %3065 = vmatpush.bf16.msra.mxu3 %v4370_v58  ;;  %v4814_v35 = vld [vmem:[#allocation8 + $0xb4] sm:$0xf0]  ;;  %v4353_v41 = vld [vmem:[#allocation8 + $0x1b0] sm:$0xf]  ;;  %v4796_v45 = vld [vmem:[#allocation8 + $0x24] sm:$0xf0] }
 0x120   : > { %2977 = vmatpush.bf16.msra.mxu0 %v4186_v49  ;;  %v1771_v49 = vmul.f32 %v1707_v47, %v5678_v2  ;;  %v4234_v10 = vor.u32 %v4816_v4, %v4233_v57  ;;  %v4298_v7 = vor.u32 %v4832_v11, %v4297_v8  ;;  %v5732_v23 = vperm.slane %v5565_v12, 3  ;;  %v4289_v12 = vld [vmem:[#allocation8 + $0x130] sm:$0xf]  ;;  %v4217_v57 = vld [vmem:[#allocation8 + $0xa0] sm:$0xf] }
 0x121   : > { %v5703_v44 = vpop.f32.mrf.mxu3  ;;  %v5705_v0 = vpop.f32.mrf.mxu0  ;;  %3007 = vmatpush.bf16.msra.mxu1 %v4242_v54  ;;  %3036 = vmatpush.bf16.msra.mxu2 %v4306_v46  ;;  %v1843_v40 = vadd.f32 1.0, %v1779_v6  ;;  %v4162_v42 = vor.u32 %v4798_v17, %v4161_v13  ;;  %v4846_v54 = vld [vmem:[#allocation8 + $0x1b4] sm:$0xf0]  ;;  %v4153_v46 = vld [vmem:[#allocation8 + $0x20] sm:$0xf] }
 0x122   : > { %v1835_v25 = vadd.f32 1.0, %v1771_v49  ;;  %v4354_v58 = vor.u32 %v4846_v54, %v4353_v41  ;;  %v4281_v4 = vld [vmem:[#allocation8 + $0x120] sm:$0xf]  ;;  %v4844_v11 = vld [vmem:[#allocation8 + $0x1a4] sm:$0xf0] }
 0x123   : > { %v5707_v3 = vpop.f32.mrf.mxu1  ;;  %3066 = vmatpush.bf16.msra.mxu3 %v4362_v16  ;;  %v4794_v16 = vld [vmem:[#allocation8 + $0x14] sm:$0xf0] }
 0x124   : > { %v5029_v5 = vpop.eup %5028  ;;  %2978 = vmatpush.bf16.msra.mxu0 %v4178_v24  ;;  %v4225_v24 = vld [vmem:[#allocation8 + $0xb0] sm:$0xf] }
 0x125   : > { %v5031_v36 = vpop.eup %5030  ;;  %v2098_v61 = vadd.f32 1.0, %v5029_v5  ;;  %v1256_v5 = vadd.f32 %v5688_v60, %v5714_v33  ;;  %3008 = vmatpush.bf16.msra.mxu1 %v4234_v10  ;;  %3037 = vmatpush.bf16.msra.mxu2 %v4298_v7  ;;  %v1258_v60 = vadd.f32 %v5705_v0, %v5714_v33  ;;  %v4812_v0 = vld [vmem:[#allocation8 + $0xa4] sm:$0xf0]  ;;  %v4345_v10 = vld [vmem:[#allocation8 + $0x1a0] sm:$0xf] }
 0x126   : > { %v2090_v9 = vadd.f32 1.0, %v5031_v36  ;;  %v4830_v36 = vld [vmem:[#allocation8 + $0x134] sm:$0xf0]  ;;  %v4218_v8 = vor.u32 %v4812_v0, %v4217_v57  ;;  %v4346_v7 = vor.u32 %v4844_v11, %v4345_v10  ;;  %v4265_v57 = vld [vmem:[#allocation8 + $0x100] sm:$0xf] }
 0x127   : > { %v5718_v43 = vpop.f32.mrf.mxu2  ;;  %v2162_v22 = vmul.f32 %v2098_v61, %v1970_v59  ;;  %v4290_v37 = vor.u32 %v4830_v36, %v4289_v12  ;;  %v1651_v59 = vmul.f32 0.7978846, %v5695_v29  ;;  %v5752_v61 = vadd.f32 %v5693_v28, %v1256_v5  ;;  %3067 = vmatpush.bf16.msra.mxu3 %v4354_v58  ;;  %v4273_v5 = vld [vmem:[#allocation8 + $0x110] sm:$0xf]  ;;  %v4842_v36 = vld [vmem:[#allocation8 + $0x194] sm:$0xf0] }
 0x128   : > { %2979 = vmatpush.bf16.msra.mxu0 %v4170_v63  ;;  %v2154_v47 = vmul.f32 %v2090_v9, %v1962_v20  ;;  %v1316_v49 = vadd.f32 %v5718_v43, %v5732_v23  ;;  %v4154_v63 = vor.u32 %v4796_v45, %v4153_v46  ;;  %v4828_v9 = vld [vmem:[#allocation8 + $0x124] sm:$0xf0]  ;;  %v1314_v28 = vadd.f32 %v5701_v55, %v5732_v23  ;;  %v4145_v43 = vld [vmem:[#allocation8 + $0x10] sm:$0xf]  ;;  %v4810_v55 = vld [vmem:[#allocation8 + $0x94] sm:$0xf0] }
 0x129   : > { %v5720_v50 = vpop.f32.mrf.mxu3  ;;  %v5722_v51 = vpop.f32.mrf.mxu0  ;;  %3038 = vmatpush.bf16.msra.mxu2 %v4290_v37  ;;  %v4282_v15 = vor.u32 %v4828_v9, %v4281_v4  ;;  %v1907_v13 = vmul.f32 %v1843_v40, %v1651_v59  ;;  %v5761_v17 = vadd.f32 %v5707_v3, %v1258_v60  ;;  %v1660_v20 = vmul.f32 0.044715, %v5752_v61  ;;  %v4337_v12 = vld [vmem:[#allocation8 + $0x190] sm:$0xf]  ;;  %v4792_v46 = vld [vmem:[#allocation8 + $0x4] sm:$0xf0] }
 0x12a   : > { %v5741_v48 = vpack.c.bf16 %v2162_v22, %v2154_v47  ;;  %v5765_v22 = vadd.f32 %v5720_v50, %v1316_v49  ;;  %v4826_v47 = vld [vmem:[#allocation8 + $0x114] sm:$0xf0]  ;;  %v4137_v50 = vld [vmem:[#allocation8] sm:$0xf]  ;;  %v4338_v54 = vor.u32 %v4842_v36, %v4337_v12  ;;  %v4808_v45 = vld [vmem:[#allocation8 + $0x84] sm:$0xf0] }
 0x12b   : > { %v5727_v62 = vpop.f32.mrf.mxu1  ;;  %3068 = vmatpush.bf16.msra.mxu3 %v4346_v7  ;;  %v4138_v58 = vor.u32 %v4792_v46, %v4137_v50  ;;  %v1724_v59 = vmul.f32 %v1660_v20, %v5752_v61  ;;  %v4329_v0 = vld [vmem:[#allocation8 + $0x180] sm:$0xf]  ;;  %v4840_v4 = vld [vmem:[#allocation8 + $0x184] sm:$0xf0]  ;;  %v1596_v7 = vmul.f32 0.7978846, %v5752_v61 }
 0x12c   : > { %1491 = vmatmul.bf16.gmra.mxu0 %v5517_v34  ;;  %1549 = vmatmul.bf16.gmra.mxu2 %v5517_v34  ;;  %v4226_v34 = vor.u32 %v4814_v35, %v4225_v24  ;;  %v4146_v24 = vor.u32 %v4794_v16, %v4145_v43  ;;  %v4274_v35 = vor.u32 %v4826_v47, %v4273_v5  ;;  %v1669_v60 = vmul.f32 0.044715, %v5765_v22 }
 0x12d   : > { %2980 = vmatpush.bf16.msra.mxu0 %v4162_v42  ;;  %3039 = vmatpush.bf16.msra.mxu2 %v4282_v15  ;;  %v5768_v42 = vadd.f32 %v5703_v44, %v1314_v28  ;;  %v4330_v10 = vor.u32 %v4840_v4, %v4329_v0  ;;  %v1788_v43 = vadd.f32 1.0, %v1724_v59  ;;  %v1963_v12 = vmul.f32 0.5, %v5678_v2 }
 0x12e   : > { %1520 = vmatmul.bf16.gmra.mxu1 %v5519_v39  ;;  %1578 = vmatmul.bf16.gmra.mxu3 %v5519_v39  ;;  %v1643_v39 = vmul.f32 0.7978846, %v5678_v2  ;;  %v1733_v16 = vmul.f32 %v1669_v60, %v5765_v22 }
 0x12f   : > { %v5739_v1 = vpop.f32.mrf.mxu2  ;;  %3009 = vmatpush.bf16.msra.mxu1 %v4226_v34  ;;  %v1668_v34 = vmul.f32 0.044715, %v5761_v17  ;;  %3069 = vmatpush.bf16.msra.mxu3 %v4338_v54  ;;  %v1852_v36 = vmul.f32 %v1788_v43, %v1596_v7 }
 0x130   : > { %v1899_v14 = vmul.f32 %v1835_v25, %v1643_v39  ;;  %v4209_v25 = vld [vmem:[#allocation8 + $0x90] sm:$0xf]  ;;  %v4201_v39 = vld [vmem:[#allocation8 + $0x80] sm:$0xf]  ;;  %v1319_v47 = vadd.f32 %v5739_v1, %v5732_v23  ;;  %v1597_v1 = vmul.f32 0.7978846, %v5768_v42 }
 0x131   : > { %v5746_v38 = vpop.f32.mrf.mxu3  ;;  %v5748_v30 = vpop.f32.mrf.mxu0  ;;  %2981 = vmatpush.bf16.msra.mxu0 %v4154_v63  ;;  %v4210_v3 = vor.u32 %v4810_v55, %v4209_v25  ;;  %3040 = vmatpush.bf16.msra.mxu2 %v4274_v35  ;;  %v4202_v49 = vor.u32 %v4808_v45, %v4201_v39  ;;  %v4824_v63 = vld [vmem:[#allocation8 + $0x104] sm:$0xf0]  ;;  %v1732_v28 = vmul.f32 %v1668_v34, %v5761_v17 }
 0x132   : > { %5032 = vtanh.f32 %v1899_v14  ;;  %v4266_v9 = vor.u32 %v4824_v63, %v4265_v57  ;;  %v1263_v15 = vadd.f32 %v5748_v30, %v5714_v33  ;;  %v1971_v30 = vmul.f32 0.5, %v5695_v29 }
 0x133   : > { %v5756_v6 = vpop.f32.mrf.mxu1  ;;  %3010 = vmatpush.bf16.msra.mxu1 %v4218_v8  ;;  %5034 = vtanh.f32 %v1907_v13  ;;  %v1661_v8 = vmul.f32 0.044715, %v5768_v42  ;;  %3070 = vmatpush.bf16.msra.mxu3 %v4330_v10  ;;  %v1796_v5 = vadd.f32 1.0, %v1732_v28  ;;  %v1604_v29 = vmul.f32 0.7978846, %v5761_v17 }
 0x134   : > { %v5807_v45 = vadd.f32 %v5746_v38, %v1319_v47  ;;  %5036 = vtanh.f32 %v1852_v36 }
 0x135   : > { %2982 = vmatpush.bf16.msra.mxu0 %v4146_v24  ;;  %3041 = vmatpush.bf16.msra.mxu2 %v4266_v9  ;;  %v1725_v13 = vmul.f32 %v1661_v8, %v5768_v42 }
 0x136   : > { %v1677_v10 = vmul.f32 0.044715, %v5807_v45 }
 0x137   : > { %v1320_v40 = vpop.f32.mrf.mxu2  ;;  %3011 = vmatpush.bf16.msra.mxu1 %v4210_v3  ;;  %v5794_v3 = vadd.f32 %v5756_v6, %v1263_v15  ;;  %v1789_v54 = vadd.f32 1.0, %v1725_v13  ;;  %v1605_v6 = vmul.f32 0.7978846, %v5765_v22 }
 0x138   : > { %v5033_v11 = vpop.eup %5032  ;;  %v1321_v50 = vadd.f32 %v1320_v40, %v5732_v23 }
 0x139   : > { %v5771_v37 = vpop.f32.mrf.mxu3  ;;  %v1265_v41 = vpop.f32.mrf.mxu0  ;;  %2983 = vmatpush.bf16.msra.mxu0 %v4138_v58  ;;  %v1860_v58 = vmul.f32 %v1796_v5, %v1604_v29  ;;  %v1684_v40 = vmul.f32 0.044715, %v5794_v3 }
 0x13a   : > { %v5035_v14 = vpop.eup %5034  ;;  %v1266_v39 = vadd.f32 %v1265_v41, %v5714_v33 }
 0x13b   : > { %v5774_v44 = vpop.f32.mrf.mxu1  ;;  %3012 = vmatpush.bf16.msra.mxu1 %v4202_v49  ;;  %v2099_v55 = vadd.f32 1.0, %v5035_v14  ;;  %v1853_v49 = vmul.f32 %v1789_v54, %v1597_v1  ;;  %5038 = vtanh.f32 %v1860_v58 }
 0x13c   : > { %1496 = vmatmul.bf16.gmra.mxu0 %v5529_v18  ;;  %1554 = vmatmul.bf16.gmra.mxu2 %v5529_v18  ;;  %v1261_v18 = vadd.f32 %v5722_v51, %v5714_v33  ;;  %v1797_v51 = vadd.f32 1.0, %v1733_v16  ;;  %v5818_v0 = vadd.f32 %v5774_v44, %v1266_v39  ;;  %v1741_v16 = vmul.f32 %v1677_v10, %v5807_v45 }
 0x13d   : > { %v2163_v34 = vmul.f32 %v2099_v55, %v1971_v30  ;;  %v1620_v55 = vmul.f32 0.7978846, %v5794_v3 }
 0x13e   : > { %1525 = vmatmul.bf16.gmra.mxu1 %v5531_v19  ;;  %1583 = vmatmul.bf16.gmra.mxu3 %v5531_v19  ;;  %v2091_v19 = vadd.f32 1.0, %v5033_v11  ;;  %v5800_v46 = vadd.f32 %v5727_v62, %v1261_v18  ;;  %v1861_v59 = vmul.f32 %v1797_v51, %v1605_v6  ;;  %v5812_v62 = vadd.f32 %v5771_v37, %v1321_v50 }
 0x13f   : > { %v1323_v20 = vpop.f32.mrf.mxu2  ;;  %v1748_v37 = vmul.f32 %v1684_v40, %v5794_v3  ;;  %v1692_v15 = vmul.f32 0.044715, %v5818_v0  ;;  %v1805_v29 = vadd.f32 1.0, %v1741_v16  ;;  %v1628_v40 = vmul.f32 0.7978846, %v5818_v0 }
 0x140   : > { %v1324_v60 = vadd.f32 %v1323_v20, %v5732_v23  ;;  %v2155_v2 = vmul.f32 %v2091_v19, %v1963_v12  ;;  %v1676_v63 = vmul.f32 0.044715, %v5800_v46  ;;  %5040 = vtanh.f32 %v1861_v59  ;;  %v5037_v20 = vpop.eup %5036 }
 0x141   : > { %v1352_v24 = vpop.f32.mrf.mxu3  ;;  %v1267_v25 = vpop.f32.mrf.mxu0  ;;  %v1685_v28 = vmul.f32 0.044715, %v5812_v62  ;;  %5042 = vtanh.f32 %v1853_v49  ;;  %v1812_v13 = vadd.f32 1.0, %v1748_v37  ;;  %v1612_v30 = vmul.f32 0.7978846, %v5800_v46 }
 0x142   : > { %v1268_v57 = vadd.f32 %v1267_v25, %v5714_v33  ;;  %v5814_v41 = vpack.c.bf16 %v2163_v34, %v2155_v2  ;;  %v5820_v38 = vadd.f32 %v1352_v24, %v1324_v60  ;;  %v1740_v44 = vmul.f32 %v1676_v63, %v5800_v46  ;;  %v5039_v25 = vpop.eup %5038 }
 0x143   : > { %v1296_v35 = vpop.f32.mrf.mxu1  ;;  %v1749_v24 = vmul.f32 %v1685_v28, %v5812_v62  ;;  %v1756_v5 = vmul.f32 %v1692_v15, %v5818_v0  ;;  %v1924_v12 = vmul.f32 0.5, %v5761_v17  ;;  %v2044_v54 = vadd.f32 1.0, %v5037_v20 }
 0x144   : > { %v5824_v11 = vadd.f32 %v1296_v35, %v1268_v57  ;;  %v1693_v7 = vmul.f32 0.044715, %v5820_v38  ;;  %v1804_v19 = vadd.f32 1.0, %v1740_v44  ;;  %v1916_v35 = vmul.f32 0.5, %v5752_v61 }
 0x145   : > { %v1876_v6 = vmul.f32 %v1812_v13, %v1620_v55  ;;  %v2052_v60 = vadd.f32 1.0, %v5039_v25  ;;  %v1925_v61 = vmul.f32 0.5, %v5765_v22  ;;  %v1613_v17 = vmul.f32 0.7978846, %v5807_v45 }
 0x146   : > { %v1700_v18 = vmul.f32 0.044715, %v5824_v11  ;;  %v1757_v36 = vmul.f32 %v1693_v7, %v5820_v38  ;;  %v1813_v2 = vadd.f32 1.0, %v1749_v24  ;;  %v1820_v57 = vadd.f32 1.0, %v1756_v5 }
 0x147   : > { %v1325_v4 = vpop.f32.mrf.mxu2  ;;  %v1868_v59 = vmul.f32 %v1804_v19, %v1612_v30  ;;  %v1621_v63 = vmul.f32 0.7978846, %v5812_v62  ;;  %5044 = vtanh.f32 %v1876_v6  ;;  %v1869_v28 = vmul.f32 %v1805_v29, %v1613_v17  ;;  %v5881_v6 = vld [vmem:[#allocation7] sm:$0xff] }
 0x148   : > { %v1326_v43 = vadd.f32 %v1325_v4, %v5732_v23  ;;  %v1764_v39 = vmul.f32 %v1700_v18, %v5824_v11  ;;  %v1821_v4 = vadd.f32 1.0, %v1757_v36  ;;  %v1917_v22 = vmul.f32 0.5, %v5768_v42 }
 0x149   : > { %v1354_v8 = vpop.f32.mrf.mxu3  ;;  %v1270_v9 = vpop.f32.mrf.mxu0  ;;  %v2116_v44 = vmul.f32 %v2052_v60, %v1924_v12  ;;  %v1629_v15 = vmul.f32 0.7978846, %v5820_v38  ;;  %v1877_v7 = vmul.f32 %v1813_v2, %v1621_v63  ;;  %v1636_v16 = vmul.f32 0.7978846, %v5824_v11 }
 0x14a   : > { %v1828_v10 = vadd.f32 1.0, %v1764_v39  ;;  %v1271_v37 = vadd.f32 %v1270_v9, %v5714_v33  ;;  %5046 = vtanh.f32 %v1868_v59  ;;  %v1884_v18 = vmul.f32 %v1820_v57, %v1628_v40 }
 0x14b   : > { %v5826_v14 = vpop.f32.mrf.mxu1  ;;  %v2108_v20 = vmul.f32 %v2044_v54, %v1916_v35  ;;  %v1885_v30 = vmul.f32 %v1821_v4, %v1629_v15  ;;  %5048 = vtanh.f32 %v1869_v28  ;;  %v5884_v60 = vperm.slane %v5881_v6, 4  ;;  %v4870_v28 = vld [vmem:[#allocation8 + $0x274] sm:$0xf0] }
 0x14c   : > { %1501 = vmatmul.bf16.gmra.mxu0 %v5541_v52  ;;  %1559 = vmatmul.bf16.gmra.mxu2 %v5541_v52  ;;  %v5041_v52 = vpop.eup %5040  ;;  %v1300_v42 = vadd.f32 %v5826_v14, %v1271_v37  ;;  %v1892_v5 = vmul.f32 %v1828_v10, %v1636_v16  ;;  %5050 = vtanh.f32 %v1877_v7  ;;  %v1933_v40 = vmul.f32 0.5, %v5807_v45  ;;  %v4513_v16 = vld [vmem:[#allocation8 + $0x2f0] sm:$0xf] }
 0x14d   : > { %v5043_v34 = vpop.eup %5042  ;;  %v2053_v58 = vadd.f32 1.0, %v5041_v52  ;;  %v5870_v52 = vpack.c.bf16 %v2116_v44, %v2108_v20  ;;  %5052 = vtanh.f32 %v1884_v18  ;;  %v5907_v7 = vmul.f32 0.5, %v5824_v11  ;;  %v4886_v18 = vld [vmem:[#allocation8 + $0x2f4] sm:$0xf0] }
 0x14e   : > { %1530 = vmatmul.bf16.gmra.mxu1 %v5543_v53  ;;  %1588 = vmatmul.bf16.gmra.mxu3 %v5543_v53  ;;  %v5846_v53 = vadd.f32 %v1354_v8, %v1326_v43  ;;  %v2045_v49 = vadd.f32 1.0, %v5043_v34  ;;  %v5045_v12 = vpop.eup %5044  ;;  %5054 = vtanh.f32 %v1885_v30  ;;  %v1708_v54 = vmul.f32 0.044715, %v1300_v42 }
 0x14f   : > { %v1328_v47 = vpop.f32.mrf.mxu2  ;;  %v2117_v43 = vmul.f32 %v2053_v58, %v1925_v61  ;;  %5056 = vtanh.f32 %v1892_v5  ;;  %v2068_v61 = vadd.f32 1.0, %v5045_v12  ;;  %v1940_v58 = vmul.f32 0.5, %v5794_v3 }
 0x150   : > { %v1701_v8 = vmul.f32 0.044715, %v5846_v53  ;;  %v2109_v19 = vmul.f32 %v2045_v49, %v1917_v22  ;;  %v1329_v34 = vadd.f32 %v1328_v47, %v5732_v23  ;;  %v5047_v14 = vpop.eup %5046  ;;  %v1637_v39 = vmul.f32 0.7978846, %v5846_v53 }
 0x151   : > { %v5848_v51 = vpop.f32.mrf.mxu3  ;;  %v1272_v50 = vpop.f32.mrf.mxu0  ;;  %v1932_v47 = vmul.f32 0.5, %v5800_v46  ;;  %v5897_v49 = vperm.slane %v5881_v6, 5  ;;  %v2060_v4 = vadd.f32 1.0, %v5047_v14  ;;  %v1772_v3 = vmul.f32 %v1708_v54, %v1300_v42 }
 0x152   : > { %v1765_v24 = vmul.f32 %v1701_v8, %v5846_v53  ;;  %v5873_v35 = vpack.c.bf16 %v2117_v43, %v2109_v19  ;;  %v1273_v29 = vadd.f32 %v1272_v50, %v5714_v33  ;;  %v5049_v17 = vpop.eup %5048  ;;  %v1941_v33 = vmul.f32 0.5, %v5812_v62 }
 0x153   : > { %v5851_v1 = vpop.f32.mrf.mxu1  ;;  %v5891_v50 = vmul.f32 0.5, %v5818_v0  ;;  %v5051_v57 = vpop.eup %5050  ;;  %v5894_v59 = vadd.f32 %v5848_v51, %v1329_v34  ;;  %v5904_v0 = vmul.f32 0.5, %v5820_v38  ;;  %v4449_v51 = vld [vmem:[#allocation8 + $0x270] sm:$0xf]  ;;  %v2132_v44 = vmul.f32 %v2068_v61, %v1940_v58  ;;  %v4505_v58 = vld [vmem:[#allocation8 + $0x2e0] sm:$0xf] }
 0x154   : > { %v1829_v36 = vadd.f32 1.0, %v1765_v24  ;;  %v5053_v10 = vpop.eup %5052  ;;  %v1302_v45 = vadd.f32 %v5851_v1, %v1273_v29  ;;  %v2061_v15 = vadd.f32 1.0, %v5049_v17  ;;  %v4450_v43 = vor.u32 %v4870_v28, %v4449_v51  ;;  %v4441_v17 = vld [vmem:[#allocation8 + $0x260] sm:$0xf]  ;;  %v4902_v51 = vld [vmem:[#allocation8 + $0x374] sm:$0xf0] }
 0x155   : > { %v5055_v22 = vpop.eup %5054  ;;  %v1644_v1 = vmul.f32 0.7978846, %v1300_v42  ;;  %v2069_v24 = vadd.f32 1.0, %v5051_v57  ;;  %v1709_v38 = vmul.f32 0.044715, %v5894_v59  ;;  %v5913_v30 = vadd.f32 1.0, %v5053_v10 }
 0x156   : > { %v1893_v8 = vmul.f32 %v1829_v36, %v1637_v39  ;;  %v5057_v20 = vpop.eup %5056  ;;  %3092 = vmatpush.bf16.msrb.mxu0 %v4450_v43  ;;  %v5915_v19 = vmul.f32 0.5, %v1300_v42  ;;  %v1836_v11 = vadd.f32 1.0, %v1772_v3  ;;  %v1716_v5 = vmul.f32 0.044715, %v1302_v45 }
 0x157   : > { %v1330_v13 = vpop.f32.mrf.mxu2  ;;  %v5920_v36 = vadd.f32 1.0, %v5055_v22  ;;  %v5928_v54 = vadd.f32 1.0, %v5057_v20  ;;  %v2124_v29 = vmul.f32 %v2060_v4, %v1932_v47  ;;  %v2125_v39 = vmul.f32 %v2061_v15, %v1933_v40  ;;  %v4884_v4 = vld [vmem:[#allocation8 + $0x2e4] sm:$0xf0]  ;;  %v4641_v15 = vld [vmem:[#allocation8 + $0x3f0] sm:$0xf] }
 0x158   : > { %v1331_v62 = vadd.f32 %v1330_v13, %v5732_v23  ;;  %v5910_v23 = vmul.f32 0.5, %v5846_v53  ;;  %v4514_v13 = vor.u32 %v4886_v18, %v4513_v16  ;;  %5058 = vtanh.f32 %v1893_v8  ;;  %v4918_v20 = vld [vmem:[#allocation8 + $0x3f4] sm:$0xf0] }
 0x159   : > { %v5863_v25 = vpop.f32.mrf.mxu3  ;;  %v5865_v9 = vpop.f32.mrf.mxu0  ;;  %v5923_v53 = vmul.f32 0.7978846, %v5894_v59  ;;  %v2133_v61 = vmul.f32 %v2069_v24, %v1941_v33  ;;  %v1773_v57 = vmul.f32 %v1709_v38, %v5894_v59  ;;  %v5931_v8 = vmul.f32 0.7978846, %v1302_v45  ;;  %v4433_v24 = vld [vmem:[#allocation8 + $0x250] sm:$0xf] }
 0x15a   : > { %v5918_v12 = vadd.f32 %v5863_v25, %v1331_v62  ;;  %3121 = vmatpush.bf16.msrb.mxu1 %v4514_v13  ;;  %v1372_v34 = vadd.f32 %v5865_v9, %v5884_v60  ;;  %v4868_v25 = vld [vmem:[#allocation8 + $0x264] sm:$0xf0]  ;;  %v4577_v9 = vld [vmem:[#allocation8 + $0x370] sm:$0xf]  ;;  %v1780_v28 = vmul.f32 %v1716_v5, %v1302_v45  ;;  %v5937_v40 = vpack.c.bf16 %v2132_v44, %v2124_v29  ;;  %v4866_v5 = vld [vmem:[#allocation8 + $0x254] sm:$0xf0] }
 0x15b   : > { %v5868_v55 = vpop.f32.mrf.mxu1  ;;  %v4578_v33 = vor.u32 %v4902_v51, %v4577_v9  ;;  %v4506_v18 = vor.u32 %v4884_v4, %v4505_v58  ;;  %v5944_v13 = vmul.f32 0.5, %v1302_v45  ;;  %v5947_v38 = vpack.c.bf16 %v2133_v61, %v2125_v39  ;;  %v4497_v29 = vld [vmem:[#allocation8 + $0x2d0] sm:$0xf]  ;;  %v4425_v9 = vld [vmem:[#allocation8 + $0x240] sm:$0xf] }
 0x15c   : > { %2984 = vmatmul.bf16.vlgmr.msra.gmra.mxu0 %v5627_v21  ;;  %3042 = vmatmul.bf16.vlgmr.msra.gmra.mxu2 %v5870_v52  ;;  %v1717_v22 = vmul.f32 0.044715, %v5918_v12  ;;  %v5940_v16 = vadd.f32 %v5868_v55, %v1372_v34  ;;  %v4642_v44 = vor.u32 %v4918_v20, %v4641_v15  ;;  %v1837_v55 = vadd.f32 1.0, %v1773_v57  ;;  %v4864_v51 = vld [vmem:[#allocation8 + $0x244] sm:$0xf0] }
 0x15d   : > { %3150 = vmatpush.bf16.msrb.mxu2 %v4578_v33  ;;  %v5956_v45 = vmul.f32 0.5, %v5894_v59  ;;  %v1653_v39 = vmul.f32 0.7978846, %v5918_v12  ;;  %v5967_v59 = vmul.f32 %v5913_v30, %v5891_v50  ;;  %v5978_v15 = vmul.f32 %v5928_v54, %v5907_v7  ;;  %v4569_v50 = vld [vmem:[#allocation8 + $0x360] sm:$0xf] }
 0x15e   : > { %3013 = vmatmul.bf16.vlgmr.msra.gmra.mxu1 %v5643_v56  ;;  %3071 = vmatmul.bf16.vlgmr.msra.gmra.mxu3 %v5873_v35  ;;  %v5059_v43 = vpop.eup %5058  ;;  %v1781_v61 = vmul.f32 %v1717_v22, %v5918_v12  ;;  %v4900_v30 = vld [vmem:[#allocation8 + $0x364] sm:$0xf0]  ;;  %v1901_v7 = vmul.f32 %v1837_v55, %v5923_v53  ;;  %v4417_v54 = vld [vmem:[#allocation8 + $0x230] sm:$0xf] }
 0x15f   : > { %v1429_v2 = vpop.f32.mrf.mxu2  ;;  %3122 = vmatpush.bf16.msrb.mxu1 %v4506_v18  ;;  %3179 = vmatpush.bf16.msrb.mxu3 %v4642_v44  ;;  %v4570_v20 = vor.u32 %v4900_v30, %v4569_v50  ;;  %v4633_v44 = vld [vmem:[#allocation8 + $0x3e0] sm:$0xf] }
 0x160   : > { %v1430_v14 = vadd.f32 %v1429_v2, %v5897_v49  ;;  %v4442_v2 = vor.u32 %v4868_v25, %v4441_v17  ;;  %v4882_v17 = vld [vmem:[#allocation8 + $0x2d4] sm:$0xf0]  ;;  %v1900_v25 = vmul.f32 %v1836_v11, %v1644_v1  ;;  %v5961_v1 = vadd.f32 1.0, %v5059_v43 }
 0x161   : > { %v1458_v46 = vpop.f32.mrf.mxu3  ;;  %v1373_v63 = vpop.f32.mrf.mxu0  ;;  %v4498_v58 = vor.u32 %v4882_v17, %v4497_v29  ;;  %v4426_v43 = vor.u32 %v4864_v51, %v4425_v9  ;;  %v1845_v18 = vadd.f32 1.0, %v1781_v61  ;;  %v4916_v17 = vld [vmem:[#allocation8 + $0x3e4] sm:$0xf0]  ;;  %3151 = vmatpush.bf16.msrb.mxu2 %v4570_v20  ;;  %v4481_v9 = vld [vmem:[#allocation8 + $0x2b0] sm:$0xf] }
 0x162   : > { %v1374_v10 = vadd.f32 %v1373_v63, %v5884_v60  ;;  %v5942_v63 = vadd.f32 %v1458_v46, %v1430_v14  ;;  %3093 = vmatpush.bf16.msrb.mxu0 %v4442_v2  ;;  %v1844_v14 = vadd.f32 1.0, %v1780_v28  ;;  %v4489_v2 = vld [vmem:[#allocation8 + $0x2c0] sm:$0xf]  ;;  %5060 = vtanh.f32 %v1900_v25 }
 0x163   : > { %v5901_v37 = vpop.f32.mrf.mxu1  ;;  %3123 = vmatpush.bf16.msrb.mxu1 %v4498_v58  ;;  %v5987_v58 = vmul.f32 0.5, %v5918_v12  ;;  %v1598_v12 = vmul.f32 0.7978846, %v5940_v16 }
 0x164   : > { %v5950_v46 = vadd.f32 %v5901_v37, %v1374_v10  ;;  %v1662_v37 = vmul.f32 0.044715, %v5940_v16  ;;  %v1663_v11 = vmul.f32 0.044715, %v5942_v63  ;;  %v5971_v10 = vmul.f32 %v5920_v36, %v5904_v0 }
 0x166   : > { %v1670_v28 = vmul.f32 0.044715, %v5950_v46  ;;  %v1727_v61 = vmul.f32 %v1663_v11, %v5942_v63  ;;  %v1909_v11 = vmul.f32 %v1845_v18, %v1653_v39 }
 0x167   : > { %v1431_v42 = vpop.f32.mrf.mxu2 }
 0x168   : > { %v1432_v34 = vadd.f32 %v1431_v42, %v5897_v49  ;;  %v4434_v42 = vor.u32 %v4866_v5, %v4433_v24  ;;  %v4880_v24 = vld [vmem:[#allocation8 + $0x2c4] sm:$0xf0]  ;;  %v1726_v5 = vmul.f32 %v1662_v37, %v5940_v16 }
 0x169   : > { %v1460_v3 = vpop.f32.mrf.mxu3  ;;  %v1376_v62 = vpop.f32.mrf.mxu0  ;;  %v4490_v29 = vor.u32 %v4880_v24, %v4489_v2 }
 0x16a   : > { %v5974_v22 = vadd.f32 %v1460_v3, %v1432_v34  ;;  %3094 = vmatpush.bf16.msrb.mxu0 %v4434_v42  ;;  %v1377_v0 = vadd.f32 %v1376_v62, %v5884_v60  ;;  %v1908_v3 = vmul.f32 %v1844_v14, %v5931_v8  ;;  %v4862_v34 = vld [vmem:[#allocation8 + $0x234] sm:$0xf0]  ;;  %v4634_v42 = vor.u32 %v4916_v17, %v4633_v44  ;;  %v4561_v44 = vld [vmem:[#allocation8 + $0x350] sm:$0xf]  ;;  %v4860_v17 = vld [vmem:[#allocation8 + $0x224] sm:$0xf0] }
 0x16b   : > { %v5935_v47 = vpop.f32.mrf.mxu1  ;;  %v4878_v8 = vld [vmem:[#allocation8 + $0x2b4] sm:$0xf0]  ;;  %v1734_v14 = vmul.f32 %v1670_v28, %v5950_v46  ;;  %v4418_v53 = vor.u32 %v4862_v34, %v4417_v54  ;;  %3124 = vmatpush.bf16.msrb.mxu1 %v4490_v29  ;;  %v1790_v2 = vadd.f32 1.0, %v1726_v5  ;;  %v1599_v28 = vmul.f32 0.7978846, %v5942_v63 }
 0x16c   : > { %2989 = vmatmul.bf16.gmra.mxu0 %v5655_v26  ;;  %3047 = vmatmul.bf16.gmra.mxu2 %v5937_v40  ;;  %v1671_v37 = vmul.f32 0.044715, %v5974_v22  ;;  %v5993_v55 = vadd.f32 %v5935_v47, %v1377_v0  ;;  %5062 = vtanh.f32 %v1908_v3  ;;  %v4482_v51 = vor.u32 %v4878_v8, %v4481_v9  ;;  %v4898_v3 = vld [vmem:[#allocation8 + $0x354] sm:$0xf0]  ;;  %v4473_v34 = vld [vmem:[#allocation8 + $0x2a0] sm:$0xf] }
 0x16d   : > { %3180 = vmatpush.bf16.msrb.mxu3 %v4634_v42  ;;  %5064 = vtanh.f32 %v1901_v7  ;;  %v2149_v47 = vmul.f32 %v5961_v1, %v5910_v23  ;;  %v1798_v0 = vadd.f32 1.0, %v1734_v14  ;;  %v4562_v23 = vor.u32 %v4898_v3, %v4561_v44  ;;  %v4409_v1 = vld [vmem:[#allocation8 + $0x220] sm:$0xf] }
 0x16e   : > { %3018 = vmatmul.bf16.gmra.mxu1 %v5671_v31  ;;  %3076 = vmatmul.bf16.gmra.mxu3 %v5947_v38  ;;  %v1735_v39 = vmul.f32 %v1671_v37, %v5974_v22  ;;  %5066 = vtanh.f32 %v1909_v11  ;;  %v1854_v7 = vmul.f32 %v1790_v2, %v1598_v12  ;;  %v4410_v54 = vor.u32 %v4860_v17, %v4409_v1  ;;  %v4858_v2 = vld [vmem:[#allocation8 + $0x214] sm:$0xf0] }
 0x16f   : > { %v1434_v57 = vpop.f32.mrf.mxu2  ;;  %3095 = vmatpush.bf16.msrb.mxu0 %v4426_v43  ;;  %v5061_v43 = vpop.eup %5060  ;;  %3125 = vmatpush.bf16.msrb.mxu1 %v4482_v51  ;;  %v6019_v14 = vpack.c.bf16 %v2149_v47, %v5971_v10 }
 0x170   : > { %v1435_v25 = vadd.f32 %v1434_v57, %v5897_v49  ;;  %v1791_v57 = vadd.f32 1.0, %v1727_v61  ;;  %v4876_v61 = vld [vmem:[#allocation8 + $0x2a4] sm:$0xf0]  ;;  %3152 = vmatpush.bf16.msrb.mxu2 %v4562_v23  ;;  %v2092_v51 = vadd.f32 1.0, %v5061_v43  ;;  %5068 = vtanh.f32 %v1854_v7  ;;  %v4874_v43 = vld [vmem:[#allocation8 + $0x294] sm:$0xf0] }
 0x171   : > { %v1463_v33 = vpop.f32.mrf.mxu3  ;;  %v1378_v4 = vpop.f32.mrf.mxu0  ;;  %v4474_v37 = vor.u32 %v4876_v61, %v4473_v34  ;;  %v4553_v61 = vld [vmem:[#allocation8 + $0x340] sm:$0xf] }
 0x172   : > { %v1379_v62 = vadd.f32 %v1378_v4, %v5884_v60  ;;  %v5997_v4 = vmul.f32 0.5, %v5940_v16  ;;  %v6005_v18 = vadd.f32 %v1463_v33, %v1435_v25  ;;  %v6012_v33 = vpack.c.bf16 %v5978_v15, %v5967_v59  ;;  %v5063_v42 = vpop.eup %5062  ;;  %v4914_v25 = vld [vmem:[#allocation8 + $0x3d4] sm:$0xf0] }
 0x173   : > { %v1407_v36 = vpop.f32.mrf.mxu1  ;;  %3096 = vmatpush.bf16.msrb.mxu0 %v4418_v53  ;;  %v4401_v53 = vld [vmem:[#allocation8 + $0x210] sm:$0xf]  ;;  %v5065_v59 = vpop.eup %5064  ;;  %v1799_v15 = vadd.f32 1.0, %v1735_v39  ;;  %v2100_v44 = vadd.f32 1.0, %v5063_v42  ;;  %3126 = vmatpush.bf16.msrb.mxu1 %v4474_v37 }
 0x174   : > { %v6000_v50 = vadd.f32 %v1407_v36, %v1379_v62  ;;  %v1678_v36 = vmul.f32 0.044715, %v5993_v55  ;;  %v4625_v62 = vld [vmem:[#allocation8 + $0x3d0] sm:$0xf]  ;;  %v1679_v11 = vmul.f32 0.044715, %v6005_v18  ;;  %v5067_v3 = vpop.eup %5066 }
 0x175   : > { %v4626_v12 = vor.u32 %v4914_v25, %v4625_v62  ;;  %v4465_v39 = vld [vmem:[#allocation8 + $0x290] sm:$0xf]  ;;  %v4896_v62 = vld [vmem:[#allocation8 + $0x344] sm:$0xf0] }
 0x176   : > { %v1686_v9 = vmul.f32 0.044715, %v6000_v50  ;;  %v1742_v10 = vmul.f32 %v1678_v36, %v5993_v55  ;;  %v1743_v7 = vmul.f32 %v1679_v11, %v6005_v18  ;;  %v4554_v25 = vor.u32 %v4896_v62, %v4553_v61 }
 0x177   : > { %v1436_v30 = vpop.f32.mrf.mxu2  ;;  %3097 = vmatpush.bf16.msrb.mxu0 %v4410_v54  ;;  %3181 = vmatpush.bf16.msrb.mxu3 %v4626_v12  ;;  %v1614_v54 = vmul.f32 0.7978846, %v5993_v55  ;;  %v2101_v12 = vadd.f32 1.0, %v5067_v3 }
 0x178   : > { %v1437_v20 = vadd.f32 %v1436_v30, %v5897_v49  ;;  %v1606_v30 = vmul.f32 0.7978846, %v5950_v46  ;;  %v1750_v1 = vmul.f32 %v1686_v9, %v6000_v50  ;;  %v1806_v42 = vadd.f32 1.0, %v1742_v10  ;;  %3153 = vmatpush.bf16.msrb.mxu2 %v4554_v25  ;;  %v5069_v10 = vpop.eup %5068 }
 0x179   : > { %v1465_v16 = vpop.f32.mrf.mxu3  ;;  %v1381_v24 = vpop.f32.mrf.mxu0 }
 0x17a   : > { %v1382_v5 = vadd.f32 %v1381_v24, %v5884_v60  ;;  %v6015_v8 = vadd.f32 %v1465_v16, %v1437_v20  ;;  %v4402_v20 = vor.u32 %v4858_v2, %v4401_v53  ;;  %v1855_v16 = vmul.f32 %v1791_v57, %v1599_v28 }
 0x17b   : > { %v1410_v29 = vpop.f32.mrf.mxu1  ;;  %v1607_v24 = vmul.f32 0.7978846, %v5974_v22  ;;  %v1862_v23 = vmul.f32 %v1798_v0, %v1606_v30  ;;  %v1814_v11 = vadd.f32 1.0, %v1750_v1  ;;  %v1870_v3 = vmul.f32 %v1806_v42, %v1614_v54 }
 0x17c   : > { %2994 = vmatmul.bf16.gmra.mxu0 %v5690_v27  ;;  %3052 = vmatmul.bf16.gmra.mxu2 %v6012_v33  ;;  %v6026_v47 = vadd.f32 %v1410_v29, %v1382_v5  ;;  %v1687_v36 = vmul.f32 0.044715, %v6015_v8  ;;  %v4466_v29 = vor.u32 %v4874_v43, %v4465_v39  ;;  %5070 = vtanh.f32 %v1855_v16 }
 0x17d   : > { %v1863_v17 = vmul.f32 %v1799_v15, %v1607_v24  ;;  %3098 = vmatpush.bf16.msrb.mxu0 %v4402_v20  ;;  %v2093_v15 = vadd.f32 1.0, %v5065_v59  ;;  %5072 = vtanh.f32 %v1862_v23  ;;  %v1807_v39 = vadd.f32 1.0, %v1743_v7 }
 0x17e   : > { %3023 = vmatmul.bf16.gmra.mxu1 %v5716_v32  ;;  %3081 = vmatmul.bf16.gmra.mxu3 %v6019_v14  ;;  %v1694_v0 = vmul.f32 0.044715, %v6026_v47  ;;  %v1751_v2 = vmul.f32 %v1687_v36, %v6015_v8  ;;  %v2164_v20 = vmul.f32 %v2100_v44, %v5944_v13  ;;  %v1622_v16 = vmul.f32 0.7978846, %v6000_v50 }
 0x17f   : > { %v1439_v5 = vpop.f32.mrf.mxu2  ;;  %3127 = vmatpush.bf16.msrb.mxu1 %v4466_v29  ;;  %5074 = vtanh.f32 %v1863_v17  ;;  %v6048_v23 = vmul.f32 0.5, %v5942_v63  ;;  %v1615_v1 = vmul.f32 0.7978846, %v6005_v18  ;;  %v2165_v44 = vmul.f32 %v2101_v12, %v5987_v58 }
 0x180   : > { %v1440_v28 = vadd.f32 %v1439_v5, %v5897_v49  ;;  %v1758_v59 = vmul.f32 %v1694_v0, %v6026_v47  ;;  %v2156_v5 = vmul.f32 %v2092_v51, %v5915_v19  ;;  %v1815_v29 = vadd.f32 1.0, %v1751_v2 }
 0x181   : > { %v1468_v57 = vpop.f32.mrf.mxu3  ;;  %v1383_v34 = vpop.f32.mrf.mxu0  ;;  %v1878_v7 = vmul.f32 %v1814_v11, %v1622_v16  ;;  %v2157_v61 = vmul.f32 %v2093_v15, %v5956_v45  ;;  %v1871_v62 = vmul.f32 %v1807_v39, %v1615_v1  ;;  %v1623_v19 = vmul.f32 0.7978846, %v6015_v8 }
 0x182   : > { %v1384_v9 = vadd.f32 %v1383_v34, %v5884_v60  ;;  %v6037_v53 = vadd.f32 %v1468_v57, %v1440_v28  ;;  %v5071_v28 = vpop.eup %5070  ;;  %v1926_v57 = vmul.f32 0.5, %v5950_v46  ;;  %v6056_v63 = vpack.c.bf16 %v2164_v20, %v2156_v5  ;;  %v4872_v5 = vld [vmem:[#allocation8 + $0x284] sm:$0xf0] }
 0x183   : > { %v1412_v37 = vpop.f32.mrf.mxu1  ;;  %v5073_v42 = vpop.eup %5072  ;;  %v1630_v51 = vmul.f32 0.7978846, %v6026_v47  ;;  %v1822_v0 = vadd.f32 1.0, %v1758_v59  ;;  %5076 = vtanh.f32 %v1870_v3  ;;  %v6064_v45 = vpack.c.bf16 %v2165_v44, %v2157_v61  ;;  %v4393_v59 = vld [vmem:[#allocation8 + $0x200] sm:$0xf] }
 0x184   : > { %v6040_v30 = vadd.f32 %v1412_v37, %v1384_v9  ;;  %v1695_v24 = vmul.f32 0.044715, %v6037_v53  ;;  %6612 = vst [vmem:[#allocation15_spill] sm:$0xff] %v6056_v63  ;;  %v2046_v37 = vadd.f32 1.0, %v5069_v10  ;;  %5078 = vtanh.f32 %v1878_v7 }
 0x185   : > { %v5075_v58 = vpop.eup %5074  ;;  %6613 = vst [vmem:[#allocation16_spill] sm:$0xff] %v6064_v45  ;;  %v1879_v15 = vmul.f32 %v1815_v29, %v1623_v19  ;;  %v2054_v2 = vadd.f32 1.0, %v5073_v42  ;;  %v1927_v39 = vmul.f32 0.5, %v5974_v22  ;;  %5080 = vtanh.f32 %v1871_v62  ;;  %v4856_v22 = vld [vmem:[#allocation8 + $0x204] sm:$0xf0] }
 0x186   : > { %v1702_v43 = vmul.f32 0.044715, %v6040_v30  ;;  %v1759_v36 = vmul.f32 %v1695_v24, %v6037_v53  ;;  %v1631_v24 = vmul.f32 0.7978846, %v6037_v53  ;;  %v2047_v10 = vadd.f32 1.0, %v5071_v28 }
 0x187   : > { %v1441_v13 = vpop.f32.mrf.mxu2  ;;  %v2055_v20 = vadd.f32 1.0, %v5075_v58  ;;  %v1638_v16 = vmul.f32 0.7978846, %v6040_v30  ;;  %v4394_v44 = vor.u32 %v4856_v22, %v4393_v59  ;;  %v4617_v28 = vld [vmem:[#allocation8 + $0x3c0] sm:$0xf]  ;;  %5082 = vtanh.f32 %v1879_v15 }
 0x188   : > { %v1766_v17 = vmul.f32 %v1702_v43, %v6040_v30  ;;  %v1823_v25 = vadd.f32 1.0, %v1759_v36  ;;  %v1442_v46 = vadd.f32 %v1441_v13, %v5897_v49  ;;  %v1886_v43 = vmul.f32 %v1822_v0, %v1630_v51  ;;  %v4457_v36 = vld [vmem:[#allocation8 + $0x280] sm:$0xf]  ;;  %v4545_v59 = vld [vmem:[#allocation8 + $0x330] sm:$0xf] }
 0x189   : > { %v1470_v54 = vpop.f32.mrf.mxu3  ;;  %v1386_v34 = vpop.f32.mrf.mxu0  ;;  %v4458_v7 = vor.u32 %v4872_v5, %v4457_v36  ;;  %v2110_v62 = vmul.f32 %v2046_v37, %v5997_v4  ;;  %v2118_v42 = vmul.f32 %v2054_v2, %v1926_v57  ;;  %v1934_v0 = vmul.f32 0.5, %v5993_v55  ;;  %3099 = vmatpush.bf16.msrb.mxu0 %v4394_v44  ;;  %v4609_v5 = vld [vmem:[#allocation8 + $0x3b0] sm:$0xf] }
 0x18a   : > { %v1387_v12 = vadd.f32 %v1386_v34, %v5884_v60  ;;  %v1830_v11 = vadd.f32 1.0, %v1766_v17  ;;  %v6072_v3 = vadd.f32 %v1470_v54, %v1442_v46  ;;  %v1887_v29 = vmul.f32 %v1823_v25, %v1631_v24  ;;  %v5077_v17 = vpop.eup %5076  ;;  %v4912_v34 = vld [vmem:[#allocation8 + $0x3c4] sm:$0xf0] }
 0x18b   : > { %v1415_v9 = vpop.f32.mrf.mxu1  ;;  %v4618_v51 = vor.u32 %v4912_v34, %v4617_v28  ;;  %v2111_v58 = vmul.f32 %v2047_v10, %v6048_v23  ;;  %v2119_v25 = vmul.f32 %v2055_v20, %v1927_v39  ;;  %3128 = vmatpush.bf16.msrb.mxu1 %v4458_v7  ;;  %5084 = vtanh.f32 %v1886_v43 }
 0x18c   : > { %2999 = vmatmul.bf16.gmra.mxu0 %v5741_v48  ;;  %3057 = vmatmul.bf16.gmra.mxu2 %v6056_v63  ;;  %v6074_v1 = vadd.f32 %v1415_v9, %v1387_v12  ;;  %v1894_v61 = vmul.f32 %v1830_v11, %v1638_v16  ;;  %v5079_v9 = vpop.eup %5078  ;;  %v1703_v11 = vmul.f32 0.044715, %v6072_v3  ;;  %v2062_v57 = vadd.f32 1.0, %v5077_v17 }
 0x18d   : > { %v5081_v15 = vpop.eup %5080  ;;  %3182 = vmatpush.bf16.msrb.mxu3 %v4618_v51  ;;  %5086 = vtanh.f32 %v1887_v29  ;;  %v1942_v37 = vmul.f32 0.5, %v6000_v50  ;;  %v1935_v23 = vmul.f32 0.5, %v6005_v18  ;;  %v2070_v2 = vadd.f32 1.0, %v5079_v9 }
 0x18e   : > { %3028 = vmatmul.bf16.gmra.mxu1 %v5814_v41  ;;  %3086 = vmatmul.bf16.gmra.mxu3 %v6064_v45  ;;  %v1710_v4 = vmul.f32 0.044715, %v6074_v1  ;;  %5088 = vtanh.f32 %v1894_v61  ;;  %v1943_v39 = vmul.f32 0.5, %v6015_v8  ;;  %v6089_v24 = vmul.f32 0.5, %v6026_v47  ;;  %v5083_v10 = vpop.eup %5082  ;;  %v4894_v8 = vld [vmem:[#allocation8 + $0x334] sm:$0xf0] }
 0x18f   : > { %v1444_v13 = vpop.f32.mrf.mxu2  ;;  %v6092_v16 = vperm.slane %v5881_v6, 6  ;;  %v2063_v43 = vadd.f32 1.0, %v5081_v15  ;;  %v6095_v50 = vmul.f32 0.5, %v6037_v53  ;;  %v1767_v18 = vmul.f32 %v1703_v11, %v6072_v3  ;;  %v4910_v47 = vld [vmem:[#allocation8 + $0x3b4] sm:$0xf0] }
 0x190   : > { %v1445_v55 = vadd.f32 %v1444_v13, %v5897_v49  ;;  %v1774_v22 = vmul.f32 %v1710_v4, %v6074_v1  ;;  %v6099_v36 = vpack.c.bf16 %v2119_v25, %v2111_v58  ;;  %v2126_v29 = vmul.f32 %v2062_v57, %v1934_v0 }
 0x191   : > { %v1473_v19 = vpop.f32.mrf.mxu3  ;;  %v1388_v54 = vpop.f32.mrf.mxu0  ;;  %v4546_v7 = vor.u32 %v4894_v8, %v4545_v59  ;;  %v4610_v28 = vor.u32 %v4910_v47, %v4609_v5  ;;  %v1958_v34 = vmul.f32 0.5, %v6040_v30  ;;  %v1639_v61 = vmul.f32 0.7978846, %v6072_v3  ;;  %v4537_v5 = vld [vmem:[#allocation8 + $0x320] sm:$0xf] }
 0x192   : > { %v1389_v46 = vadd.f32 %v1388_v54, %v5884_v60  ;;  %v6085_v60 = vpack.c.bf16 %v2118_v42, %v2110_v62  ;;  %v5085_v17 = vpop.eup %5084  ;;  %v6101_v13 = vadd.f32 %v1473_v19, %v1445_v55  ;;  %v2134_v51 = vmul.f32 %v2070_v2, %v1942_v37  ;;  %v4892_v47 = vld [vmem:[#allocation8 + $0x324] sm:$0xf0] }
 0x193   : > { %v1417_v12 = vpop.f32.mrf.mxu1  ;;  %v5087_v53 = vpop.eup %5086  ;;  %v2071_v9 = vadd.f32 1.0, %v5083_v10  ;;  %v1646_v0 = vmul.f32 0.7978846, %v6074_v1  ;;  %3154 = vmatpush.bf16.msrb.mxu2 %v4546_v7  ;;  %3183 = vmatpush.bf16.msrb.mxu3 %v4610_v28  ;;  %v6109_v30 = vmul.f32 0.5, %v6072_v3  ;;  %v1838_v15 = vadd.f32 1.0, %v1774_v22 }
 0x194   : > { %v1418_v20 = vadd.f32 %v1417_v12, %v1389_v46  ;;  %v5089_v58 = vpop.eup %5088  ;;  %v1831_v12 = vadd.f32 1.0, %v1767_v18  ;;  %v6117_v4 = vmul.f32 0.7978846, %v6101_v13  ;;  %v2078_v55 = vadd.f32 1.0, %v5085_v17  ;;  %v4601_v17 = vld [vmem:[#allocation8 + $0x3a0] sm:$0xf] }
 0x195   : > { %v6123_v37 = vmul.f32 0.5, %v6074_v1  ;;  %v1711_v3 = vmul.f32 0.044715, %v6101_v13  ;;  %v2086_v10 = vadd.f32 1.0, %v5089_v58  ;;  %v2079_v59 = vadd.f32 1.0, %v5087_v53 }
 0x196   : > { %v1718_v25 = vmul.f32 0.044715, %v1418_v20  ;;  %v1654_v2 = vmul.f32 0.7978846, %v1418_v20  ;;  %v6129_v8 = vmul.f32 0.5, %v1418_v20  ;;  %v2127_v1 = vmul.f32 %v2063_v43, %v1935_v23 }
 0x197   : > { %v1446_v44 = vpop.f32.mrf.mxu2  ;;  %v2135_v7 = vmul.f32 %v2071_v9, %v1943_v39  ;;  %v1895_v28 = vmul.f32 %v1831_v12, %v1639_v61  ;;  %v4908_v53 = vld [vmem:[#allocation8 + $0x3a4] sm:$0xf0]  ;;  %v4529_v58 = vld [vmem:[#allocation8 + $0x310] sm:$0xf]  ;;  %v4906_v39 = vld [vmem:[#allocation8 + $0x394] sm:$0xf0]  ;;  %v2150_v43 = vmul.f32 %v2086_v10, %v1958_v34 }
 0x198   : > { %v1447_v62 = vadd.f32 %v1446_v44, %v5897_v49  ;;  %v6114_v49 = vperm.slane %v5881_v6, 7  ;;  %v1782_v6 = vmul.f32 %v1718_v25, %v1418_v20  ;;  %v6131_v44 = vpack.c.bf16 %v2134_v51, %v2126_v29  ;;  %v4890_v25 = vld [vmem:[#allocation8 + $0x314] sm:$0xf0]  ;;  %v4593_v23 = vld [vmem:[#allocation8 + $0x390] sm:$0xf] }
 0x199   : > { %v1475_v42 = vpop.f32.mrf.mxu3  ;;  %v1487_v54 = vpop.f32.mrf.mxu0  ;;  %v4602_v51 = vor.u32 %v4908_v53, %v4601_v17  ;;  %v4904_v17 = vld [vmem:[#allocation8 + $0x384] sm:$0xf0]  ;;  %5090 = vtanh.f32 %v1895_v28  ;;  %v4805_v53 = vld [vmem:[#allocation8 + $0x74] sm:$0xf]  ;;  %v6143_v10 = vpack.c.bf16 %v2135_v7, %v2127_v1 }
 0x19a   : > { %v1488_v19 = vadd.f32 %v1487_v54, %v6092_v16  ;;  %v6111_v11 = vadd.f32 %v1475_v42, %v1447_v62  ;;  %v4538_v54 = vor.u32 %v4892_v47, %v4537_v5  ;;  %v1846_v61 = vadd.f32 1.0, %v1782_v6  ;;  %v4521_v47 = vld [vmem:[#allocation8 + $0x300] sm:$0xf] }
 0x19b   : > { %v1516_v46 = vpop.f32.mrf.mxu1  ;;  %v4530_v5 = vor.u32 %v4890_v25, %v4529_v58  ;;  %3184 = vmatpush.bf16.msrb.mxu3 %v4602_v51  ;;  %v6146_v6 = vmul.f32 %v2079_v59, %v6095_v50  ;;  %v4259_v58 = vld [vmem:[#allocation8 + $0xf8] sm:$0xf0] }
 0x19c   : > { %v6119_v57 = vadd.f32 %v1516_v46, %v1488_v19  ;;  %3100 = vmatmul.bf16.vlgmr.msrb.gmra.mxu0 %v6085_v60  ;;  %v1719_v18 = vmul.f32 0.044715, %v6111_v11  ;;  %v2142_v19 = vmul.f32 %v2078_v55, %v6089_v24  ;;  %v1902_v46 = vmul.f32 %v1838_v15, %v1646_v0  ;;  %3155 = vmatpush.bf16.msrb.mxu2 %v4538_v54  ;;  %v4888_v24 = vld [vmem:[#allocation8 + $0x304] sm:$0xf0]  ;;  %v4821_v54 = vld [vmem:[#allocation8 + $0xf4] sm:$0xf] }
 0x19d   : > { %v1775_v0 = vmul.f32 %v1711_v3, %v6101_v13  ;;  %v4594_v55 = vor.u32 %v4906_v39, %v4593_v23  ;;  %v4522_v1 = vor.u32 %v4888_v24, %v4521_v47  ;;  %v1910_v7 = vmul.f32 %v1846_v61, %v1654_v2 }
 0x19e   : > { %3129 = vmatmul.bf16.vlgmr.msrb.gmra.mxu1 %v6099_v36  ;;  %v1664_v22 = vmul.f32 0.044715, %v6119_v57  ;;  %v1600_v20 = vmul.f32 0.7978846, %v6119_v57  ;;  %5092 = vtanh.f32 %v1902_v46  ;;  %v1783_v28 = vmul.f32 %v1719_v18, %v6111_v11 }
 0x19f   : > { %v1545_v42 = vpop.f32.mrf.mxu2  ;;  %v1839_v51 = vadd.f32 1.0, %v1775_v0  ;;  %3185 = vmatpush.bf16.msrb.mxu3 %v4594_v55  ;;  %v4262_v46 = vor.u32 %v4821_v54, %v4259_v58  ;;  %v6160_v47 = vmul.f32 0.5, %v6101_v13  ;;  %v4187_v54 = vld [vmem:[#allocation8 + $0x68] sm:$0xf0] }
 0x1a0   : > { %v1728_v62 = vmul.f32 %v1664_v22, %v6119_v57  ;;  %v1546_v45 = vadd.f32 %v1545_v42, %v6114_v49  ;;  %v4585_v42 = vld [vmem:[#allocation8 + $0x380] sm:$0xf]  ;;  %3156 = vmatpush.bf16.msrb.mxu2 %v4530_v5  ;;  %v4323_v5 = vld [vmem:[#allocation8 + $0x178] sm:$0xf0]  ;;  %v1847_v0 = vadd.f32 1.0, %v1783_v28 }
 0x1a1   : > { %v1574_v63 = vpop.f32.mrf.mxu3  ;;  %v1489_v29 = vpop.f32.mrf.mxu0  ;;  %v4586_v59 = vor.u32 %v4904_v17, %v4585_v42  ;;  %3237 = vmatpush.bf16.msra.mxu1 %v4262_v46  ;;  %v1903_v13 = vmul.f32 %v1839_v51, %v6117_v4  ;;  %v6174_v4 = vmul.f32 0.5, %v6111_v11  ;;  %v6177_v51 = vmul.f32 0.5, %v6119_v57 }
 0x1a2   : > { %v1792_v9 = vadd.f32 1.0, %v1728_v62  ;;  %v1490_v12 = vadd.f32 %v1489_v29, %v6092_v16  ;;  %v6139_v15 = vadd.f32 %v1574_v63, %v1546_v45  ;;  %v4195_v62 = vld [vmem:[#allocation8 + $0x78] sm:$0xf0]  ;;  %v6149_v45 = vpack.c.bf16 %v2150_v43, %v2142_v19  ;;  %v5091_v43 = vpop.eup %5090 }
 0x1a3   : > { %v1518_v22 = vpop.f32.mrf.mxu1  ;;  %v4198_v25 = vor.u32 %v4805_v53, %v4195_v62  ;;  %v4803_v62 = vld [vmem:[#allocation8 + $0x64] sm:$0xf]  ;;  %3186 = vmatpush.bf16.msrb.mxu3 %v4586_v59  ;;  %v2087_v59 = vadd.f32 1.0, %v5091_v43 }
 0x1a4   : > { %v6141_v34 = vadd.f32 %v1518_v22, %v1490_v12  ;;  %v1856_v3 = vmul.f32 %v1792_v9, %v1600_v20  ;;  %v1665_v63 = vmul.f32 0.044715, %v6139_v15  ;;  %v1655_v20 = vmul.f32 0.7978846, %v6111_v11  ;;  %v4837_v22 = vld [vmem:[#allocation8 + $0x174] sm:$0xf]  ;;  %v5093_v24 = vpop.eup %5092  ;;  %3157 = vmatpush.bf16.msrb.mxu2 %v4522_v1 }
 0x1a5   : > { %3208 = vmatpush.bf16.msra.mxu0 %v4198_v25  ;;  %v1601_v19 = vmul.f32 0.7978846, %v6139_v15  ;;  %v4326_v53 = vor.u32 %v4837_v22, %v4323_v5  ;;  %v4819_v25 = vld [vmem:[#allocation8 + $0xe4] sm:$0xf]  ;;  %v4817_v5 = vld [vmem:[#allocation8 + $0xd4] sm:$0xf] }
 0x1a6   : > { %v1672_v29 = vmul.f32 0.044715, %v6141_v34  ;;  %v1729_v50 = vmul.f32 %v1665_v63, %v6139_v15  ;;  %v1608_v23 = vmul.f32 0.7978846, %v6141_v34  ;;  %5094 = vtanh.f32 %v1856_v3 }
 0x1a7   : > { %v1547_v39 = vpop.f32.mrf.mxu2  ;;  %v4190_v63 = vor.u32 %v4803_v62, %v4187_v54  ;;  %5096 = vtanh.f32 %v1910_v7 }
 0x1a8   : > { %v1736_v18 = vmul.f32 %v1672_v29, %v6141_v34  ;;  %v1793_v9 = vadd.f32 1.0, %v1729_v50  ;;  %v1548_v2 = vadd.f32 %v1547_v39, %v6114_v49  ;;  %v4251_v29 = vld [vmem:[#allocation8 + $0xe8] sm:$0xf0]  ;;  %v4853_v50 = vld [vmem:[#allocation8 + $0x1f4] sm:$0xf]  ;;  %3266 = vmatpush.bf16.msra.mxu2 %v4326_v53  ;;  %v6185_v53 = vmul.f32 0.5, %v6139_v15 }
 0x1a9   : > { %v1576_v61 = vpop.f32.mrf.mxu3  ;;  %v1492_v12 = vpop.f32.mrf.mxu0  ;;  %v4254_v1 = vor.u32 %v4819_v25, %v4251_v29  ;;  %v4801_v39 = vld [vmem:[#allocation8 + $0x54] sm:$0xf]  ;;  %3209 = vmatpush.bf16.msra.mxu0 %v4190_v63  ;;  %v4835_v63 = vld [vmem:[#allocation8 + $0x164] sm:$0xf]  ;;  %v4315_v25 = vld [vmem:[#allocation8 + $0x168] sm:$0xf0] }
 0x1aa   : > { %v1800_v55 = vadd.f32 1.0, %v1736_v18  ;;  %v1493_v42 = vadd.f32 %v1492_v12, %v6092_v16  ;;  %v1857_v58 = vmul.f32 %v1793_v9, %v1601_v19  ;;  %v6163_v3 = vadd.f32 %v1576_v61, %v1548_v2  ;;  %v4387_v18 = vld [vmem:[#allocation8 + $0x1f8] sm:$0xf0] }
 0x1ab   : > { %v1521_v17 = vpop.f32.mrf.mxu1  ;;  %v4179_v12 = vld [vmem:[#allocation8 + $0x58] sm:$0xf0]  ;;  %v6171_v9 = vadd.f32 1.0, %v5093_v24  ;;  %3238 = vmatpush.bf16.msra.mxu1 %v4254_v1  ;;  %v1911_v2 = vmul.f32 %v1847_v0, %v1655_v20  ;;  %v4390_v22 = vor.u32 %v4853_v50, %v4387_v18  ;;  %v4318_v15 = vor.u32 %v4835_v63, %v4315_v25 }
 0x1ac   : > { %v1864_v46 = vmul.f32 %v1800_v55, %v1608_v23  ;;  %v6166_v28 = vadd.f32 %v1521_v17, %v1493_v42  ;;  %3105 = vmatmul.bf16.gmra.mxu0 %v6131_v44  ;;  %v1673_v19 = vmul.f32 0.044715, %v6163_v3  ;;  %v5095_v7 = vpop.eup %5094  ;;  %v4182_v43 = vor.u32 %v4801_v39, %v4179_v12  ;;  %v4243_v24 = vld [vmem:[#allocation8 + $0xd8] sm:$0xf0]  ;;  %v4799_v39 = vld [vmem:[#allocation8 + $0x44] sm:$0xf] }
 0x1ad   : > { %v1609_v55 = vmul.f32 0.7978846, %v6163_v3  ;;  %v4246_v17 = vor.u32 %v4817_v5, %v4243_v24  ;;  %3295 = vmatpush.bf16.msra.mxu3 %v4390_v22  ;;  %v5097_v29 = vpop.eup %5096  ;;  %v2048_v50 = vadd.f32 1.0, %v5095_v7  ;;  %v4171_v12 = vld [vmem:[#allocation8 + $0x48] sm:$0xf0]  ;;  %v1928_v5 = vmul.f32 0.5, %v6141_v34  ;;  %3267 = vmatpush.bf16.msra.mxu2 %v4318_v15 }
 0x1ae   : > { %3134 = vmatmul.bf16.gmra.mxu1 %v6143_v10  ;;  %5098 = vtanh.f32 %v1864_v46  ;;  %v1680_v23 = vmul.f32 0.044715, %v6166_v28  ;;  %v1737_v61 = vmul.f32 %v1673_v19, %v6163_v3  ;;  %v1616_v11 = vmul.f32 0.7978846, %v6166_v28  ;;  %3210 = vmatpush.bf16.msra.mxu0 %v4182_v43  ;;  %v4851_v22 = vld [vmem:[#allocation8 + $0x1e4] sm:$0xf] }
 0x1af   : > { %5100 = vtanh.f32 %v1857_v58  ;;  %v1550_v42 = vpop.f32.mrf.mxu2  ;;  %v6189_v58 = vmul.f32 %v2087_v59, %v6109_v30  ;;  %3239 = vmatpush.bf16.msra.mxu1 %v4246_v17  ;;  %v4815_v30 = vld [vmem:[#allocation8 + $0xc4] sm:$0xf]  ;;  %v4235_v59 = vld [vmem:[#allocation8 + $0xc8] sm:$0xf0]  ;;  %v4163_v63 = vld [vmem:[#allocation8 + $0x38] sm:$0xf0]  ;;  %v2112_v25 = vmul.f32 %v2048_v50, %v6177_v51 }
 0x1b0   : > { %v1744_v57 = vmul.f32 %v1680_v23, %v6166_v28  ;;  %v1801_v20 = vadd.f32 1.0, %v1737_v61  ;;  %v1551_v0 = vadd.f32 %v1550_v42, %v6114_v49  ;;  %v4174_v61 = vor.u32 %v4799_v39, %v4171_v12  ;;  %v4813_v15 = vld [vmem:[#allocation8 + $0xb4] sm:$0xf]  ;;  %v4227_v39 = vld [vmem:[#allocation8 + $0xb8] sm:$0xf0] }
 0x1b1   : > { %v1579_v62 = vpop.f32.mrf.mxu3  ;;  %v1494_v54 = vpop.f32.mrf.mxu0  ;;  %5102 = vtanh.f32 %v1903_v13  ;;  %v4238_v24 = vor.u32 %v4815_v30, %v4235_v59 }
 0x1b2   : > { %v1808_v46 = vadd.f32 1.0, %v1744_v57  ;;  %v1495_v1 = vadd.f32 %v1494_v54, %v6092_v16  ;;  %v1865_v19 = vmul.f32 %v1801_v20, %v1609_v55  ;;  %v6192_v23 = vadd.f32 %v1579_v62, %v1551_v0  ;;  %v4379_v57 = vld [vmem:[#allocation8 + $0x1e8] sm:$0xf0]  ;;  %3211 = vmatpush.bf16.msra.mxu0 %v4174_v61  ;;  %v4797_v0 = vld [vmem:[#allocation8 + $0x34] sm:$0xf] }
 0x1b3   : > { %v1523_v18 = vpop.f32.mrf.mxu1  ;;  %5104 = vtanh.f32 %v1911_v2  ;;  %v2102_v20 = vadd.f32 1.0, %v5097_v29  ;;  %v1929_v62 = vmul.f32 0.5, %v6163_v3  ;;  %3240 = vmatpush.bf16.msra.mxu1 %v4238_v24  ;;  %v4382_v34 = vor.u32 %v4851_v22, %v4379_v57 }
 0x1b4   : > { %v5099_v43 = vpop.eup %5098  ;;  %v6195_v7 = vadd.f32 %v1523_v18, %v1495_v1  ;;  %5106 = vtanh.f32 %v1865_v19  ;;  %v1681_v55 = vmul.f32 0.044715, %v6192_v23  ;;  %v1872_v54 = vmul.f32 %v1808_v46, %v1616_v11 }
 0x1b5   : > { %v5101_v42 = vpop.eup %5100  ;;  %v2056_v17 = vadd.f32 1.0, %v5099_v43  ;;  %v1617_v2 = vmul.f32 0.7978846, %v6192_v23  ;;  %3296 = vmatpush.bf16.msra.mxu3 %v4382_v34  ;;  %v4166_v19 = vor.u32 %v4797_v0, %v4163_v63  ;;  %v4230_v61 = vor.u32 %v4813_v15, %v4227_v39  ;;  %v4833_v43 = vld [vmem:[#allocation8 + $0x154] sm:$0xf] }
 0x1b6   : > { %v1688_v13 = vmul.f32 0.044715, %v6195_v7  ;;  %v1745_v18 = vmul.f32 %v1681_v55, %v6192_v23  ;;  %v1624_v29 = vmul.f32 0.7978846, %v6195_v7  ;;  %v2049_v11 = vadd.f32 1.0, %v5101_v42 }
 0x1b7   : > { %v2120_v1 = vmul.f32 %v2056_v17, %v1928_v5  ;;  %v1552_v3 = vpop.f32.mrf.mxu2  ;;  %v5103_v30 = vpop.eup %5102  ;;  %v4307_v5 = vld [vmem:[#allocation8 + $0x158] sm:$0xf0]  ;;  %5108 = vtanh.f32 %v1872_v54  ;;  %3212 = vmatpush.bf16.msra.mxu0 %v4166_v19  ;;  %3241 = vmatpush.bf16.msra.mxu1 %v4230_v61  ;;  %v4155_v42 = vld [vmem:[#allocation8 + $0x28] sm:$0xf0]  ;;  %v4811_v15 = vld [vmem:[#allocation8 + $0xa4] sm:$0xf] }
 0x1b8   : > { %v1752_v12 = vmul.f32 %v1688_v13, %v6195_v7  ;;  %v1809_v46 = vadd.f32 1.0, %v1745_v18  ;;  %v1553_v51 = vadd.f32 %v1552_v3, %v6114_v49  ;;  %v4310_v0 = vor.u32 %v4833_v43, %v4307_v5  ;;  %v4795_v13 = vld [vmem:[#allocation8 + $0x24] sm:$0xf]  ;;  %v4219_v39 = vld [vmem:[#allocation8 + $0xa8] sm:$0xf0] }
 0x1b9   : > { %v1581_v50 = vpop.f32.mrf.mxu3  ;;  %v1497_v59 = vpop.f32.mrf.mxu0  ;;  %v6206_v22 = vpack.c.bf16 %v2120_v1, %v2112_v25  ;;  %v6214_v25 = vpack.c.bf16 %v6189_v58, %v6146_v6  ;;  %v4158_v18 = vor.u32 %v4795_v13, %v4155_v42  ;;  %v4222_v61 = vor.u32 %v4811_v15, %v4219_v39  ;;  %v4211_v13 = vld [vmem:[#allocation8 + $0x98] sm:$0xf0]  ;;  %v4831_v39 = vld [vmem:[#allocation8 + $0x144] sm:$0xf] }
 0x1ba   : > { %v5105_v24 = vpop.eup %5104  ;;  %v1816_v57 = vadd.f32 1.0, %v1752_v12  ;;  %v1498_v17 = vadd.f32 %v1497_v59, %v6092_v16  ;;  %v6209_v63 = vadd.f32 %v1581_v50, %v1553_v51  ;;  %v1873_v1 = vmul.f32 %v1809_v46, %v1617_v2  ;;  %v4849_v12 = vld [vmem:[#allocation8 + $0x1d4] sm:$0xf]  ;;  %3268 = vmatpush.bf16.msra.mxu2 %v4310_v0  ;;  %v4371_v51 = vld [vmem:[#allocation8 + $0x1d8] sm:$0xf0] }
 0x1bb   : > { %v1526_v55 = vpop.f32.mrf.mxu1  ;;  %v5107_v34 = vpop.eup %5106  ;;  %3158 = vmatmul.bf16.vlgmr.msrb.gmra.mxu2 %v6206_v22  ;;  %v4793_v50 = vld [vmem:[#allocation8 + $0x14] sm:$0xf]  ;;  %v2166_v6 = vmul.f32 %v2102_v20, %v6129_v8  ;;  %v2095_v58 = vadd.f32 1.0, %v5103_v30  ;;  %v2103_v2 = vadd.f32 1.0, %v5105_v24  ;;  %v2113_v46 = vmul.f32 %v2049_v11, %v6185_v53  ;;  %3213 = vmatpush.bf16.msra.mxu0 %v4158_v18 }
 0x1bc   : > { %v2057_v54 = vadd.f32 1.0, %v5107_v34  ;;  %v6216_v3 = vadd.f32 %v1526_v55, %v1498_v17  ;;  %3110 = vmatmul.bf16.gmra.mxu0 %v6149_v45  ;;  %v1880_v19 = vmul.f32 %v1816_v57, %v1624_v29  ;;  %v1689_v59 = vmul.f32 0.044715, %v6209_v63  ;;  %3242 = vmatpush.bf16.msra.mxu1 %v4222_v61  ;;  %v4147_v29 = vld [vmem:[#allocation8 + $0x18] sm:$0xf0] }
 0x1bd   : > { %v4374_v17 = vor.u32 %v4849_v12, %v4371_v51  ;;  %v4150_v55 = vor.u32 %v4793_v50, %v4147_v29  ;;  %v4809_v0 = vld [vmem:[#allocation8 + $0x94] sm:$0xf]  ;;  %v5109_v42 = vpop.eup %5108  ;;  %v1625_v8 = vmul.f32 0.7978846, %v6209_v63  ;;  %v6233_v15 = vmul.f32 %v2095_v58, %v6160_v47  ;;  %v4299_v12 = vld [vmem:[#allocation8 + $0x148] sm:$0xf0] }
 0x1be   : > { %3139 = vmatmul.bf16.gmra.mxu1 %v6214_v25  ;;  %v2121_v43 = vmul.f32 %v2057_v54, %v1929_v62  ;;  %v1696_v5 = vmul.f32 0.044715, %v6216_v3  ;;  %5110 = vtanh.f32 %v1880_v19  ;;  %v1753_v57 = vmul.f32 %v1689_v59, %v6209_v63  ;;  %v4791_v59 = vld [vmem:[#allocation8 + $0x4] sm:$0xf]  ;;  %v4139_v58 = vld [vmem:[#allocation8 + $0x8] sm:$0xf0] }
 0x1bf   : > { %5112 = vtanh.f32 %v1873_v1  ;;  %v1555_v53 = vpop.f32.mrf.mxu2  ;;  %v4214_v30 = vor.u32 %v4809_v0, %v4211_v13  ;;  %v2158_v1 = vmul.f32 %v6171_v9, %v6123_v37  ;;  %3297 = vmatpush.bf16.msra.mxu3 %v4374_v17  ;;  %v1632_v54 = vmul.f32 0.7978846, %v6216_v3  ;;  %3214 = vmatpush.bf16.msra.mxu0 %v4150_v55  ;;  %v4203_v0 = vld [vmem:[#allocation8 + $0x88] sm:$0xf0]  ;;  %v4847_v13 = vld [vmem:[#allocation8 + $0x1c4] sm:$0xf] }
 0x1c0   : > { %v1760_v20 = vmul.f32 %v1696_v5, %v6216_v3  ;;  %v6227_v62 = vpack.c.bf16 %v2121_v43, %v2113_v46  ;;  %v1817_v11 = vadd.f32 1.0, %v1753_v57  ;;  %v1556_v24 = vadd.f32 %v1555_v53, %v6114_v49  ;;  %v4807_v43 = vld [vmem:[#allocation8 + $0x84] sm:$0xf] }
 0x1c1   : > { %v1584_v34 = vpop.f32.mrf.mxu3  ;;  %v1499_v18 = vpop.f32.mrf.mxu0  ;;  %v4302_v50 = vor.u32 %v4831_v39, %v4299_v12  ;;  %v2064_v37 = vadd.f32 1.0, %v5109_v42  ;;  %v6240_v9 = vpack.c.bf16 %v2166_v6, %v2158_v1  ;;  %3243 = vmatpush.bf16.msra.mxu1 %v4214_v30  ;;  %v1936_v57 = vmul.f32 0.5, %v6166_v28  ;;  %v4363_v28 = vld [vmem:[#allocation8 + $0x1c8] sm:$0xf0]  ;;  %v4829_v1 = vld [vmem:[#allocation8 + $0x134] sm:$0xf] }
 0x1c2   : > { %v1824_v19 = vadd.f32 1.0, %v1760_v20  ;;  %v1500_v61 = vadd.f32 %v1499_v18, %v6092_v16  ;;  %3187 = vmatmul.bf16.vlgmr.msrb.gmra.mxu3 %v6227_v62  ;;  %v6238_v46 = vadd.f32 %v1584_v34, %v1556_v24  ;;  %v1881_v47 = vmul.f32 %v1817_v11, %v1625_v8  ;;  %v4291_v39 = vld [vmem:[#allocation8 + $0x138] sm:$0xf0] }
 0x1c3   : > { %v1528_v51 = vpop.f32.mrf.mxu1  ;;  %v2167_v17 = vmul.f32 %v2103_v2, %v6174_v4  ;;  %3269 = vmatpush.bf16.msra.mxu2 %v4302_v50  ;;  %v4142_v55 = vor.u32 %v4791_v59, %v4139_v58  ;;  %v1944_v6 = vmul.f32 0.5, %v6195_v7  ;;  %v1937_v30 = vmul.f32 0.5, %v6192_v23  ;;  %v4845_v23 = vld [vmem:[#allocation8 + $0x1b4] sm:$0xf]  ;;  %v4355_v59 = vld [vmem:[#allocation8 + $0x1b8] sm:$0xf0] }
 0x1c4   : > { %v5111_v5 = vpop.eup %5110  ;;  %v6242_v29 = vadd.f32 %v1528_v51, %v1500_v61  ;;  %v1697_v42 = vmul.f32 0.044715, %v6238_v46  ;;  %5114 = vtanh.f32 %v1881_v47  ;;  %v4206_v11 = vor.u32 %v4807_v43, %v4203_v0 }
 0x1c5   : > { %v5113_v20 = vpop.eup %5112  ;;  %v2072_v8 = vadd.f32 1.0, %v5111_v5  ;;  %3215 = vmatpush.bf16.msra.mxu0 %v4142_v55  ;;  %v1888_v24 = vmul.f32 %v1824_v19, %v1632_v54  ;;  %v2128_v2 = vmul.f32 %v2064_v37, %v1936_v57  ;;  %v4366_v18 = vor.u32 %v4847_v13, %v4363_v28 }
 0x1c6   : > { %v1704_v53 = vmul.f32 0.044715, %v6242_v29  ;;  %v1761_v4 = vmul.f32 %v1697_v42, %v6238_v46  ;;  %v1945_v61 = vmul.f32 0.5, %v6209_v63  ;;  %v2065_v51 = vadd.f32 1.0, %v5113_v20  ;;  %3244 = vmatpush.bf16.msra.mxu1 %v4206_v11 }
 0x1c7   : > { %v2136_v34 = vmul.f32 %v2072_v8, %v1944_v6  ;;  %v1557_v7 = vpop.f32.mrf.mxu2  ;;  %v4294_v50 = vor.u32 %v4829_v1, %v4291_v39  ;;  %3298 = vmatpush.bf16.msra.mxu3 %v4366_v18  ;;  %v4358_v43 = vor.u32 %v4845_v23, %v4355_v59  ;;  %v1640_v5 = vmul.f32 0.7978846, %v6242_v29  ;;  %v4827_v6 = vld [vmem:[#allocation8 + $0x124] sm:$0xf]  ;;  %v4283_v8 = vld [vmem:[#allocation8 + $0x128] sm:$0xf0] }
 0x1c8   : > { %v1768_v12 = vmul.f32 %v1704_v53, %v6242_v29  ;;  %v1825_v47 = vadd.f32 1.0, %v1761_v4  ;;  %v1558_v54 = vadd.f32 %v1557_v7, %v6114_v49  ;;  %5116 = vtanh.f32 %v1888_v24  ;;  %v4843_v4 = vld [vmem:[#allocation8 + $0x1a4] sm:$0xf] }
 0x1c9   : > { %v1586_v19 = vpop.f32.mrf.mxu3  ;;  %v1502_v58 = vpop.f32.mrf.mxu0  ;;  %v6254_v37 = vpack.c.bf16 %v2136_v34, %v2128_v2  ;;  %3270 = vmatpush.bf16.msra.mxu2 %v4294_v50  ;;  %v1633_v13 = vmul.f32 0.7978846, %v6238_v46  ;;  %v6263_v42 = vpack.c.bf16 %v2167_v17, %v6233_v15  ;;  %v4286_v24 = vor.u32 %v4827_v6, %v4283_v8  ;;  %v4347_v2 = vld [vmem:[#allocation8 + $0x1a8] sm:$0xf0] }
 0x1ca   : > { %v1832_v57 = vadd.f32 1.0, %v1768_v12  ;;  %v1503_v55 = vadd.f32 %v1502_v58, %v6092_v16  ;;  %v5115_v0 = vpop.eup %5114  ;;  %v6259_v20 = vadd.f32 %v1586_v19, %v1558_v54  ;;  %v2129_v17 = vmul.f32 %v2065_v51, %v1937_v30 }
 0x1cb   : > { %v1531_v63 = vpop.f32.mrf.mxu1  ;;  %3163 = vmatmul.bf16.gmra.mxu2 %v6254_v37  ;;  %v2073_v11 = vadd.f32 1.0, %v5115_v0  ;;  %v1889_v18 = vmul.f32 %v1825_v47, %v1633_v13  ;;  %3299 = vmatpush.bf16.msra.mxu3 %v4358_v43  ;;  %v4350_v12 = vor.u32 %v4843_v4, %v4347_v2  ;;  %v4825_v0 = vld [vmem:[#allocation8 + $0x114] sm:$0xf]  ;;  %v4275_v13 = vld [vmem:[#allocation8 + $0x118] sm:$0xf0] }
 0x1cc   : > { %v6265_v53 = vadd.f32 %v1531_v63, %v1503_v55  ;;  %3115 = vmatmul.bf16.gmra.mxu0 %v6240_v9  ;;  %v1896_v28 = vmul.f32 %v1832_v57, %v1640_v5  ;;  %v1705_v34 = vmul.f32 0.044715, %v6259_v20  ;;  %v1641_v54 = vmul.f32 0.7978846, %v6259_v20 }
 0x1cd   : > { %v2137_v1 = vmul.f32 %v2073_v11, %v1945_v61  ;;  %3271 = vmatpush.bf16.msra.mxu2 %v4286_v24  ;;  %v1952_v11 = vmul.f32 0.5, %v6216_v3  ;;  %v4841_v24 = vld [vmem:[#allocation8 + $0x194] sm:$0xf] }
 0x1ce   : > { %3144 = vmatmul.bf16.gmra.mxu1 %v6263_v42  ;;  %v1712_v15 = vmul.f32 0.044715, %v6265_v53  ;;  %5118 = vtanh.f32 %v1896_v28  ;;  %v1769_v39 = vmul.f32 %v1705_v34, %v6259_v20  ;;  %v5117_v7 = vpop.eup %5116  ;;  %v1648_v30 = vmul.f32 0.7978846, %v6265_v53  ;;  %v4339_v34 = vld [vmem:[#allocation8 + $0x198] sm:$0xf0] }
 0x1cf   : > { %v1560_v23 = vpop.f32.mrf.mxu2  ;;  %v6273_v59 = vpack.c.bf16 %v2137_v1, %v2129_v17  ;;  %5120 = vtanh.f32 %v1889_v18  ;;  %3300 = vmatpush.bf16.msra.mxu3 %v4350_v12  ;;  %v2080_v55 = vadd.f32 1.0, %v5117_v7  ;;  %v4278_v28 = vor.u32 %v4825_v0, %v4275_v13  ;;  %v4267_v0 = vld [vmem:[#allocation8 + $0x108] sm:$0xf0] }
 0x1d0   : > { %v1776_v50 = vmul.f32 %v1712_v15, %v6265_v53  ;;  %v1833_v19 = vadd.f32 1.0, %v1769_v39  ;;  %v1561_v47 = vadd.f32 %v1560_v23, %v6114_v49 }
 0x1d1   : > { %v1589_v58 = vpop.f32.mrf.mxu3  ;;  %v1504_v43 = vpop.f32.mrf.mxu0  ;;  %3272 = vmatpush.bf16.msra.mxu2 %v4278_v28  ;;  %v2144_v39 = vmul.f32 %v2080_v55, %v1952_v11  ;;  %v4839_v28 = vld [vmem:[#allocation8 + $0x184] sm:$0xf] }
 0x1d2   : > { %v1840_v61 = vadd.f32 1.0, %v1776_v50  ;;  %v1505_v51 = vadd.f32 %v1504_v43, %v6092_v16  ;;  %3192 = vmatmul.bf16.gmra.mxu3 %v6273_v59  ;;  %v6280_v57 = vadd.f32 %v1589_v58, %v1561_v47  ;;  %v1897_v63 = vmul.f32 %v1833_v19, %v1641_v54 }
 0x1d3   : > { %v1533_v5 = vpop.f32.mrf.mxu1  ;;  %v1960_v16 = vmul.f32 0.5, %v6242_v29  ;;  %v4342_v50 = vor.u32 %v4841_v24, %v4339_v34  ;;  %v1953_v47 = vmul.f32 0.5, %v6238_v46  ;;  %v1961_v46 = vmul.f32 0.5, %v6259_v20  ;;  %v4331_v24 = vld [vmem:[#allocation8 + $0x188] sm:$0xf0] }
 0x1d4   : > { %v5119_v6 = vpop.eup %5118  ;;  %v6282_v8 = vadd.f32 %v1533_v5, %v1505_v51  ;;  %v1713_v4 = vmul.f32 0.044715, %v6280_v57  ;;  %5122 = vtanh.f32 %v1897_v63  ;;  %v1904_v15 = vmul.f32 %v1840_v61, %v1648_v30 }
 0x1d5   : > { %v2088_v2 = vadd.f32 1.0, %v5119_v6  ;;  %v5121_v17 = vpop.eup %5120  ;;  %3301 = vmatpush.bf16.msra.mxu3 %v4342_v50  ;;  %v1649_v55 = vmul.f32 0.7978846, %v6280_v57 }
 0x1d6   : > { %v1720_v18 = vmul.f32 0.044715, %v6282_v8  ;;  %v1777_v1 = vmul.f32 %v1713_v4, %v6280_v57  ;;  %v1656_v58 = vmul.f32 0.7978846, %v6282_v8  ;;  %v2081_v51 = vadd.f32 1.0, %v5121_v17 }
 0x1d7   : > { %v2152_v12 = vmul.f32 %v2088_v2, %v1960_v16  ;;  %v1562_v7 = vpop.f32.mrf.mxu2  ;;  %5124 = vtanh.f32 %v1904_v15  ;;  %v4869_v15 = vld [vmem:[#allocation8 + $0x274] sm:$0xf]  ;;  %v4451_v17 = vld [vmem:[#allocation8 + $0x278] sm:$0xf0] }
 0x1d8   : > { %v1784_v3 = vmul.f32 %v1720_v18, %v6282_v8  ;;  %v1841_v23 = vadd.f32 1.0, %v1777_v1  ;;  %v1563_v54 = vadd.f32 %v1562_v7, %v6114_v49  ;;  %v4823_v49 = vld [vmem:[#allocation8 + $0x104] sm:$0xf]  ;;  %v2145_v2 = vmul.f32 %v2081_v51, %v1953_v47  ;;  %v4885_v1 = vld [vmem:[#allocation8 + $0x2f4] sm:$0xf] }
 0x1d9   : > { %v6291_v29 = vpop.f32.mrf.mxu0  ;;  %v6293_v19 = vpack.c.bf16 %v2152_v12, %v2144_v39  ;;  %v1591_v30 = vpop.f32.mrf.mxu3  ;;  %v4270_v11 = vor.u32 %v4823_v49, %v4267_v0  ;;  %v4334_v18 = vor.u32 %v4839_v28, %v4331_v24  ;;  %v4454_v20 = vor.u32 %v4869_v15, %v4451_v17  ;;  %v4515_v39 = vld [vmem:[#allocation8 + $0x2f8] sm:$0xf0]  ;;  %v4867_v49 = vld [vmem:[#allocation8 + $0x264] sm:$0xf]  ;;  %v4443_v0 = vld [vmem:[#allocation8 + $0x268] sm:$0xf0] }
 0x1da   : > { %v1848_v43 = vadd.f32 1.0, %v1784_v3  ;;  %v5123_v5 = vpop.eup %5122  ;;  %v6300_v63 = vadd.f32 %v1591_v30, %v1563_v54  ;;  %v1905_v16 = vmul.f32 %v1841_v23, %v1649_v55  ;;  %v4518_v7 = vor.u32 %v4885_v1, %v4515_v39  ;;  %v4579_v30 = vld [vmem:[#allocation8 + $0x378] sm:$0xf0]  ;;  %v4507_v28 = vld [vmem:[#allocation8 + $0x2e8] sm:$0xf0] }
 0x1db   : > { %v6297_v61 = vpop.f32.mrf.mxu1  ;;  %3168 = vmatmul.bf16.gmra.mxu2 %v6293_v19  ;;  %v2089_v13 = vadd.f32 1.0, %v5123_v5  ;;  %3302 = vmatpush.bf16.msra.mxu3 %v4334_v18  ;;  %v1968_v5 = vmul.f32 0.5, %v6265_v53  ;;  %v4435_v17 = vld [vmem:[#allocation8 + $0x258] sm:$0xf0] }
 0x1dc   : > { %3216 = vmatmul.bf16.vlgmr.msra.gmra.mxu0 %v5627_v21  ;;  %v1912_v6 = vmul.f32 %v1848_v43, %v1656_v58  ;;  %v1721_v4 = vmul.f32 0.044715, %v6300_v63  ;;  %3273 = vmatpush.bf16.msra.mxu2 %v4270_v11  ;;  %v4901_v43 = vld [vmem:[#allocation8 + $0x374] sm:$0xf]  ;;  %v4883_v11 = vld [vmem:[#allocation8 + $0x2e4] sm:$0xf] }
 0x1dd   : > { %v2153_v34 = vmul.f32 %v2089_v13, %v1961_v46  ;;  %v5125_v12 = vpop.eup %5124  ;;  %3324 = vmatpush.bf16.msrb.mxu0 %v4454_v20  ;;  %3353 = vmatpush.bf16.msrb.mxu1 %v4518_v7  ;;  %v4582_v55 = vor.u32 %v4901_v43, %v4579_v30  ;;  %v1976_v46 = vmul.f32 0.5, %v6282_v8  ;;  %v4510_v24 = vor.u32 %v4883_v11, %v4507_v28  ;;  %v4499_v20 = vld [vmem:[#allocation8 + $0x2d8] sm:$0xf0]  ;;  %v4571_v43 = vld [vmem:[#allocation8 + $0x368] sm:$0xf0] }
 0x1de   : > { %3245 = vmatmul.bf16.vlgmr.msra.gmra.mxu1 %v5643_v56  ;;  %5126 = vtanh.f32 %v1912_v6  ;;  %v1785_v21 = vmul.f32 %v1721_v4, %v6300_v63  ;;  %v1657_v56 = vmul.f32 0.7978846, %v6300_v63  ;;  %v2096_v47 = vadd.f32 1.0, %v5125_v12  ;;  %v4917_v4 = vld [vmem:[#allocation8 + $0x3f4] sm:$0xf] }
 0x1df   : > { %v6308_v3 = vpack.c.bf16 %v2153_v34, %v2145_v2  ;;  %5128 = vtanh.f32 %v1905_v16  ;;  %v4446_v6 = vor.u32 %v4867_v49, %v4443_v0  ;;  %v4643_v16 = vld [vmem:[#allocation8 + $0x3f8] sm:$0xf0]  ;;  %v4865_v2 = vld [vmem:[#allocation8 + $0x254] sm:$0xf]  ;;  %v1977_v30 = vmul.f32 0.5, %v6300_v63 }
 0x1e0   : > { %v1849_v50 = vadd.f32 1.0, %v1785_v21  ;;  %3382 = vmatpush.bf16.msrb.mxu2 %v4582_v55  ;;  %v2160_v18 = vmul.f32 %v2096_v47, %v1968_v5  ;;  %v4646_v53 = vor.u32 %v4917_v4, %v4643_v16  ;;  %v4881_v21 = vld [vmem:[#allocation8 + $0x2d4] sm:$0xf]  ;;  %v4438_v8 = vor.u32 %v4865_v2, %v4435_v17  ;;  %v4863_v55 = vld [vmem:[#allocation8 + $0x244] sm:$0xf] }
 0x1e1   : > { %v6311_v23 = vpop.f32.mrf.mxu0  ;;  %3325 = vmatpush.bf16.msrb.mxu0 %v4446_v6  ;;  %3354 = vmatpush.bf16.msrb.mxu1 %v4510_v24  ;;  %v4502_v1 = vor.u32 %v4881_v21, %v4499_v20  ;;  %v1969_v47 = vmul.f32 0.5, %v6280_v57  ;;  %v4427_v49 = vld [vmem:[#allocation8 + $0x248] sm:$0xf0]  ;;  %v4915_v6 = vld [vmem:[#allocation8 + $0x3e4] sm:$0xf] }
 0x1e2   : > { %3197 = vmatmul.bf16.gmra.mxu3 %v6308_v3  ;;  %v1913_v58 = vmul.f32 %v1849_v50, %v1657_v56  ;;  %v4430_v0 = vor.u32 %v4863_v55, %v4427_v49  ;;  %v4635_v24 = vld [vmem:[#allocation8 + $0x3e8] sm:$0xf0]  ;;  %v4861_v4 = vld [vmem:[#allocation8 + $0x234] sm:$0xf]  ;;  %v4563_v20 = vld [vmem:[#allocation8 + $0x358] sm:$0xf0] }
 0x1e3   : > { %v6313_v54 = vpop.f32.mrf.mxu1  ;;  %3411 = vmatpush.bf16.msrb.mxu3 %v4646_v53  ;;  %v4638_v63 = vor.u32 %v4915_v6, %v4635_v24  ;;  %v4877_v2 = vld [vmem:[#allocation8 + $0x2b4] sm:$0xf]  ;;  %v4403_v49 = vld [vmem:[#allocation8 + $0x218] sm:$0xf0] }
 0x1e4   : > { %v5127_v51 = vpop.eup %5126  ;;  %5130 = vtanh.f32 %v1913_v58  ;;  %v4899_v58 = vld [vmem:[#allocation8 + $0x364] sm:$0xf]  ;;  %v4897_v21 = vld [vmem:[#allocation8 + $0x354] sm:$0xf]  ;;  %v4467_v6 = vld [vmem:[#allocation8 + $0x298] sm:$0xf0] }
 0x1e5   : > { %v2104_v13 = vadd.f32 1.0, %v5127_v51  ;;  %v5129_v34 = vpop.eup %5128  ;;  %3326 = vmatpush.bf16.msrb.mxu0 %v4438_v8  ;;  %3355 = vmatpush.bf16.msrb.mxu1 %v4502_v1  ;;  %v4574_v5 = vor.u32 %v4899_v58, %v4571_v43  ;;  %v4566_v8 = vor.u32 %v4897_v21, %v4563_v20  ;;  %v4859_v1 = vld [vmem:[#allocation8 + $0x224] sm:$0xf]  ;;  %v4475_v58 = vld [vmem:[#allocation8 + $0x2a8] sm:$0xf0] }
 0x1e6   : > { %v2097_v56 = vadd.f32 1.0, %v5129_v34  ;;  %v4483_v34 = vld [vmem:[#allocation8 + $0x2b8] sm:$0xf0]  ;;  %v4913_v43 = vld [vmem:[#allocation8 + $0x3d4] sm:$0xf] }
 0x1e7   : > { %v2168_v15 = vmul.f32 %v2104_v13, %v1976_v46  ;;  %v4879_v46 = vld [vmem:[#allocation8 + $0x2c4] sm:$0xf]  ;;  %v4491_v13 = vld [vmem:[#allocation8 + $0x2c8] sm:$0xf0]  ;;  %3383 = vmatpush.bf16.msrb.mxu2 %v4574_v5  ;;  %3412 = vmatpush.bf16.msrb.mxu3 %v4638_v63  ;;  %v4857_v55 = vld [vmem:[#allocation8 + $0x214] sm:$0xf] }
 0x1e8   : > { %v2161_v11 = vmul.f32 %v2097_v56, %v1969_v47  ;;  %v4494_v28 = vor.u32 %v4879_v46, %v4491_v13  ;;  %v4411_v56 = vld [vmem:[#allocation8 + $0x228] sm:$0xf0]  ;;  %v6338_v46 = vpop.f32.mrf.mxu3  ;;  %v4406_v13 = vor.u32 %v4857_v55, %v4403_v49  ;;  %v4911_v20 = vld [vmem:[#allocation8 + $0x3c4] sm:$0xf] }
 0x1e9   : > { %v6318_v39 = vpop.f32.mrf.mxu0  ;;  %v6320_v12 = vpack.c.bf16 %v2168_v15, %v2160_v18  ;;  %3327 = vmatpush.bf16.msrb.mxu0 %v4430_v0  ;;  %v6329_v18 = vpop.f32.mrf.mxu2  ;;  %v4414_v47 = vor.u32 %v4859_v1, %v4411_v56  ;;  %v4873_v0 = vld [vmem:[#allocation8 + $0x294] sm:$0xf]  ;;  %v4459_v21 = vld [vmem:[#allocation8 + $0x288] sm:$0xf0] }
 0x1ea   : > { %v5131_v50 = vpop.eup %5130  ;;  %3356 = vmatpush.bf16.msrb.mxu1 %v4494_v28  ;;  %v4539_v49 = vld [vmem:[#allocation8 + $0x328] sm:$0xf0] }
 0x1eb   : > { %v6322_v7 = vpop.f32.mrf.mxu1  ;;  %3173 = vmatmul.bf16.gmra.mxu2 %v6320_v12  ;;  %v2105_v51 = vadd.f32 1.0, %v5131_v50  ;;  %v4875_v50 = vld [vmem:[#allocation8 + $0x2a4] sm:$0xf] }
 0x1ec   : > { %3221 = vmatmul.bf16.gmra.mxu0 %v5655_v26  ;;  %v4419_v26 = vld [vmem:[#allocation8 + $0x238] sm:$0xf0]  ;;  %3384 = vmatpush.bf16.msrb.mxu2 %v4566_v8  ;;  %v4619_v8 = vld [vmem:[#allocation8 + $0x3c8] sm:$0xf0] }
 0x1ed   : > { %v2169_v57 = vmul.f32 %v2105_v51, %v1977_v30  ;;  %v4422_v16 = vor.u32 %v4861_v4, %v4419_v26  ;;  %v4627_v30 = vld [vmem:[#allocation8 + $0x3d8] sm:$0xf0]  ;;  %v4478_v51 = vor.u32 %v4875_v50, %v4475_v58  ;;  %v4895_v4 = vld [vmem:[#allocation8 + $0x344] sm:$0xf]  ;;  %v4555_v26 = vld [vmem:[#allocation8 + $0x348] sm:$0xf0]  ;;  %v4622_v56 = vor.u32 %v4911_v20, %v4619_v8 }
 0x1ee   : > { %3250 = vmatmul.bf16.gmra.mxu1 %v5671_v31  ;;  %v4486_v31 = vor.u32 %v4877_v2, %v4483_v34  ;;  %v4630_v5 = vor.u32 %v4913_v43, %v4627_v30  ;;  %v4558_v63 = vor.u32 %v4895_v4, %v4555_v26  ;;  %v4395_v2 = vld [vmem:[#allocation8 + $0x208] sm:$0xf0]  ;;  %v4871_v34 = vld [vmem:[#allocation8 + $0x284] sm:$0xf]  ;;  %v4547_v50 = vld [vmem:[#allocation8 + $0x338] sm:$0xf0] }
 0x1ef   : > { %v6331_v15 = vpack.c.bf16 %v2169_v57, %v2161_v11  ;;  %3328 = vmatpush.bf16.msrb.mxu0 %v4422_v16  ;;  %v4470_v11 = vor.u32 %v4873_v0, %v4467_v6  ;;  %v4855_v16 = vld [vmem:[#allocation8 + $0x204] sm:$0xf]  ;;  %v4462_v1 = vor.u32 %v4871_v34, %v4459_v21  ;;  %v4909_v30 = vld [vmem:[#allocation8 + $0x3b4] sm:$0xf]  ;;  %v4603_v4 = vld [vmem:[#allocation8 + $0x3a8] sm:$0xf0] }
 0x1f0   : > { %3357 = vmatpush.bf16.msrb.mxu1 %v4486_v31  ;;  %3413 = vmatpush.bf16.msrb.mxu3 %v4630_v5  ;;  %v4398_v31 = vor.u32 %v4855_v16, %v4395_v2  ;;  %v4891_v5 = vld [vmem:[#allocation8 + $0x324] sm:$0xf]  ;;  %v4531_v16 = vld [vmem:[#allocation8 + $0x318] sm:$0xf0] }
 0x1f1   : > { %v6333_v53 = vpop.f32.mrf.mxu0  ;;  %v6342_v28 = vpop.f32.mrf.mxu2  ;;  %3385 = vmatpush.bf16.msrb.mxu2 %v4558_v63  ;;  %v4542_v0 = vor.u32 %v4891_v5, %v4539_v49  ;;  %v4889_v63 = vld [vmem:[#allocation8 + $0x314] sm:$0xf]  ;;  %v4887_v20 = vld [vmem:[#allocation8 + $0x304] sm:$0xf] }
 0x1f2   : > { %3202 = vmatmul.bf16.gmra.mxu3 %v6331_v15  ;;  %v4534_v34 = vor.u32 %v4889_v63, %v4531_v16 }
 0x1f3   : > { %v6335_v17 = vpop.f32.mrf.mxu1  ;;  %3329 = vmatpush.bf16.msrb.mxu0 %v4414_v47 }
 0x1f4   : > { %3358 = vmatpush.bf16.msrb.mxu1 %v4478_v51  ;;  %3414 = vmatpush.bf16.msrb.mxu3 %v4622_v56  ;;  %v4611_v51 = vld [vmem:[#allocation8 + $0x3b8] sm:$0xf0] }
 0x1f5   : > { %v4614_v55 = vor.u32 %v4909_v30, %v4611_v51  ;;  %v4903_v30 = vld [vmem:[#allocation8 + $0x384] sm:$0xf] }
 0x1f7   : > { %3330 = vmatpush.bf16.msrb.mxu0 %v4406_v13 }
 0x1f8   : > { %3359 = vmatpush.bf16.msrb.mxu1 %v4470_v11  ;;  %3415 = vmatpush.bf16.msrb.mxu3 %v4614_v55 }
 0x1f9   : > { %v6340_v57 = vpop.f32.mrf.mxu0 }
 0x1fb   : > { %v6344_v24 = vpop.f32.mrf.mxu1  ;;  %3274 = vmatmul.bf16.vlgmr.msra.gmra.mxu2 %v5870_v52  ;;  %v4893_v52 = vld [vmem:[#allocation8 + $0x334] sm:$0xf]  ;;  %3331 = vmatpush.bf16.msrb.mxu0 %v4398_v31 }
 0x1fc   : > { %3226 = vmatmul.bf16.gmra.mxu0 %v5690_v27  ;;  %v4550_v47 = vor.u32 %v4893_v52, %v4547_v50  ;;  %3360 = vmatpush.bf16.msrb.mxu1 %v4462_v1  ;;  %v6349_v27 = vpop.f32.mrf.mxu3  ;;  %v4523_v1 = vld [vmem:[#allocation8 + $0x308] sm:$0xf0] }
 0x1fd   : > { %v4526_v56 = vor.u32 %v4887_v20, %v4523_v1 }
 0x1fe   : > { %3255 = vmatmul.bf16.gmra.mxu1 %v5716_v32  ;;  %3386 = vmatpush.bf16.msrb.mxu2 %v4550_v47  ;;  %v6356_v32 = vpop.f32.mrf.mxu2 }
 0x201   : > { %v6351_v58 = vpop.f32.mrf.mxu0 }
 0x202   : > { %3303 = vmatmul.bf16.vlgmr.msra.gmra.mxu3 %v5873_v35  ;;  %3387 = vmatpush.bf16.msrb.mxu2 %v4542_v0  ;;  %v4907_v35 = vld [vmem:[#allocation8 + $0x3a4] sm:$0xf] }
 0x203   : > { %v6353_v43 = vpop.f32.mrf.mxu1  ;;  %v4606_v26 = vor.u32 %v4907_v35, %v4603_v4 }
 0x204   : > { %v6362_v11 = vpop.f32.mrf.mxu3 }
 0x205   : > { %3416 = vmatpush.bf16.msrb.mxu3 %v4606_v26 }
 0x206   : > { %v6367_v2 = vpop.f32.mrf.mxu2  ;;  %3388 = vmatpush.bf16.msrb.mxu2 %v4534_v34 }
 0x209   : > { %v6358_v13 = vpop.f32.mrf.mxu0 }
 0x20a   : > { %3389 = vmatpush.bf16.msrb.mxu2 %v4526_v56 }
 0x20b   : > { %v6360_v6 = vpop.f32.mrf.mxu1  ;;  %3279 = vmatmul.bf16.gmra.mxu2 %v5937_v40  ;;  %v4905_v40 = vld [vmem:[#allocation8 + $0x394] sm:$0xf] }
 0x20c   : > { %3231 = vmatmul.bf16.gmra.mxu0 %v5741_v48  ;;  %v4595_v48 = vld [vmem:[#allocation8 + $0x398] sm:$0xf0]  ;;  %v6374_v8 = vpop.f32.mrf.mxu3 }
 0x20e   : > { %3260 = vmatmul.bf16.gmra.mxu1 %v5814_v41  ;;  %v4598_v41 = vor.u32 %v4905_v40, %v4595_v48  ;;  %v6376_v52 = vpop.f32.mrf.mxu2  ;;  %v6615_v40 = vld [vmem:[#allocation16_spill] sm:$0xff] }
 0x210   : > { %3417 = vmatpush.bf16.msrb.mxu3 %v4598_v41 }
 0x211   : > { %v6369_v31 = vpop.f32.mrf.mxu0 }
 0x212   : > { %3308 = vmatmul.bf16.gmra.mxu3 %v5947_v38  ;;  %v4587_v38 = vld [vmem:[#allocation8 + $0x388] sm:$0xf0] }
 0x213   : > { %v6371_v21 = vpop.f32.mrf.mxu1  ;;  %v4590_v51 = vor.u32 %v4903_v30, %v4587_v38 }
 0x214   : > { %v6381_v5 = vpop.f32.mrf.mxu3 }
 0x215   : > { %3418 = vmatpush.bf16.msrb.mxu3 %v4590_v51 }
 0x216   : > { %v6383_v49 = vpop.f32.mrf.mxu2 }
 0x219   : > { %v3101_v50 = vpop.f32.mrf.mxu0 }
 0x21b   : > { %v3130_v47 = vpop.f32.mrf.mxu1  ;;  %3284 = vmatmul.bf16.gmra.mxu2 %v6012_v33 }
 0x21c   : > { %3332 = vmatmul.bf16.vlgmr.msrb.gmra.mxu0 %v6085_v60  ;;  %v6386_v35 = vpop.f32.mrf.mxu3  ;;  %v6391_v60 = vld [vmem:[%s6600_s4] sm:$0x3] }
 0x21d   : > { %v6399_v63 = vperm.slane %v6391_v60, 0 }
 0x21e   : > { %3361 = vmatmul.bf16.vlgmr.msrb.gmra.mxu1 %v6099_v36  ;;  %v6614_v36 = vld [vmem:[#allocation15_spill] sm:$0xff]  ;;  %v6394_v26 = vpop.f32.mrf.mxu2 }
 0x21f   : > { %v2986_v16 = vadd.f32 %v6291_v29, %v6399_v63  ;;  %v2988_v1 = vadd.f32 %v6311_v23, %v6399_v63  ;;  %v2991_v23 = vadd.f32 %v6318_v39, %v6399_v63  ;;  %v2993_v39 = vadd.f32 %v6333_v53, %v6399_v63 }
 0x221   : > { %v3103_v55 = vpop.f32.mrf.mxu0  ;;  %v3015_v20 = vadd.f32 %v6297_v61, %v2986_v16  ;;  %v3017_v61 = vadd.f32 %v6313_v54, %v2988_v1  ;;  %v3020_v54 = vadd.f32 %v6322_v7, %v2991_v23 }
 0x222   : > { %3313 = vmatmul.bf16.gmra.mxu3 %v6019_v14 }
 0x223   : > { %v3132_v0 = vpop.f32.mrf.mxu1  ;;  %v3046_v51 = vadd.f32 %v6342_v28, %v3017_v61 }
 0x224   : > { %v6406_v48 = vpop.f32.mrf.mxu3 }
 0x226   : > { %v6409_v41 = vpop.f32.mrf.mxu2 }
 0x229   : > { %v3106_v4 = vpop.f32.mrf.mxu0 }
 0x22b   : > { %v3135_v33 = vpop.f32.mrf.mxu1  ;;  %3289 = vmatmul.bf16.gmra.mxu2 %v6614_v36 }
 0x22c   : > { %3337 = vmatmul.bf16.gmra.mxu0 %v6131_v44  ;;  %v3044_v44 = vadd.f32 %v6329_v18, %v3015_v20  ;;  %v6421_v30 = vpop.f32.mrf.mxu3  ;;  %v3049_v20 = vadd.f32 %v6356_v32, %v3020_v54  ;;  %v3022_v32 = vadd.f32 %v6335_v17, %v2993_v39 }
 0x22e   : > { %3366 = vmatmul.bf16.gmra.mxu1 %v6143_v10  ;;  %v3073_v29 = vadd.f32 %v6338_v46, %v3044_v44  ;;  %v3078_v7 = vadd.f32 %v6362_v11, %v3049_v20  ;;  %v3051_v53 = vadd.f32 %v6367_v2, %v3022_v32 }
 0x230   : > { %v3102_v18 = vadd.f32 %v3101_v50, %v3073_v29  ;;  %v3107_v44 = vadd.f32 %v3106_v4, %v3078_v7 }
 0x231   : > { %v3108_v14 = vpop.f32.mrf.mxu0 }
 0x232   : > { %3318 = vmatmul.bf16.gmra.mxu3 %v6615_v40  ;;  %v3136_v11 = vadd.f32 %v3135_v33, %v3107_v44 }
 0x233   : > { %v6403_v34 = vpop.f32.mrf.mxu1 }
 0x239   : > { %v6412_v10 = vpop.f32.mrf.mxu0 }
 0x23b   : > { %v6416_v56 = vpop.f32.mrf.mxu1  ;;  %3390 = vmatmul.bf16.vlgmr.msrb.gmra.mxu2 %v6206_v22  ;;  %v3131_v22 = vadd.f32 %v3130_v47, %v3102_v18 }
 0x23c   : > { %3342 = vmatmul.bf16.gmra.mxu0 %v6149_v45  ;;  %v3075_v45 = vadd.f32 %v6349_v27, %v3046_v51 }
 0x23e   : > { %3371 = vmatmul.bf16.gmra.mxu1 %v6214_v25  ;;  %v3159_v38 = vpop.f32.mrf.mxu2  ;;  %v3104_v50 = vadd.f32 %v3103_v55, %v3075_v45 }
 0x23f   : > { %v3160_v46 = vadd.f32 %v3159_v38, %v3131_v22 }
 0x240   : > { %v3133_v27 = vadd.f32 %v3132_v0, %v3104_v50  ;;  %v3080_v0 = vadd.f32 %v6374_v8, %v3051_v53 }
 0x241   : > { %v6426_v36 = vpop.f32.mrf.mxu0 }
 0x242   : > { %3419 = vmatmul.bf16.vlgmr.msrb.gmra.mxu3 %v6227_v62  ;;  %v3109_v4 = vadd.f32 %v3108_v14, %v3080_v0 }
 0x243   : > { %v6433_v16 = vpop.f32.mrf.mxu1 }
 0x245   : > { %v3188_v25 = vpop.f32.mrf.mxu3 }
 0x246   : > { %v3189_v40 = vadd.f32 %v3188_v25, %v3160_v46  ;;  %v3161_v28 = vpop.f32.mrf.mxu2 }
 0x247   : > { %v3162_v47 = vadd.f32 %v3161_v28, %v3133_v27 }
 0x248   : > { %3440 = vst [vmem:[%s6437_s16] sm:$0xff] %v3189_v40 }
 0x249   : > { %v6440_v62 = vpop.f32.mrf.mxu0 }
 0x24b   : > { %3395 = vmatmul.bf16.gmra.mxu2 %v6254_v37  ;;  %v3145_v61 = vpop.f32.mrf.mxu1  ;;  %v2996_v37 = vadd.f32 %v6340_v57, %v6399_v63  ;;  %v2998_v57 = vadd.f32 %v6351_v58, %v6399_v63  ;;  %v3001_v58 = vadd.f32 %v6358_v13, %v6399_v63 }
 0x24c   : > { %3347 = vmatmul.bf16.gmra.mxu0 %v6240_v9 }
 0x24d   : > { %v3190_v55 = vpop.f32.mrf.mxu3  ;;  %v3025_v17 = vadd.f32 %v6344_v24, %v2996_v37  ;;  %v3027_v14 = vadd.f32 %v6353_v43, %v2998_v57 }
 0x24e   : > { %3376 = vmatmul.bf16.gmra.mxu1 %v6263_v42  ;;  %v3191_v1 = vadd.f32 %v3190_v55, %v3162_v47  ;;  %v3164_v29 = vpop.f32.mrf.mxu2 }
 0x24f   : > { %v3165_v42 = vadd.f32 %v3164_v29, %v3136_v11  ;;  %v3054_v2 = vadd.f32 %v6376_v52, %v3025_v17  ;;  %v3056_v25 = vadd.f32 %v6383_v49, %v3027_v14 }
 0x250   : > { %3442 = vst [vmem:[%s6437_s16 + $0x10] sm:$0xff] %v3191_v1 }
 0x251   : > { %v3118_v9 = vpop.f32.mrf.mxu0  ;;  %v3083_v8 = vadd.f32 %v6381_v5, %v3054_v2 }
 0x252   : > { %3424 = vmatmul.bf16.gmra.mxu3 %v6273_v59  ;;  %v3138_v59 = vadd.f32 %v6403_v34, %v3109_v4  ;;  %v3085_v34 = vadd.f32 %v6386_v35, %v3056_v25 }
 0x253   : > { %v3147_v23 = vpop.f32.mrf.mxu1  ;;  %v3112_v45 = vadd.f32 %v6412_v10, %v3083_v8  ;;  %v3030_v10 = vadd.f32 %v6360_v6, %v3001_v58 }
 0x254   : > { %v3114_v50 = vadd.f32 %v6426_v36, %v3085_v34 }
 0x255   : > { %v3193_v18 = vpop.f32.mrf.mxu3  ;;  %v3059_v13 = vadd.f32 %v6394_v26, %v3030_v10 }
 0x256   : > { %v3194_v38 = vadd.f32 %v3193_v18, %v3165_v42  ;;  %v3166_v51 = vpop.f32.mrf.mxu2 }
 0x257   : > { %v3167_v33 = vadd.f32 %v3166_v51, %v3138_v59  ;;  %v3088_v35 = vadd.f32 %v6406_v48, %v3059_v13 }
 0x258   : > { %3444 = vst [vmem:[%s6437_s16 + $0x20] sm:$0xff] %v3194_v38 }
 0x259   : > { %v6463_v22 = vpop.f32.mrf.mxu0  ;;  %v3117_v27 = vadd.f32 %v6440_v62, %v3088_v35 }
 0x25b   : > { %3400 = vmatmul.bf16.gmra.mxu2 %v6293_v19  ;;  %v3141_v19 = vadd.f32 %v6416_v56, %v3112_v45  ;;  %v6473_v5 = vpop.f32.mrf.mxu1  ;;  %v3143_v56 = vadd.f32 %v6433_v16, %v3114_v50 }
 0x25d   : > { %v3195_v24 = vpop.f32.mrf.mxu3 }
 0x25e   : > { %v3196_v52 = vadd.f32 %v3195_v24, %v3167_v33  ;;  %v3169_v46 = vpop.f32.mrf.mxu2 }
 0x25f   : > { %v3170_v43 = vadd.f32 %v3169_v46, %v3141_v19  ;;  %v6520_v46 = vperm.slane %v6391_v60, 1 }
 0x260   : > { %3446 = vst [vmem:[%s6437_s16 + $0x30] sm:$0xff] %v3196_v52 }
 0x261   : > { %v6478_v28 = vpop.f32.mrf.mxu0  ;;  %v3218_v58 = vadd.f32 %v6463_v22, %v6520_v46 }
 0x262   : > { %3429 = vmatmul.bf16.gmra.mxu3 %v6308_v3  ;;  %v3003_v3 = vadd.f32 %v6369_v31, %v6399_v63  ;;  %v3146_v63 = vadd.f32 %v3145_v61, %v3117_v27  ;;  %v3220_v50 = vadd.f32 %v6478_v28, %v6520_v46 }
 0x263   : > { %v3248_v20 = vpop.f32.mrf.mxu1 }
 0x264   : > { %v3032_v39 = vadd.f32 %v6371_v21, %v3003_v3 }
 0x265   : > { %v3198_v54 = vpop.f32.mrf.mxu3 }
 0x266   : > { %v3199_v40 = vadd.f32 %v3198_v54, %v3170_v43  ;;  %v3171_v49 = vpop.f32.mrf.mxu2  ;;  %v3061_v47 = vadd.f32 %v6409_v41, %v3032_v39  ;;  %v3247_v54 = vadd.f32 %v6473_v5, %v3218_v58 }
 0x267   : > { %v3172_v6 = vadd.f32 %v3171_v49, %v3143_v56  ;;  %v3249_v56 = vadd.f32 %v3248_v20, %v3220_v50 }
 0x268   : > { %3448 = vst [vmem:[%s6437_s16 + $0x40] sm:$0xff] %v3199_v40 }
 0x269   : > { %v3222_v31 = vpop.f32.mrf.mxu0 }
 0x26b   : > { %3405 = vmatmul.bf16.gmra.mxu2 %v6320_v12  ;;  %v3090_v12 = vadd.f32 %v6421_v30, %v3061_v47  ;;  %v3251_v44 = vpop.f32.mrf.mxu1 }
 0x26d   : > { %v3200_v36 = vpop.f32.mrf.mxu3  ;;  %v3119_v55 = vadd.f32 %v3118_v9, %v3090_v12 }
 0x26e   : > { %v3201_v7 = vadd.f32 %v3200_v36, %v3172_v6  ;;  %v3174_v26 = vpop.f32.mrf.mxu2  ;;  %v3223_v36 = vadd.f32 %v3222_v31, %v6520_v46 }
 0x26f   : > { %v3175_v48 = vadd.f32 %v3174_v26, %v3146_v63  ;;  %v3148_v62 = vadd.f32 %v3147_v23, %v3119_v55 }
 0x270   : > { %3450 = vst [vmem:[%s6437_s16 + $0x50] sm:$0xff] %v3201_v7  ;;  %v3252_v63 = vadd.f32 %v3251_v44, %v3223_v36 }
 0x271   : > { %v3224_v1 = vpop.f32.mrf.mxu0 }
 0x272   : > { %3434 = vmatmul.bf16.gmra.mxu3 %v6331_v15  ;;  %v3225_v20 = vadd.f32 %v3224_v1, %v6520_v46 }
 0x273   : > { %v3253_v61 = vpop.f32.mrf.mxu1 }
 0x275   : > { %v3203_v16 = vpop.f32.mrf.mxu3 }
 0x276   : > { %v3204_v32 = vadd.f32 %v3203_v16, %v3175_v48  ;;  %v3176_v21 = vpop.f32.mrf.mxu2 }
 0x277   : > { %v3177_v29 = vadd.f32 %v3176_v21, %v3148_v62 }
 0x278   : > { %3452 = vst [vmem:[%s6437_s16 + $0x60] sm:$0xff] %v3204_v32 }
 0x279   : > { %v6495_v11 = vpop.f32.mrf.mxu0 }
 0x27a   : > { %v3228_v44 = vadd.f32 %v6495_v11, %v6520_v46 }
 0x27b   : > { %v6497_v30 = vpop.f32.mrf.mxu1 }
 0x27c   : > { %v3257_v58 = vadd.f32 %v6497_v30, %v3228_v44 }
 0x27d   : > { %v3205_v53 = vpop.f32.mrf.mxu3 }
 0x27e   : > { %v3206_v41 = vadd.f32 %v3205_v53, %v3177_v29  ;;  %v3275_v37 = vpop.f32.mrf.mxu2  ;;  %v3254_v53 = vadd.f32 %v3253_v61, %v3225_v20 }
 0x27f   : > { %v3276_v10 = vadd.f32 %v3275_v37, %v3247_v54 }
 0x280   : > { %3454 = vst [vmem:[%s6437_s16 + $0x70] sm:$0xff] %v3206_v41 }
 0x281   : > { %v6499_v18 = vpop.f32.mrf.mxu0 }
 0x283   : > { %v6501_v17 = vpop.f32.mrf.mxu1 }
 0x285   : > { %v3304_v15 = vpop.f32.mrf.mxu3 }
 0x286   : > { %v3277_v0 = vpop.f32.mrf.mxu2  ;;  %v3305_v40 = vadd.f32 %v3304_v15, %v3276_v10 }
 0x287   : > { %v3278_v35 = vadd.f32 %v3277_v0, %v3249_v56 }
 0x289   : > { %v6503_v51 = vpop.f32.mrf.mxu0 }
 0x28a   : > { %v3233_v56 = vadd.f32 %v6503_v51, %v6520_v46 }
 0x28b   : > { %v6505_v57 = vpop.f32.mrf.mxu1 }
 0x28d   : > { %v3306_v42 = vpop.f32.mrf.mxu3 }
 0x28e   : > { %v3280_v9 = vpop.f32.mrf.mxu2  ;;  %v3307_v39 = vadd.f32 %v3306_v42, %v3278_v35 }
 0x28f   : > { %v3281_v12 = vadd.f32 %v3280_v9, %v3252_v63 }
 0x291   : > { %v6507_v59 = vpop.f32.mrf.mxu0 }
 0x292   : > { %v3235_v51 = vadd.f32 %v6507_v59, %v6520_v46 }
 0x293   : > { %v6513_v24 = vpop.f32.mrf.mxu1 }
 0x295   : > { %v3309_v4 = vpop.f32.mrf.mxu3 }
 0x296   : > { %v3282_v38 = vpop.f32.mrf.mxu2  ;;  %v3310_v55 = vadd.f32 %v3309_v4, %v3281_v12 }
 0x297   : > { %v3283_v37 = vadd.f32 %v3282_v38, %v3254_v53  ;;  %v3230_v38 = vadd.f32 %v6499_v18, %v6520_v46 }
 0x299   : > { %v3333_v14 = vpop.f32.mrf.mxu0 }
 0x29a   : > { %v3334_v60 = vadd.f32 %v3333_v14, %v3305_v40 }
 0x29b   : > { %v3362_v25 = vpop.f32.mrf.mxu1 }
 0x29c   : > { %v3363_v6 = vadd.f32 %v3362_v25, %v3334_v60 }
 0x29d   : > { %v3311_v2 = vpop.f32.mrf.mxu3 }
 0x29e   : > { %v3285_v23 = vpop.f32.mrf.mxu2  ;;  %v3312_v0 = vadd.f32 %v3311_v2, %v3283_v37 }
 0x2a1   : > { %v3335_v43 = vpop.f32.mrf.mxu0 }
 0x2a2   : > { %v3336_v7 = vadd.f32 %v3335_v43, %v3307_v39  ;;  %v3286_v43 = vadd.f32 %v3285_v23, %v3257_v58 }
 0x2a3   : > { %v3364_v49 = vpop.f32.mrf.mxu1 }
 0x2a4   : > { %v3365_v48 = vadd.f32 %v3364_v49, %v3336_v7 }
 0x2a5   : > { %v6509_v8 = vpop.f32.mrf.mxu3 }
 0x2a6   : > { %v6511_v33 = vpop.f32.mrf.mxu2  ;;  %v3315_v10 = vadd.f32 %v6509_v8, %v3286_v43 }
 0x2a9   : > { %v3338_v22 = vpop.f32.mrf.mxu0 }
 0x2aa   : > { %v3339_v62 = vadd.f32 %v3338_v22, %v3310_v55 }
 0x2ab   : > { %v3367_v47 = vpop.f32.mrf.mxu1 }
 0x2ac   : > { %v3368_v15 = vadd.f32 %v3367_v47, %v3339_v62 }
 0x2ad   : > { %v6515_v45 = vpop.f32.mrf.mxu3 }
 0x2ae   : > { %v6517_v52 = vpop.f32.mrf.mxu2 }
 0x2b1   : > { %v3340_v16 = vpop.f32.mrf.mxu0 }
 0x2b2   : > { %v3341_v1 = vadd.f32 %v3340_v16, %v3312_v0 }
 0x2b3   : > { %v3369_v41 = vpop.f32.mrf.mxu1 }
 0x2b4   : > { %v3370_v61 = vadd.f32 %v3369_v41, %v3341_v1 }
 0x2b5   : > { %v6524_v19 = vpop.f32.mrf.mxu3 }
 0x2b6   : > { %v6526_v34 = vpop.f32.mrf.mxu2 }
 0x2b9   : > { %v3343_v9 = vpop.f32.mrf.mxu0 }
 0x2ba   : > { %v3344_v50 = vadd.f32 %v3343_v9, %v3315_v10 }
 0x2bb   : > { %v3372_v54 = vpop.f32.mrf.mxu1 }
 0x2bc   : > { %v3373_v23 = vadd.f32 %v3372_v54, %v3344_v50 }
 0x2bd   : > { %v6531_v13 = vpop.f32.mrf.mxu3 }
 0x2be   : > { %v3391_v3 = vpop.f32.mrf.mxu2 }
 0x2bf   : > { %v3392_v27 = vadd.f32 %v3391_v3, %v3363_v6  ;;  %v3259_v3 = vadd.f32 %v6501_v17, %v3230_v38 }
 0x2c1   : > { %v3345_v60 = vpop.f32.mrf.mxu0  ;;  %v3288_v30 = vadd.f32 %v6511_v33, %v3259_v3 }
 0x2c3   : > { %v3317_v18 = vadd.f32 %v6515_v45, %v3288_v30  ;;  %v3374_v8 = vpop.f32.mrf.mxu1 }
 0x2c5   : > { %v3420_v5 = vpop.f32.mrf.mxu3  ;;  %v3346_v6 = vadd.f32 %v3345_v60, %v3317_v18 }
 0x2c6   : > { %v3421_v26 = vadd.f32 %v3420_v5, %v3392_v27  ;;  %v3393_v28 = vpop.f32.mrf.mxu2  ;;  %v3262_v27 = vadd.f32 %v6505_v57, %v3233_v56  ;;  %v3264_v57 = vadd.f32 %v6513_v24, %v3235_v51 }
 0x2c7   : > { %v3394_v32 = vadd.f32 %v3393_v28, %v3365_v48  ;;  %v3375_v33 = vadd.f32 %v3374_v8, %v3346_v6 }
 0x2c8   : > { %3441 = vst [vmem:[%s6437_s16 + $0x8] sm:$0xff] %v3421_v26  ;;  %v3291_v5 = vadd.f32 %v6517_v52, %v3262_v27  ;;  %v3293_v52 = vadd.f32 %v6526_v34, %v3264_v57 }
 0x2c9   : > { %v3348_v17 = vpop.f32.mrf.mxu0 }
 0x2ca   : > { %v3320_v45 = vadd.f32 %v6524_v19, %v3291_v5  ;;  %v3322_v20 = vadd.f32 %v6531_v13, %v3293_v52 }
 0x2cb   : > { %v3377_v63 = vpop.f32.mrf.mxu1 }
 0x2cc   : > { %v3349_v28 = vadd.f32 %v3348_v17, %v3320_v45 }
 0x2cd   : > { %v3422_v21 = vpop.f32.mrf.mxu3 }
 0x2ce   : > { %v3423_v31 = vadd.f32 %v3422_v21, %v3394_v32  ;;  %v3396_v29 = vpop.f32.mrf.mxu2  ;;  %v3378_v48 = vadd.f32 %v3377_v63, %v3349_v28 }
 0x2cf   : > { %v3397_v42 = vadd.f32 %v3396_v29, %v3368_v15 }
 0x2d0   : > { %3443 = vst [vmem:[%s6437_s16 + $0x18] sm:$0xff] %v3423_v31 }
 0x2d1   : > { %v3350_v16 = vpop.f32.mrf.mxu0 }
 0x2d2   : > { %v3351_v19 = vadd.f32 %v3350_v16, %v3322_v20 }
 0x2d3   : > { %v3379_v24 = vpop.f32.mrf.mxu1 }
 0x2d4   : > { %v3380_v34 = vadd.f32 %v3379_v24, %v3351_v19 }
 0x2d5   : > { %v3425_v14 = vpop.f32.mrf.mxu3 }
 0x2d6   : > { %v3426_v4 = vadd.f32 %v3425_v14, %v3397_v42  ;;  %v3398_v25 = vpop.f32.mrf.mxu2 }
 0x2d7   : > { %v3399_v11 = vadd.f32 %v3398_v25, %v3370_v61 }
 0x2d8   : > { %3445 = vst [vmem:[%s6437_s16 + $0x28] sm:$0xff] %v3426_v4 }
 0x2dd   : > { %v3427_v2 = vpop.f32.mrf.mxu3 }
 0x2de   : > { %v3428_v40 = vadd.f32 %v3427_v2, %v3399_v11  ;;  %v3401_v49 = vpop.f32.mrf.mxu2 }
 0x2df   : > { %v3402_v22 = vadd.f32 %v3401_v49, %v3373_v23 }
 0x2e0   : > { %3447 = vst [vmem:[%s6437_s16 + $0x38] sm:$0xff] %v3428_v40 }
 0x2e5   : > { %v3430_v35 = vpop.f32.mrf.mxu3 }
 0x2e6   : > { %v3431_v36 = vadd.f32 %v3430_v35, %v3402_v22  ;;  %v3403_v39 = vpop.f32.mrf.mxu2 }
 0x2e7   : > { %v3404_v7 = vadd.f32 %v3403_v39, %v3375_v33 }
 0x2e8   : > { %3449 = vst [vmem:[%s6437_s16 + $0x48] sm:$0xff] %v3431_v36 }
 0x2ed   : > { %v3432_v26 = vpop.f32.mrf.mxu3 }
 0x2ee   : > { %v3433_v47 = vadd.f32 %v3432_v26, %v3404_v7  ;;  %v3406_v12 = vpop.f32.mrf.mxu2 }
 0x2ef   : > { %v3407_v59 = vadd.f32 %v3406_v12, %v3378_v48 }
 0x2f0   : > { %3451 = vst [vmem:[%s6437_s16 + $0x58] sm:$0xff] %v3433_v47 }
 0x2f5   : > { %v3435_v46 = vpop.f32.mrf.mxu3 }
 0x2f6   : > { %v3436_v55 = vadd.f32 %v3435_v46, %v3407_v59  ;;  %v3408_v32 = vpop.f32.mrf.mxu2 }
 0x2f7   : > { %v3409_v21 = vadd.f32 %v3408_v32, %v3380_v34 }
 0x2f8   : > { %3453 = vst [vmem:[%s6437_s16 + $0x68] sm:$0xff] %v3436_v55 }
 0x2fd   : > { %v3437_v13 = vpop.f32.mrf.mxu3 }
 0x2fe   : > { %v3438_v62 = vadd.f32 %v3437_v13, %v3409_v21 }
 0x300   : > { %3455 = vst [vmem:[%s6437_s16 + $0x78] sm:$0xff] %v3438_v62 }
 0x301   : > { %5280 = shalt.err (!%p5277_p10)
}
 0x302   : > { %s5336_s17 = smov 256   ;;  %s5337_s28 = smov 16  }
 0x303   : > { %4935 = dma.vmem_to_hbm [thread:$0]  (%p5453_p3), %s3471_s12, 2048, %s3473_s14, %s3457_s22, %s5336_s17, %s5336_s17, %s5337_s28  }
 0x304 PF: > { %s3487_s16 = sand.u32 1, %s5315_s18   ;;  %p6616_p12 = scmp.ge.s32.totalorder %s5327_s21, 2 }
 0x305   : > { %s3488_s23 = scalar_lea.sflag [#allocation4], %s3487_s16 }
 0x306   : > { %p4952_p13 = pnand %p6616_p12, %p5403_p6 }
 0x308   : > { %p4953_p0 = pneg %p4952_p13 }
 0x30a   : > { %5310 = dma.done.wait (%p4953_p0), %s3488_s23, 2048  }
 0x30b   : > { %5312 = vsyncadd (%p4953_p0), %s3488_s23, 4294965248  ;;  %p20_p5 = scmp.ge.s32.totalorder %s5440_s30, 4   ;;  %s6617_s18 = smov %s5319_s19 }
 0x30c   : > { %s6618_s19 = smov %s5323_s20  ;;  %s6619_s20 = smov %s5449_s9 }
 0x30d   : > { %s6620_s21 = smov %s5440_s30  ;;  %22 = sbr.rel (!%p20_p5) target bundleno = 7 (0x7), region = 97 }
 0x312   :  { %3494 = vsyncpa [#allocation3], 1 }
 0x313   :  { %3496 = vsyncpa [#allocation3 + $0x1], 1 }
 0x314   :  { %3497 = vsyncpa [#allocation6], 1 }
 0x315   :  { %3498 = vsyncpa [#allocation9], 1 }
 0x316   :  { %3499 = vsyncpa [#allocation4], 1 }
 0x317   :  { %3501 = vsyncpa [#allocation4 + $0x1], 1 }

</bundles_post_ra>
